<compile_context>
chip_gen: v7x
topology: tpu7x:2x2x1
jax: 0.10.0
libtpu: 0.0.40
codegen_flags: <defaults>
</compile_context>

<pallas_src>
import functools

import numpy as np
import jax
import jax.numpy as jnp
from jax.experimental import pallas as pl
from jax.experimental.pallas import tpu as pltpu


def _interp_matrix(out_size: int, in_size: int) -> jnp.ndarray:
    """1-D bilinear resize matrix, align_corners=True (exact)."""
    M = np.zeros((out_size, in_size), np.float32)
    for i in range(out_size):
        src = 0.0 if out_size == 1 else i * (in_size - 1) / (out_size - 1)
        lo = int(np.floor(src))
        hi = min(lo + 1, in_size - 1)
        w = src - lo
        M[i, lo] += 1.0 - w
        M[i, hi] += w
    return jnp.asarray(M)


def _ff_kernel(feat_ref, p_ref,
               w1_ref, s1_ref, b1_ref,
               w2_ref, s2_ref, b2_ref,
               w3_ref, b3_ref,
               enh_ref, pred_ref, *, H, W, B_TILE, kgroup):
    """Per-grid-step fused kernel (B_TILE images): sigmoid gate, 2x (3x3 conv as three
    accumulating K=128 im2col dots + folded BN + ReLU), 1x1 conv as lane reduction."""
    HW = H * W

    # column-within-row index for the vertically padded [(H+2)*W, C] layout;
    # used to zero the horizontal-padding taps of the +-1 row shifts.
    col = jax.lax.broadcasted_iota(jnp.int32, ((H + 2) * W, 1), 0) % W
    first_col = col == 0
    last_col = col == (W - 1)

    # load per-channel params once, reuse across the batch sub-loop (no re-broadcast per image)
    s1 = s1_ref[...]
    b1 = b1_ref[...]
    s2 = s2_ref[...]
    b2 = b2_ref[...]
    w3 = w3_ref[...]
    b3 = b3_ref[...]

    def conv3x3(xin_bf16, w_ref):
        # xin: [HW, Cin] bf16.  Build ONE 128-lane slab (left|center|right|pad) over the
        # vertically zero-padded image, then do three accumulating K=128 MXU dots, one per
        # ky group, using aligned sublane slices.  No [HW, 3*128] concat is materialized.
        Cin = xin_bf16.shape[-1]
        zrow = jnp.zeros((W, Cin), jnp.bfloat16)
        xv = jnp.concatenate([zrow, xin_bf16, zrow], axis=0)           # [(H+2)W, Cin]
        left = jnp.where(first_col, 0.0, jnp.roll(xv, 1, axis=0))      # tap kx=0
        right = jnp.where(last_col, 0.0, jnp.roll(xv, -1, axis=0))     # tap kx=2
        pieces = [left, xv, right]
        pad_w = kgroup - 3 * Cin
        if pad_w:
            pieces.append(jnp.zeros(((H + 2) * W, pad_w), jnp.bfloat16))
        u = jnp.concatenate(pieces, axis=-1)                            # [(H+2)W, 128] bf16
        acc = None
        for ky in range(3):
            slab = u[ky * W:ky * W + HW]                                # aligned sublane slice
            wk = w_ref[ky * kgroup:(ky + 1) * kgroup, :]                # aligned 128-row slice
            d = jnp.dot(slab, wk, preferred_element_type=jnp.float32)   # [HW, Cout] f32
            acc = d if acc is None else acc + d
        return acc

    for bi in range(B_TILE):
        # sigmoid(pred) gating: sigmoid in f32 (EUP), multiply / assembly in bf16
        gate = jax.nn.sigmoid(p_ref[bi]).astype(jnp.bfloat16)           # [HW, 1]
        x = feat_ref[bi] * gate                                         # [HW, C] bf16

        # conv1 (32->32) + folded BN + ReLU
        h1 = jnp.maximum(conv3x3(x, w1_ref) * s1 + b1, 0.0)             # [HW, 32]  f32
        # conv2 (32->256) + folded BN + ReLU
        h2 = jnp.maximum(conv3x3(h1.astype(jnp.bfloat16), w2_ref) * s2 + b2, 0.0)  # [HW,256] f32

        # conv3: 1x1, 256 -> 1, from the f32 h2 (before the bf16 store) as a lane reduction;
        # stored as an (HW, 1) column -> no sublane->lane relayout.
        pred_ref[bi] = jnp.sum(h2 * w3, axis=-1, keepdims=True) + b3    # [HW, 1]

        # enhanced feature written back in bf16 (halves HBM writeback + later transpose read)
        enh_ref[bi] = h2.astype(jnp.bfloat16)                           # [HW, 256]


def _pick_batch_tile(N, HW):
    # amortize the ~0.35us per-grid-step overhead at small HW while keeping >= 2 grid steps
    # so v7x megacore ("parallel" batch axis) still splits work across its two TensorCores.
    if HW >= 4096:
        return 1
    for bt in (8, 4, 2):
        if N % bt == 0 and N // bt >= 2:
            return bt
    return 1


def ff_forward(feat_nchw, pred_nchw, P, eps=1e-5):
    N, C, H, W = feat_nchw.shape
    CM = P['W2'].shape[0]
    HW = H * W
    kgroup = ((3 * C + 127) // 128) * 128        # 128: one padded ky-group of the im2col K axis

    # TODO(synk): pad W (and extend the first/last-col masks) when W % 8 != 0 so the sublane
    #             slices of the im2col slab stay (8,128)-tile aligned.
    assert W % 8 == 0, "kernel assumes W is a multiple of 8 (pad columns otherwise)"

    B_TILE = _pick_batch_tile(N, HW)

    # --- glue: exact bilinear (align_corners=True) upsample of pred logits to (H, W) ---
    Mh = _interp_matrix(H, pred_nchw.shape[2])
    Mw = _interp_matrix(W, pred_nchw.shape[3])
    pred_up = jnp.einsum('Hh,nhw,Ww->nHW', Mh, pred_nchw[:, 0].astype(jnp.float32), Mw)
    pred_up = pred_up.reshape(N, HW, 1)

    # NCHW -> flattened NHWC (rows = y*W + x), bf16 input halves feat DMA; MXU operands are
    # bf16 anyway.
    feat = jnp.transpose(feat_nchw, (0, 2, 3, 1)).astype(jnp.bfloat16).reshape(N, HW, C)

    # --- glue: fold conv bias + inference BatchNorm into per-channel scale / bias ---
    s1 = P['g1'] / jnp.sqrt(P['v1'] + eps)
    be1 = (P['b1'] - P['m1']) * s1 + P['be1']
    s2 = P['g2'] / jnp.sqrt(P['v2'] + eps)
    be2 = (P['b2'] - P['m2']) * s2 + P['be2']

    def im2col_weight(w_oihw):
        # (O, I, 3, 3) -> [3*kgroup, O] matching slab layout: lane-within-group = kx*C + c,
        # rows grouped by ky (each ky group zero-padded to kgroup rows).
        O = w_oihw.shape[0]
        w = jnp.transpose(w_oihw, (2, 3, 1, 0)).reshape(3, 3 * C, O)     # (ky, kx*C+c, O)
        w = jnp.pad(w, ((0, 0), (0, kgroup - 3 * C), (0, 0)))            # pad each ky group
        return w.reshape(3 * kgroup, O).astype(jnp.bfloat16)

    w1m = im2col_weight(P['W1'])                 # (384, 32)  bf16
    w2m = im2col_weight(P['W2'])                 # (384, 256) bf16
    w3r = P['W3'].reshape(1, CM).astype(jnp.float32)
    b3r = P['b3'].reshape(1, 1).astype(jnp.float32)

    kernel = functools.partial(_ff_kernel, H=H, W=W, B_TILE=B_TILE, kgroup=kgroup)

    def bcast_spec(shape):
        return pl.BlockSpec(shape, lambda b: (0,) * len(shape))

    grid_spec = pltpu.PrefetchScalarGridSpec(
        num_scalar_prefetch=0,
        grid=(N // B_TILE,),
        in_specs=[
            pl.BlockSpec((B_TILE, HW, C), lambda b: (b, 0, 0)),   # feat (bf16, batch-tiled)
            pl.BlockSpec((B_TILE, HW, 1), lambda b: (b, 0, 0)),   # upsampled pred logits (f32)
            bcast_spec((3 * kgroup, C)),    # w1 (im2col form, bf16)
            bcast_spec((1, C)),             # scale1
            bcast_spec((1, C)),             # bias1
            bcast_spec((3 * kgroup, CM)),   # w2 (im2col form, bf16)
            bcast_spec((1, CM)),            # scale2
            bcast_spec((1, CM)),            # bias2
            bcast_spec((1, CM)),            # w3 row
            bcast_spec((1, 1)),             # b3
        ],
        out_specs=[
            pl.BlockSpec((B_TILE, HW, CM), lambda b: (b, 0, 0)),  # enhanced feature (bf16)
            pl.BlockSpec((B_TILE, HW, 1), lambda b: (b, 0, 0)),   # new pred column (f32)
        ],
    )

    # scoped-VMEM request sized from the real block footprint (double-buffered I/O + live
    # intermediates), with headroom, capped to stay v7x-safe (64 MiB physical per TC).
    bytes_in = B_TILE * HW * (C * 2 + 4)                       # feat bf16 + pred f32
    bytes_out = B_TILE * HW * (CM * 2 + 4)                     # enh bf16 + newpred f32
    bytes_w = 3 * kgroup * (C + CM) * 2 + (2 * C + 3 * CM + 1) * 4
    bytes_interm = (H + 2) * W * kgroup * 2 * 2 + HW * CM * 4 * 2
    vmem_limit = int(min(64 * 2 ** 20,
                         max(32 * 2 ** 20,
                             2 * (bytes_in + bytes_out + bytes_w) + 2 * bytes_interm)))

    enh_flat, pred_flat = pl.pallas_call(
        kernel,
        grid_spec=grid_spec,
        out_shape=(jax.ShapeDtypeStruct((N, HW, CM), jnp.bfloat16),
                   jax.ShapeDtypeStruct((N, HW, 1), jnp.float32)),
        compiler_params=pltpu.CompilerParams(
            dimension_semantics=("parallel",),
            vmem_limit_bytes=vmem_limit),
    )(feat, pred_up,
      w1m, s1.reshape(1, C), be1.reshape(1, C),
      w2m, s2.reshape(1, CM), be2.reshape(1, CM),
      w3r, b3r)

    # back to NCHW f32 like PyTorch; transpose reads bf16 (half the bytes) and writes f32.
    # TODO(synk): consumers that accept NHWC / bf16 should take enh_flat directly (saves the
    #             full read+write of the enhanced feature here).
    enh = jnp.transpose(enh_flat.reshape(N, H, W, CM), (0, 3, 1, 2)).astype(jnp.float32)
    new_pred = pred_flat.reshape(N, 1, H, W)
    return enh, new_pred


# ------------------------- pure-JAX reference (for verification) -------------------------
def _conv_nhwc(x, w_oihw, bias, pad):
    w_hwio = jnp.transpose(w_oihw, (2, 3, 1, 0))
    y = jax.lax.conv_general_dilated(
        x, w_hwio, window_strides=(1, 1),
        padding=[(pad, pad), (pad, pad)],
        dimension_numbers=('NHWC', 'HWIO', 'NHWC'))
    return y + bias[None, None, None, :]


def _ref_forward(feat_nchw, pred_nchw, P, eps=1e-5):
    N, C, H, W = feat_nchw.shape
    Mh = _interp_matrix(H, pred_nchw.shape[2])
    Mw = _interp_matrix(W, pred_nchw.shape[3])
    pred_up = jnp.einsum('Hh,nchw,Ww->ncHW', Mh, pred_nchw, Mw)
    x = jnp.transpose(feat_nchw * jax.nn.sigmoid(pred_up), (0, 2, 3, 1))
    h = _conv_nhwc(x, P['W1'], P['b1'], 1)
    h = jnp.maximum((h - P['m1']) / jnp.sqrt(P['v1'] + eps) * P['g1'] + P['be1'], 0.0)
    h = _conv_nhwc(h, P['W2'], P['b2'], 1)
    h = jnp.maximum((h - P['m2']) / jnp.sqrt(P['v2'] + eps) * P['g2'] + P['be2'], 0.0)
    pr = _conv_nhwc(h, P['W3'], P['b3'], 0)
    return jnp.transpose(h, (0, 3, 1, 2)), jnp.transpose(pr, (0, 3, 1, 2))


if __name__ == "__main__":
    C, CM = 32, 256
    key = jax.random.PRNGKey(0)
    ks = jax.random.split(key, 16)
    P = {
        'W1': 0.05 * jax.random.normal(ks[0], (C, C, 3, 3), jnp.float32),
        'b1': 0.05 * jax.random.normal(ks[1], (C,), jnp.float32),
        'g1': 1.0 + 0.1 * jax.random.normal(ks[2], (C,), jnp.float32),
        'be1': 0.1 * jax.random.normal(ks[3], (C,), jnp.float32),
        'm1': 0.1 * jax.random.normal(ks[4], (C,), jnp.float32),
        'v1': 1.0 + 0.1 * jnp.abs(jax.random.normal(ks[5], (C,), jnp.float32)),
        'W2': 0.05 * jax.random.normal(ks[6], (CM, C, 3, 3), jnp.float32),
        'b2': 0.05 * jax.random.normal(ks[7], (CM,), jnp.float32),
        'g2': 1.0 + 0.1 * jax.random.normal(ks[8], (CM,), jnp.float32),
        'be2': 0.1 * jax.random.normal(ks[9], (CM,), jnp.float32),
        'm2': 0.1 * jax.random.normal(ks[10], (CM,), jnp.float32),
        'v2': 1.0 + 0.1 * jnp.abs(jax.random.normal(ks[11], (CM,), jnp.float32)),
        'W3': 0.05 * jax.random.normal(ks[12], (1, CM, 1, 1), jnp.float32),
        'b3': 0.05 * jax.random.normal(ks[13], (1,), jnp.float32),
    }

    # feat must have 32 channels (ff_conv expects 32); pred is a coarse 1-channel logit map.
    feat = jax.random.normal(ks[14], (2, C, 16, 16), jnp.float32)   # NCHW
    pred = jax.random.normal(ks[15], (2, 1, 8, 8), jnp.float32)     # NCHW (upsampled to 16x16)

    enh, new_pred = jax.block_until_ready(ff_forward(feat, pred, P))
    enh_ref, new_pred_ref = _ref_forward(feat, pred, P)

    assert enh.shape == (2, CM, 16, 16) and new_pred.shape == (2, 1, 16, 16)
    # tolerance accounts for bf16 MXU operands, bf16 feat input and bf16 enh storage
    # (f32 accumulation throughout); estimated max error ~1e-2.
    np.testing.assert_allclose(np.asarray(enh), np.asarray(enh_ref), atol=2.5e-2, rtol=2.5e-2)
    np.testing.assert_allclose(np.asarray(new_pred), np.asarray(new_pred_ref),
                               atol=2.5e-2, rtol=2.5e-2)
    print("KERNEL_OK")
</pallas_src>

<mosaic_0001>
module attributes {stable_mosaic.version = 11 : i64} {
  func.func @_ff_kernel(%arg0: i32, %arg1: memref<1x256x32xbf16, #tpu.memory_space<vmem>>, %arg2: memref<1x256x1xf32, #tpu.memory_space<vmem>>, %arg3: memref<384x32xbf16, #tpu.memory_space<vmem>>, %arg4: memref<1x32xf32, #tpu.memory_space<vmem>>, %arg5: memref<1x32xf32, #tpu.memory_space<vmem>>, %arg6: memref<384x256xbf16, #tpu.memory_space<vmem>>, %arg7: memref<1x256xf32, #tpu.memory_space<vmem>>, %arg8: memref<1x256xf32, #tpu.memory_space<vmem>>, %arg9: memref<1x256xf32, #tpu.memory_space<vmem>>, %arg10: memref<1x1xf32, #tpu.memory_space<vmem>>, %arg11: memref<1x256x256xbf16, #tpu.memory_space<vmem>>, %arg12: memref<1x256x1xf32, #tpu.memory_space<vmem>>) attributes {dimension_semantics = [#tpu.dimension_semantics<parallel>], iteration_bounds = array<i64: 2>, scalar_prefetch = 0 : i64, scratch_operands = 0 : i64, tpu.core_type = #tpu.core_type<tc>, window_params = [{transform_indices = @transform_0, window_bounds = array<i64: 1, 256, 32>}, {transform_indices = @transform_1, window_bounds = array<i64: 1, 256, 1>}, {pipeline_mode = #tpu.pipeline_mode<synchronous>, transform_indices = @transform_2, window_bounds = array<i64: 384, 32>}, {pipeline_mode = #tpu.pipeline_mode<synchronous>, transform_indices = @transform_3, window_bounds = array<i64: 1, 32>}, {pipeline_mode = #tpu.pipeline_mode<synchronous>, transform_indices = @transform_4, window_bounds = array<i64: 1, 32>}, {pipeline_mode = #tpu.pipeline_mode<synchronous>, transform_indices = @transform_5, window_bounds = array<i64: 384, 256>}, {pipeline_mode = #tpu.pipeline_mode<synchronous>, transform_indices = @transform_6, window_bounds = array<i64: 1, 256>}, {pipeline_mode = #tpu.pipeline_mode<synchronous>, transform_indices = @transform_7, window_bounds = array<i64: 1, 256>}, {pipeline_mode = #tpu.pipeline_mode<synchronous>, transform_indices = @transform_8, window_bounds = array<i64: 1, 256>}, {pipeline_mode = #tpu.pipeline_mode<synchronous>, transform_indices = @transform_9, window_bounds = array<i64: 1, 1>}, {transform_indices = @transform_10, window_bounds = array<i64: 1, 256, 256>}, {transform_indices = @transform_11, window_bounds = array<i64: 1, 256, 1>}]} {
    %0 = tpu.iota {dimensions = array<i32: 0>} : vector<288x1xi32>
    %c16_i32 = arith.constant 16 : i32
    %c0_i32 = arith.constant 0 : i32
    %1 = arith.cmpi eq, %c16_i32, %c0_i32 : i32
    %c1_i32 = arith.constant 1 : i32
    %2 = arith.select %1, %c1_i32, %c16_i32 : i32
    %3 = vector.broadcast %2 : i32 to vector<288x1xi32>
    %4 = arith.remsi %0, %3 : vector<288x1xi32>
    %c0_i32_0 = arith.constant 0 : i32
    %5 = vector.broadcast %c0_i32_0 : i32 to vector<288x1xi32>
    %6 = arith.cmpi ne, %4, %5 : vector<288x1xi32>
    %c0_i32_1 = arith.constant 0 : i32
    %7 = vector.broadcast %c0_i32_1 : i32 to vector<288x1xi32>
    %8 = arith.cmpi slt, %4, %7 : vector<288x1xi32>
    %c0_i32_2 = arith.constant 0 : i32
    %9 = arith.cmpi slt, %2, %c0_i32_2 : i32
    %10 = vector.broadcast %9 : i1 to vector<288x1xi1>
    %11 = vector.broadcast %10 : vector<288x1xi1> to vector<288x1xi1>
    %12 = arith.xori %8, %11 : vector<288x1xi1>
    %13 = arith.andi %12, %6 : vector<288x1xi1>
    %14 = vector.broadcast %2 : i32 to vector<288x1xi32>
    %15 = arith.addi %4, %14 : vector<288x1xi32>
    %16 = arith.select %13, %15, %4 : vector<288x1xi1>, vector<288x1xi32>
    %c0_i32_3 = arith.constant 0 : i32
    %17 = vector.broadcast %c0_i32_3 : i32 to vector<288x1xi32>
    %18 = arith.cmpi eq, %16, %17 : vector<288x1xi32>
    %c15_i32 = arith.constant 15 : i32
    %19 = vector.broadcast %c15_i32 : i32 to vector<288x1xi32>
    %20 = arith.cmpi eq, %16, %19 : vector<288x1xi32>
    %c0 = arith.constant 0 : index
    %c0_4 = arith.constant 0 : index
    %21 = vector.load %arg4[%c0, %c0_4] : memref<1x32xf32, #tpu.memory_space<vmem>>, vector<1x32xf32>
    %c0_5 = arith.constant 0 : index
    %c0_6 = arith.constant 0 : index
    %22 = vector.load %arg5[%c0_5, %c0_6] : memref<1x32xf32, #tpu.memory_space<vmem>>, vector<1x32xf32>
    %c0_7 = arith.constant 0 : index
    %c0_8 = arith.constant 0 : index
    %23 = vector.load %arg7[%c0_7, %c0_8] : memref<1x256xf32, #tpu.memory_space<vmem>>, vector<1x256xf32>
    %c0_9 = arith.constant 0 : index
    %c0_10 = arith.constant 0 : index
    %24 = vector.load %arg8[%c0_9, %c0_10] : memref<1x256xf32, #tpu.memory_space<vmem>>, vector<1x256xf32>
    %c0_11 = arith.constant 0 : index
    %c0_12 = arith.constant 0 : index
    %25 = vector.load %arg9[%c0_11, %c0_12] : memref<1x256xf32, #tpu.memory_space<vmem>>, vector<1x256xf32>
    %c0_13 = arith.constant 0 : index
    %c0_14 = arith.constant 0 : index
    %26 = vector.load %arg10[%c0_13, %c0_14] : memref<1x1xf32, #tpu.memory_space<vmem>>, vector<1x1xf32>
    %c0_15 = arith.constant 0 : index
    %c0_16 = arith.constant 0 : index
    %c0_17 = arith.constant 0 : index
    %27 = vector.load %arg2[%c0_15, %c0_16, %c0_17] : memref<1x256x1xf32, #tpu.memory_space<vmem>>, vector<1x256x1xf32>
    %28 = vector.shape_cast %27 : vector<1x256x1xf32> to vector<256x1xf32>
    %29 = arith.negf %28 : vector<256x1xf32>
    %30 = math.exp %29 : vector<256x1xf32>
    %cst = arith.constant 1.000000e+00 : f32
    %31 = vector.broadcast %cst : f32 to vector<256x1xf32>
    %32 = arith.addf %31, %30 : vector<256x1xf32>
    %33 = arith.divf %31, %32 : vector<256x1xf32>
    %34 = arith.truncf %33 : vector<256x1xf32> to vector<256x1xbf16>
    %c0_18 = arith.constant 0 : index
    %c0_19 = arith.constant 0 : index
    %c0_20 = arith.constant 0 : index
    %35 = vector.load %arg1[%c0_18, %c0_19, %c0_20] : memref<1x256x32xbf16, #tpu.memory_space<vmem>>, vector<1x256x32xbf16>
    %36 = vector.shape_cast %35 : vector<1x256x32xbf16> to vector<256x32xbf16>
    %37 = vector.broadcast %34 : vector<256x1xbf16> to vector<256x32xbf16>
    %38 = arith.mulf %36, %37 : vector<256x32xbf16>
    %cst_21 = arith.constant 0.000000e+00 : bf16
    %39 = vector.broadcast %cst_21 : bf16 to vector<16x32xbf16>
    %40 = tpu.concatenate %39, %38, %39 in 0 : vector<16x32xbf16>, vector<256x32xbf16>, vector<16x32xbf16> -> vector<288x32xbf16>
    %41 = vector.extract_strided_slice %40 {offsets = [287, 0], sizes = [1, 32], strides = [1, 1]} : vector<288x32xbf16> to vector<1x32xbf16>
    %42 = vector.extract_strided_slice %40 {offsets = [0, 0], sizes = [287, 32], strides = [1, 1]} : vector<288x32xbf16> to vector<287x32xbf16>
    %43 = tpu.concatenate %41, %42 in 0 : vector<1x32xbf16>, vector<287x32xbf16> -> vector<288x32xbf16>
    %cst_22 = arith.constant 0.000000e+00 : f32
    %44 = arith.truncf %cst_22 : f32 to bf16
    %45 = vector.shape_cast %18 : vector<288x1xi1> to vector<288x1xi1>
    %46 = vector.broadcast %45 : vector<288x1xi1> to vector<288x32xi1>
    %47 = vector.broadcast %44 : bf16 to vector<288x32xbf16>
    %48 = arith.select %46, %47, %43 : vector<288x32xi1>, vector<288x32xbf16>
    %49 = vector.extract_strided_slice %40 {offsets = [1, 0], sizes = [287, 32], strides = [1, 1]} : vector<288x32xbf16> to vector<287x32xbf16>
    %50 = vector.extract_strided_slice %40 {offsets = [0, 0], sizes = [1, 32], strides = [1, 1]} : vector<288x32xbf16> to vector<1x32xbf16>
    %51 = tpu.concatenate %49, %50 in 0 : vector<287x32xbf16>, vector<1x32xbf16> -> vector<288x32xbf16>
    %cst_23 = arith.constant 0.000000e+00 : f32
    %52 = arith.truncf %cst_23 : f32 to bf16
    %53 = vector.shape_cast %20 : vector<288x1xi1> to vector<288x1xi1>
    %54 = vector.broadcast %53 : vector<288x1xi1> to vector<288x32xi1>
    %55 = vector.broadcast %52 : bf16 to vector<288x32xbf16>
    %56 = arith.select %54, %55, %51 : vector<288x32xi1>, vector<288x32xbf16>
    %cst_24 = arith.constant 0.000000e+00 : bf16
    %57 = vector.broadcast %cst_24 : bf16 to vector<288x32xbf16>
    %58 = tpu.concatenate %48, %40, %56, %57 in 1 : vector<288x32xbf16>, vector<288x32xbf16>, vector<288x32xbf16>, vector<288x32xbf16> -> vector<288x128xbf16>
    %59 = vector.extract_strided_slice %58 {offsets = [0, 0], sizes = [256, 128], strides = [1, 1]} : vector<288x128xbf16> to vector<256x128xbf16>
    %c0_25 = arith.constant 0 : index
    %c0_26 = arith.constant 0 : index
    %60 = vector.load %arg3[%c0_25, %c0_26] : memref<384x32xbf16, #tpu.memory_space<vmem>>, vector<128x32xbf16>
    %cst_27 = arith.constant dense<0.000000e+00> : vector<256x32xf32>
    %61 = tpu.matmul %59, %60, %cst_27 {dimension_numbers = #tpu.dot_dimension_numbers<[1], [0], [0], [1], [0, 0, 1, 1], [], []>} : vector<256x128xbf16>, vector<128x32xbf16>, vector<256x32xf32> -> vector<256x32xf32>
    %62 = vector.extract_strided_slice %58 {offsets = [16, 0], sizes = [256, 128], strides = [1, 1]} : vector<288x128xbf16> to vector<256x128xbf16>
    %c128 = arith.constant 128 : index
    %c0_28 = arith.constant 0 : index
    %63 = vector.load %arg3[%c128, %c0_28] : memref<384x32xbf16, #tpu.memory_space<vmem>>, vector<128x32xbf16>
    %cst_29 = arith.constant dense<0.000000e+00> : vector<256x32xf32>
    %64 = tpu.matmul %62, %63, %cst_29 {dimension_numbers = #tpu.dot_dimension_numbers<[1], [0], [0], [1], [0, 0, 1, 1], [], []>} : vector<256x128xbf16>, vector<128x32xbf16>, vector<256x32xf32> -> vector<256x32xf32>
    %65 = arith.addf %61, %64 : vector<256x32xf32>
    %66 = vector.extract_strided_slice %58 {offsets = [32, 0], sizes = [256, 128], strides = [1, 1]} : vector<288x128xbf16> to vector<256x128xbf16>
    %c256 = arith.constant 256 : index
    %c0_30 = arith.constant 0 : index
    %67 = vector.load %arg3[%c256, %c0_30] : memref<384x32xbf16, #tpu.memory_space<vmem>>, vector<128x32xbf16>
    %cst_31 = arith.constant dense<0.000000e+00> : vector<256x32xf32>
    %68 = tpu.matmul %66, %67, %cst_31 {dimension_numbers = #tpu.dot_dimension_numbers<[1], [0], [0], [1], [0, 0, 1, 1], [], []>} : vector<256x128xbf16>, vector<128x32xbf16>, vector<256x32xf32> -> vector<256x32xf32>
    %69 = arith.addf %65, %68 : vector<256x32xf32>
    %70 = vector.broadcast %21 : vector<1x32xf32> to vector<256x32xf32>
    %71 = arith.mulf %69, %70 : vector<256x32xf32>
    %72 = vector.broadcast %22 : vector<1x32xf32> to vector<256x32xf32>
    %73 = arith.addf %71, %72 : vector<256x32xf32>
    %cst_32 = arith.constant 0.000000e+00 : f32
    %74 = vector.broadcast %cst_32 : f32 to vector<256x32xf32>
    %75 = arith.maximumf %73, %74 : vector<256x32xf32>
    %76 = arith.truncf %75 : vector<256x32xf32> to vector<256x32xbf16>
    %cst_33 = arith.constant 0.000000e+00 : bf16
    %77 = vector.broadcast %cst_33 : bf16 to vector<16x32xbf16>
    %78 = tpu.concatenate %77, %76, %77 in 0 : vector<16x32xbf16>, vector<256x32xbf16>, vector<16x32xbf16> -> vector<288x32xbf16>
    %79 = vector.extract_strided_slice %78 {offsets = [287, 0], sizes = [1, 32], strides = [1, 1]} : vector<288x32xbf16> to vector<1x32xbf16>
    %80 = vector.extract_strided_slice %78 {offsets = [0, 0], sizes = [287, 32], strides = [1, 1]} : vector<288x32xbf16> to vector<287x32xbf16>
    %81 = tpu.concatenate %79, %80 in 0 : vector<1x32xbf16>, vector<287x32xbf16> -> vector<288x32xbf16>
    %cst_34 = arith.constant 0.000000e+00 : f32
    %82 = arith.truncf %cst_34 : f32 to bf16
    %83 = vector.shape_cast %18 : vector<288x1xi1> to vector<288x1xi1>
    %84 = vector.broadcast %83 : vector<288x1xi1> to vector<288x32xi1>
    %85 = vector.broadcast %82 : bf16 to vector<288x32xbf16>
    %86 = arith.select %84, %85, %81 : vector<288x32xi1>, vector<288x32xbf16>
    %87 = vector.extract_strided_slice %78 {offsets = [1, 0], sizes = [287, 32], strides = [1, 1]} : vector<288x32xbf16> to vector<287x32xbf16>
    %88 = vector.extract_strided_slice %78 {offsets = [0, 0], sizes = [1, 32], strides = [1, 1]} : vector<288x32xbf16> to vector<1x32xbf16>
    %89 = tpu.concatenate %87, %88 in 0 : vector<287x32xbf16>, vector<1x32xbf16> -> vector<288x32xbf16>
    %cst_35 = arith.constant 0.000000e+00 : f32
    %90 = arith.truncf %cst_35 : f32 to bf16
    %91 = vector.shape_cast %20 : vector<288x1xi1> to vector<288x1xi1>
    %92 = vector.broadcast %91 : vector<288x1xi1> to vector<288x32xi1>
    %93 = vector.broadcast %90 : bf16 to vector<288x32xbf16>
    %94 = arith.select %92, %93, %89 : vector<288x32xi1>, vector<288x32xbf16>
    %cst_36 = arith.constant 0.000000e+00 : bf16
    %95 = vector.broadcast %cst_36 : bf16 to vector<288x32xbf16>
    %96 = tpu.concatenate %86, %78, %94, %95 in 1 : vector<288x32xbf16>, vector<288x32xbf16>, vector<288x32xbf16>, vector<288x32xbf16> -> vector<288x128xbf16>
    %97 = vector.extract_strided_slice %96 {offsets = [0, 0], sizes = [256, 128], strides = [1, 1]} : vector<288x128xbf16> to vector<256x128xbf16>
    %c0_37 = arith.constant 0 : index
    %c0_38 = arith.constant 0 : index
    %98 = vector.load %arg6[%c0_37, %c0_38] : memref<384x256xbf16, #tpu.memory_space<vmem>>, vector<128x256xbf16>
    %cst_39 = arith.constant dense<0.000000e+00> : vector<256x256xf32>
    %99 = tpu.matmul %97, %98, %cst_39 {dimension_numbers = #tpu.dot_dimension_numbers<[1], [0], [0], [1], [0, 0, 1, 1], [], []>} : vector<256x128xbf16>, vector<128x256xbf16>, vector<256x256xf32> -> vector<256x256xf32>
    %100 = vector.extract_strided_slice %96 {offsets = [16, 0], sizes = [256, 128], strides = [1, 1]} : vector<288x128xbf16> to vector<256x128xbf16>
    %c128_40 = arith.constant 128 : index
    %c0_41 = arith.constant 0 : index
    %101 = vector.load %arg6[%c128_40, %c0_41] : memref<384x256xbf16, #tpu.memory_space<vmem>>, vector<128x256xbf16>
    %cst_42 = arith.constant dense<0.000000e+00> : vector<256x256xf32>
    %102 = tpu.matmul %100, %101, %cst_42 {dimension_numbers = #tpu.dot_dimension_numbers<[1], [0], [0], [1], [0, 0, 1, 1], [], []>} : vector<256x128xbf16>, vector<128x256xbf16>, vector<256x256xf32> -> vector<256x256xf32>
    %103 = arith.addf %99, %102 : vector<256x256xf32>
    %104 = vector.extract_strided_slice %96 {offsets = [32, 0], sizes = [256, 128], strides = [1, 1]} : vector<288x128xbf16> to vector<256x128xbf16>
    %c256_43 = arith.constant 256 : index
    %c0_44 = arith.constant 0 : index
    %105 = vector.load %arg6[%c256_43, %c0_44] : memref<384x256xbf16, #tpu.memory_space<vmem>>, vector<128x256xbf16>
    %cst_45 = arith.constant dense<0.000000e+00> : vector<256x256xf32>
    %106 = tpu.matmul %104, %105, %cst_45 {dimension_numbers = #tpu.dot_dimension_numbers<[1], [0], [0], [1], [0, 0, 1, 1], [], []>} : vector<256x128xbf16>, vector<128x256xbf16>, vector<256x256xf32> -> vector<256x256xf32>
    %107 = arith.addf %103, %106 : vector<256x256xf32>
    %108 = vector.broadcast %23 : vector<1x256xf32> to vector<256x256xf32>
    %109 = arith.mulf %107, %108 : vector<256x256xf32>
    %110 = vector.broadcast %24 : vector<1x256xf32> to vector<256x256xf32>
    %111 = arith.addf %109, %110 : vector<256x256xf32>
    %cst_46 = arith.constant 0.000000e+00 : f32
    %112 = vector.broadcast %cst_46 : f32 to vector<256x256xf32>
    %113 = arith.maximumf %111, %112 : vector<256x256xf32>
    %114 = vector.broadcast %25 : vector<1x256xf32> to vector<256x256xf32>
    %115 = arith.mulf %113, %114 : vector<256x256xf32>
    %cst_47 = arith.constant dense<0.000000e+00> : vector<256xf32>
    %116 = vector.multi_reduction <add>, %115, %cst_47 [1] : vector<256x256xf32> to vector<256xf32>
    %117 = vector.shape_cast %116 : vector<256xf32> to vector<256x1xf32>
    %118 = vector.broadcast %26 : vector<1x1xf32> to vector<256x1xf32>
    %119 = arith.addf %117, %118 : vector<256x1xf32>
    %c0_48 = arith.constant 0 : index
    %c0_49 = arith.constant 0 : index
    %c0_50 = arith.constant 0 : index
    %120 = vector.load %arg12[%c0_48, %c0_49, %c0_50] : memref<1x256x1xf32, #tpu.memory_space<vmem>>, vector<1x256x1xf32>
    %121 = vector.shape_cast %120 : vector<1x256x1xf32> to vector<256x1xf32>
    %122 = vector.shape_cast %119 : vector<256x1xf32> to vector<1x256x1xf32>
    tpu.vector_store %arg12[%c0_48, %c0_49, %c0_50], %122 {strides = array<i32>} : memref<1x256x1xf32, #tpu.memory_space<vmem>>, vector<1x256x1xf32>,
    %123 = arith.truncf %113 : vector<256x256xf32> to vector<256x256xbf16>
    %c0_51 = arith.constant 0 : index
    %c0_52 = arith.constant 0 : index
    %c0_53 = arith.constant 0 : index
    %124 = vector.load %arg11[%c0_51, %c0_52, %c0_53] : memref<1x256x256xbf16, #tpu.memory_space<vmem>>, vector<1x256x256xbf16>
    %125 = vector.shape_cast %124 : vector<1x256x256xbf16> to vector<256x256xbf16>
    %126 = vector.shape_cast %123 : vector<256x256xbf16> to vector<1x256x256xbf16>
    tpu.vector_store %arg11[%c0_51, %c0_52, %c0_53], %126 {strides = array<i32>} : memref<1x256x256xbf16, #tpu.memory_space<vmem>>, vector<1x256x256xbf16>,
    return
  }
  func.func @transform_0(%arg0: i32) -> (i32, i32, i32) {
    %c0_i32 = arith.constant 0 : i32
    %c0_i32_0 = arith.constant 0 : i32
    %c0_i32_1 = arith.constant 0 : i32
    return %arg0, %c0_i32, %c0_i32_0 : i32, i32, i32
  }
  func.func @transform_1(%arg0: i32) -> (i32, i32, i32) {
    %c0_i32 = arith.constant 0 : i32
    %c0_i32_0 = arith.constant 0 : i32
    %c0_i32_1 = arith.constant 0 : i32
    return %arg0, %c0_i32, %c0_i32_0 : i32, i32, i32
  }
  func.func @transform_2(%arg0: i32) -> (i32, i32) {
    %c0_i32 = arith.constant 0 : i32
    %c0_i32_0 = arith.constant 0 : i32
    %c0_i32_1 = arith.constant 0 : i32
    return %c0_i32, %c0_i32_0 : i32, i32
  }
  func.func @transform_3(%arg0: i32) -> (i32, i32) {
    %c0_i32 = arith.constant 0 : i32
    %c0_i32_0 = arith.constant 0 : i32
    %c0_i32_1 = arith.constant 0 : i32
    return %c0_i32, %c0_i32_0 : i32, i32
  }
  func.func @transform_4(%arg0: i32) -> (i32, i32) {
    %c0_i32 = arith.constant 0 : i32
    %c0_i32_0 = arith.constant 0 : i32
    %c0_i32_1 = arith.constant 0 : i32
    return %c0_i32, %c0_i32_0 : i32, i32
  }
  func.func @transform_5(%arg0: i32) -> (i32, i32) {
    %c0_i32 = arith.constant 0 : i32
    %c0_i32_0 = arith.constant 0 : i32
    %c0_i32_1 = arith.constant 0 : i32
    return %c0_i32, %c0_i32_0 : i32, i32
  }
  func.func @transform_6(%arg0: i32) -> (i32, i32) {
    %c0_i32 = arith.constant 0 : i32
    %c0_i32_0 = arith.constant 0 : i32
    %c0_i32_1 = arith.constant 0 : i32
    return %c0_i32, %c0_i32_0 : i32, i32
  }
  func.func @transform_7(%arg0: i32) -> (i32, i32) {
    %c0_i32 = arith.constant 0 : i32
    %c0_i32_0 = arith.constant 0 : i32
    %c0_i32_1 = arith.constant 0 : i32
    return %c0_i32, %c0_i32_0 : i32, i32
  }
  func.func @transform_8(%arg0: i32) -> (i32, i32) {
    %c0_i32 = arith.constant 0 : i32
    %c0_i32_0 = arith.constant 0 : i32
    %c0_i32_1 = arith.constant 0 : i32
    return %c0_i32, %c0_i32_0 : i32, i32
  }
  func.func @transform_9(%arg0: i32) -> (i32, i32) {
    %c0_i32 = arith.constant 0 : i32
    %c0_i32_0 = arith.constant 0 : i32
    %c0_i32_1 = arith.constant 0 : i32
    return %c0_i32, %c0_i32_0 : i32, i32
  }
  func.func @transform_10(%arg0: i32) -> (i32, i32, i32) {
    %c0_i32 = arith.constant 0 : i32
    %c0_i32_0 = arith.constant 0 : i32
    %c0_i32_1 = arith.constant 0 : i32
    return %arg0, %c0_i32, %c0_i32_0 : i32, i32, i32
  }
  func.func @transform_11(%arg0: i32) -> (i32, i32, i32) {
    %c0_i32 = arith.constant 0 : i32
    %c0_i32_0 = arith.constant 0 : i32
    %c0_i32_1 = arith.constant 0 : i32
    return %arg0, %c0_i32, %c0_i32_0 : i32, i32, i32
  }
}

</mosaic_0001>

<bundles_post_ra>
// kernel: tpu_custom_call.1
= control target key start
LH: loop header
LB: loop body
LE: loop exit
PB: predicated region body
PF: predicated region fallthrough
CT: control target
= control target key end

     0   :  { %s9450_s0 = inlined_call_operand.vmem [shape: bf16[2,256,32], index: 0, kind: input, shape index: {}]   ;;  %s9451_s1 = inlined_call_operand.vmem [shape: f32[2,256,1], index: 1, kind: input, shape index: {}]   ;;  %s9452_s2 = inlined_call_operand.vmem [shape: bf16[384,32], index: 2, kind: input, shape index: {}]   ;;  %s9453_s3 = inlined_call_operand.vmem [shape: f32[1,32], index: 3, kind: input, shape index: {}]   ;;  %s9454_s4 = inlined_call_operand.vmem [shape: f32[1,32], index: 4, kind: input, shape index: {}]   ;;  %s9455_s5 = inlined_call_operand.vmem [shape: bf16[384,256], index: 5, kind: input, shape index: {}]   ;;  %s9456_s6 = inlined_call_operand.vmem [shape: f32[1,256], index: 6, kind: input, shape index: {}]   ;;  %s9457_s7 = inlined_call_operand.vmem [shape: f32[1,256], index: 7, kind: input, shape index: {}]   ;;  %s9458_s8 = inlined_call_operand.vmem [shape: f32[1,256], index: 8, kind: input, shape index: {}]   ;;  %s9459_s9 = inlined_call_operand.<no memory space> [shape: f32[1,1], index: 9, kind: input, shape index: {}]   ;;  %s9460_s10 = inlined_call_operand.hbm [shape: bf16[2,256,256], index: 10, kind: output, shape index: {0}]   ;;  %s9461_s11 = inlined_call_operand.vmem [shape: f32[2,256,1], index: 11, kind: output, shape index: {1}]  }
   0x1   :  { %9534 = sst [smem:[#allocation47_spill]] %s9450_s0  ;;  %v17_v0 = vstv %s9459_s9 }
   0x2   :  { %18 = vst [vmem:[#allocation2] sm:$0x1] %v17_v0 }
   0x3   :  { %19 = vsyncpa [#allocation4], 0 }
   0x4   :  { %21 = vsyncpa [#allocation4 + $0x1], 0  ;;  %s6809_s19 = smov 0   ;;  %s6811_s20 = smov 0  }
   0x5   :  { %s6813_s21 = smov 0   ;;  %s6815_s22 = smov 0  }
   0x6 LB: > { %s6830_s9 = sadd.s32 4294967295, %s6735_s22   ;;  %s5637_s23 = sadd.s32 4294967294, %s6735_s22   ;;  %s6735_s22 = sphi %s6815_s22, %s9987_s22   ;;  %s6731_s21 = sphi %s6813_s21, %s9986_s21   ;;  %s6727_s20 = sphi %s6811_s20, %s9985_s20   ;;  %s6723_s19 = sphi %s6809_s19, %s9984_s19  }
   0x7   : > { %s6834_s24 = sadd.s32 1, %s6735_s22   ;;  %s254_s25 = sadd.s32 1, %s6731_s21 }
   0x8   : > { %s251_s26 = ssub.s32 %s6735_s22, %s6834_s24  ;;  %p264_p0 = scmp.ne.s32.totalorder %s6731_s21, %s6727_s20 }
   0x9   : > { %p252_p1 = scmp.eq.s32.totalorder %s251_s26, 0  ;;  %p265_p2 = scmp.eq.s32.totalorder %s6830_s9, 1 }
   0xa   : > { %p270_p3 = scmp.ne.s32.totalorder %s6727_s20, %s6723_s19  ;;  %p271_p4 = scmp.eq.s32.totalorder %s5637_s23, 1 }
   0xb   : > { %s6845_s27 = scalar_select %p252_p1, %s6731_s21, %s254_s25  }
   0xc   : > { %p6847_p5 = por %p265_p2, %p264_p0  ;;  %p6851_p6 = por %p271_p4, %p270_p3 }
   0xd   : > { %p5640_p7 = scmp.ge.s32.totalorder %s6735_s22, 1  ;;  %p355_p8 = scmp.lt.s32.totalorder %s6735_s22, 3 }
   0xf   : > { %p356_p9 = pnand %p5640_p7, %p355_p8 }
  0x11   : > { %359 = sbr.rel (%p356_p9) target bundleno = 1507 (0x5e3), region = 60 }
  0x18   : > { %p405_p10 = scmp.lt.s32.totalorder %s6830_s9, 1  ;;  %v9464_v1 = vmov 0   ;;  %vm6740_vm2 = vmmov 0   ;;  %s9554_s0 = sld [smem:[#allocation47_spill]] }
  0x19   : > { %6448 = vset.pattern.permute.xlu1 %v9464_v1  ;;  %6447 = vset.pattern.permute.xlu0 %v9464_v1  ;;  %vm6937_vm3 = vmpackc.low %vm6740_vm2, %vm6740_vm2  ;;  %s6741_s25 = smov 32   ;;  %s6742_s26 = smov 64  }
  0x1a   : > { %s6861_s30 = scalar_select %p405_p10, %s6830_s9, 1  ;;  %4169 = vmatprep.mubr.bf16.mxu1 %v9464_v1 }
  0x1b   : > { %s395_s14 = sand.u32 1, %s6727_s20  }
  0x1c   : > { %s9533_s12 = sshll.u32 %s6861_s30, 8  ;;  %s5940_s17 = sshll.u32 %s6861_s30, 7 }
  0x1d   : > { %s6870_s15 = scalar_lea.vmem %s9451_s1, %s9533_s12 }
  0x1e   : > { %v974_v2 = vld [vmem:[%s6870_s15 + $0x20] sm:$0xff]  ;;  %v975_v3 = vld [vmem:[%s6870_s15 + $0x28] sm:$0xff]  ;;  %v976_v8 = vld [vmem:[%s6870_s15 + $0x30] sm:$0xff]  ;;  %s6995_s13 = scalar_lea.vmem %s9554_s0, %s5940_s17  ;;  %s5975_s17 = sshll.u32 %s6830_s9, 12 }
  0x1f   : > { %v970_v4 = vld [vmem:[%s6870_s15] sm:$0xff]  ;;  %v5652_v5 = vmul.f32 -1.442695, %v974_v2  ;;  %v5653_v6 = vmul.f32 -1.442695, %v975_v3  ;;  %v971_v7 = vld [vmem:[%s6870_s15 + $0x8] sm:$0xff] }
  0x20   : > { %v5648_v9 = vmul.f32 -1.442695, %v970_v4  ;;  %v5649_v10 = vmul.f32 -1.442695, %v971_v7  ;;  %v977_v11 = vld [vmem:[%s6870_s15 + $0x38] sm:$0xff]  ;;  %v972_v12 = vld [vmem:[%s6870_s15 + $0x10] sm:$0xff] }
  0x21   : > { %6545 = vpow2.f32 %v5652_v5  ;;  %v5654_v13 = vmul.f32 -1.442695, %v976_v8  ;;  %v973_v14 = vld [vmem:[%s6870_s15 + $0x18] sm:$0xff]  ;;  %v5655_v15 = vmul.f32 -1.442695, %v977_v11  ;;  %v980_v16 = vld [vmem:[%s6870_s15 + $0x50] sm:$0xff] }
  0x22   : > { %6547 = vpow2.f32 %v5653_v6  ;;  %v5650_v17 = vmul.f32 -1.442695, %v972_v12  ;;  %v981_v18 = vld [vmem:[%s6870_s15 + $0x58] sm:$0xff]  ;;  %v5651_v19 = vmul.f32 -1.442695, %v973_v14  ;;  %v978_v20 = vld [vmem:[%s6870_s15 + $0x40] sm:$0xff] }
  0x23   : > { %6549 = vpow2.f32 %v5648_v9  ;;  %v5658_v21 = vmul.f32 -1.442695, %v980_v16  ;;  %v979_v22 = vld [vmem:[%s6870_s15 + $0x48] sm:$0xff]  ;;  %v5659_v23 = vmul.f32 -1.442695, %v981_v18  ;;  %v984_v24 = vld [vmem:[%s6870_s15 + $0x70] sm:$0xff] }
  0x24   : > { %6551 = vpow2.f32 %v5649_v10  ;;  %v5656_v25 = vmul.f32 -1.442695, %v978_v20  ;;  %v5657_v26 = vmul.f32 -1.442695, %v979_v22  ;;  %v985_v27 = vld [vmem:[%s6870_s15 + $0x78] sm:$0xff]  ;;  %v982_v29 = vld [vmem:[%s6870_s15 + $0x60] sm:$0xff] }
  0x25   : > { %6553 = vpow2.f32 %v5654_v13  ;;  %v5662_v28 = vmul.f32 -1.442695, %v984_v24  ;;  %v983_v30 = vld [vmem:[%s6870_s15 + $0x68] sm:$0xff]  ;;  %v988_v31 = vld [vmem:[%s6870_s15 + $0x90] sm:$0xff]  ;;  %v989_v32 = vld [vmem:[%s6870_s15 + $0x98] sm:$0xff]  ;;  %s6743_s9 = smov [#allocation3]  }
  0x26   : > { %6555 = vpow2.f32 %v5655_v15  ;;  %v5663_v34 = vmul.f32 -1.442695, %v985_v27  ;;  %v986_v35 = vld [vmem:[%s6870_s15 + $0x80] sm:$0xff]  ;;  %v5660_v38 = vmul.f32 -1.442695, %v982_v29  ;;  %v987_v40 = vld [vmem:[%s6870_s15 + $0x88] sm:$0xff] }
  0x27   : > { %6557 = vpow2.f32 %v5650_v17  ;;  %v5661_v39 = vmul.f32 -1.442695, %v983_v30  ;;  %v5666_v43 = vmul.f32 -1.442695, %v988_v31  ;;  %v5667_v44 = vmul.f32 -1.442695, %v989_v32 }
  0x28   : > { %6559 = vpow2.f32 %v5651_v19  ;;  %v5664_v47 = vmul.f32 -1.442695, %v986_v35  ;;  %v5665_v50 = vmul.f32 -1.442695, %v987_v40  ;;  %v992_v6 = vld [vmem:[%s6870_s15 + $0xb0] sm:$0xff]  ;;  %v993_v10 = vld [vmem:[%s6870_s15 + $0xb8] sm:$0xff] }
  0x29   : > { %6561 = vpow2.f32 %v5658_v21  ;;  %v990_v12 = vld [vmem:[%s6870_s15 + $0xa0] sm:$0xff]  ;;  %v5670_v16 = vmul.f32 -1.442695, %v992_v6  ;;  %v991_v17 = vld [vmem:[%s6870_s15 + $0xa8] sm:$0xff]  ;;  %v996_v18 = vld [vmem:[%s6870_s15 + $0xd0] sm:$0xff]  ;;  %s6677_s18 = sshll.u32 %s6743_s9, 4  ;;  %s6678_s18 = int_to_ptr.vmem [resolvable:$false] %s6677_s18 }
  0x2a   : > { %6563 = vpow2.f32 %v5659_v23  ;;  %v5671_v22 = vmul.f32 -1.442695, %v993_v10  ;;  %v5669_v27 = vmul.f32 -1.442695, %v991_v17  ;;  %v5674_v31 = vmul.f32 -1.442695, %v996_v18 }
  0x2b   : > { %v6546_v33 = vpop.eup %6545  ;;  %6565 = vpow2.f32 %v5656_v25  ;;  %v5668_v25 = vmul.f32 -1.442695, %v990_v12  ;;  %v998_v6 = vld [vmem:[%s6870_s15 + $0xe0] sm:$0xff]  ;;  %v999_v10 = vld [vmem:[%s6870_s15 + $0xe8] sm:$0xff] }
  0x2c   : > { %v6548_v36 = vpop.eup %6547  ;;  %v1102_v37 = vadd.f32 1.0, %v6546_v33  ;;  %6567 = vpow2.f32 %v5657_v26  ;;  %v5677_v17 = vmul.f32 -1.442695, %v999_v10 }
  0x2d   : > { %v6550_v41 = vpop.eup %6549  ;;  %v1103_v42 = vadd.f32 1.0, %v6548_v36  ;;  %6569 = vpow2.f32 %v5662_v28  ;;  %v997_v28 = vld [vmem:[%s6870_s15 + $0xd8] sm:$0xff] }
  0x2e   : > { %v6552_v45 = vpop.eup %6551  ;;  %6571 = vrcp.f32 %v1102_v37  ;;  %v1098_v46 = vadd.f32 1.0, %v6550_v41  ;;  %v5675_v35 = vmul.f32 -1.442695, %v997_v28 }
  0x2f   : > { %v6554_v48 = vpop.eup %6553  ;;  %6573 = vrcp.f32 %v1103_v42  ;;  %v1099_v49 = vadd.f32 1.0, %v6552_v45 }
  0x30   : > { %v6556_v51 = vpop.eup %6555  ;;  %6575 = vrcp.f32 %v1098_v46  ;;  %v1104_v52 = vadd.f32 1.0, %v6554_v48 }
  0x31   : > { %v6558_v53 = vpop.eup %6557  ;;  %6577 = vrcp.f32 %v1099_v49  ;;  %v1105_v54 = vadd.f32 1.0, %v6556_v51  ;;  %v994_v49 = vld [vmem:[%s6870_s15 + $0xc0] sm:$0xff] }
  0x32   : > { %v6560_v55 = vpop.eup %6559  ;;  %6579 = vrcp.f32 %v1104_v52  ;;  %v1100_v56 = vadd.f32 1.0, %v6558_v53 }
  0x33   : > { %v6562_v57 = vpop.eup %6561  ;;  %6581 = vrcp.f32 %v1105_v54  ;;  %v1101_v58 = vadd.f32 1.0, %v6560_v55 }
  0x34   : > { %v6564_v59 = vpop.eup %6563  ;;  %6583 = vrcp.f32 %v1100_v56  ;;  %v1108_v60 = vadd.f32 1.0, %v6562_v57 }
  0x35   : > { %v6566_v61 = vpop.eup %6565  ;;  %6585 = vrcp.f32 %v1101_v58  ;;  %v1109_v62 = vadd.f32 1.0, %v6564_v59  ;;  %v995_v58 = vld [vmem:[%s6870_s15 + $0xc8] sm:$0xff] }
  0x36   : > { %v6568_v63 = vpop.eup %6567  ;;  %6587 = vrcp.f32 %v1108_v60  ;;  %v1106_v0 = vadd.f32 1.0, %v6566_v61  ;;  %v5672_v61 = vmul.f32 -1.442695, %v994_v49 }
  0x37   : > { %v6570_v2 = vpop.eup %6569  ;;  %6589 = vrcp.f32 %v1109_v62  ;;  %v1107_v3 = vadd.f32 1.0, %v6568_v63  ;;  %v1000_v62 = vld [vmem:[%s6870_s15 + $0xf0] sm:$0xff] }
  0x38   : > { %v6572_v4 = vpop.eup %6571  ;;  %6591 = vrcp.f32 %v1106_v0  ;;  %v1112_v5 = vadd.f32 1.0, %v6570_v2  ;;  %v1001_v2 = vld [vmem:[%s6870_s15 + $0xf8] sm:$0xff]  ;;  %s5641_s15 = sshll.u32 %s395_s14, 8 }
  0x39   : > { %v6574_v7 = vpop.eup %6573  ;;  %6593 = vrcp.f32 %v1107_v3  ;;  %v5679_v12 = vmul.f32 -1.442695, %v1001_v2  ;;  %s9038_s16 = scalar_lea.vmem [#allocation3], %s5641_s15 }
  0x3a   : > { %v6576_v8 = vpop.eup %6575  ;;  %v1196_v9 = vpack.c.bf16 %v6574_v7, %v6572_v4  ;;  %6595 = vpow2.f32 %v5663_v34 }
  0x3b   : > { %v6578_v11 = vpop.eup %6577  ;;  %6597 = vrcp.f32 %v1112_v5  ;;  %v5673_v5 = vmul.f32 -1.442695, %v995_v58 }
  0x3c   : > { %v6580_v13 = vpop.eup %6579  ;;  %1252 = vperm.xlu1 %6448, %v1196_v9   ;;  %v1194_v14 = vpack.c.bf16 %v6578_v11, %v6576_v8  ;;  %6599 = vpow2.f32 %v5660_v38  ;;  %v5678_v9 = vmul.f32 -1.442695, %v1000_v62 }
  0x3d   : > { %v6582_v15 = vpop.eup %6581  ;;  %6601 = vpow2.f32 %v5661_v39 }
  0x3e   : > { %v6584_v19 = vpop.eup %6583  ;;  %1244 = vperm.xlu0 %6447, %v1194_v14   ;;  %v1197_v20 = vpack.c.bf16 %v6582_v15, %v6580_v13  ;;  %6603 = vpow2.f32 %v5666_v43  ;;  %v5676_v15 = vmul.f32 -1.442695, %v998_v6 }
  0x3f   : > { %v6586_v21 = vpop.eup %6585  ;;  %6605 = vpow2.f32 %v5667_v44 }
  0x40   : > { %v6588_v23 = vpop.eup %6587  ;;  %1256 = vperm.xlu1 %6448, %v1197_v20   ;;  %v1195_v24 = vpack.c.bf16 %v6586_v21, %v6584_v19  ;;  %6607 = vpow2.f32 %v5664_v47 }
  0x41   : > { %v6590_v26 = vpop.eup %6589  ;;  %6609 = vpow2.f32 %v5665_v50 }
  0x42   : > { %v6592_v29 = vpop.eup %6591  ;;  %1248 = vperm.xlu0 %6447, %v1195_v24   ;;  %v1199_v30 = vpack.c.bf16 %v6590_v26, %v6588_v23  ;;  %6611 = vpow2.f32 %v5670_v16 }
  0x43   : > { %v6594_v32 = vpop.eup %6593  ;;  %6613 = vpow2.f32 %v5671_v22 }
  0x44   : > { %v6596_v33 = vpop.eup %6595  ;;  %1264 = vperm.xlu1 %6448, %v1199_v30   ;;  %v1198_v34 = vpack.c.bf16 %v6594_v32, %v6592_v29  ;;  %6615 = vpow2.f32 %v5668_v25 }
  0x45   : > { %v6598_v36 = vpop.eup %6597  ;;  %v1113_v37 = vadd.f32 1.0, %v6596_v33  ;;  %6617 = vpow2.f32 %v5669_v27 }
  0x46   : > { %v6600_v38 = vpop.eup %6599  ;;  %1260 = vperm.xlu0 %6447, %v1198_v34   ;;  %6619 = vpow2.f32 %v5674_v31 }
  0x47   : > { %v6602_v39 = vpop.eup %6601  ;;  %6621 = vrcp.f32 %v1113_v37  ;;  %v1110_v40 = vadd.f32 1.0, %v6600_v38 }
  0x48   : > { %v6604_v41 = vpop.eup %6603  ;;  %v1111_v42 = vadd.f32 1.0, %v6602_v39  ;;  %6623 = vpow2.f32 %v5675_v35 }
  0x49   : > { %v6606_v43 = vpop.eup %6605  ;;  %6625 = vrcp.f32 %v1110_v40  ;;  %v1116_v44 = vadd.f32 1.0, %v6604_v41 }
  0x4a   : > { %v6608_v45 = vpop.eup %6607  ;;  %6627 = vrcp.f32 %v1111_v42  ;;  %v1117_v46 = vadd.f32 1.0, %v6606_v43 }
  0x4b   : > { %v6610_v47 = vpop.eup %6609  ;;  %6629 = vrcp.f32 %v1116_v44  ;;  %v1114_v48 = vadd.f32 1.0, %v6608_v45 }
  0x4c   : > { %v6612_v50 = vpop.eup %6611  ;;  %6631 = vrcp.f32 %v1117_v46  ;;  %v1115_v51 = vadd.f32 1.0, %v6610_v47 }
  0x4d   : > { %v6614_v52 = vpop.eup %6613  ;;  %6633 = vrcp.f32 %v1114_v48  ;;  %v1120_v53 = vadd.f32 1.0, %v6612_v50 }
  0x4e   : > { %v6616_v54 = vpop.eup %6615  ;;  %6635 = vrcp.f32 %v1115_v51  ;;  %v1121_v55 = vadd.f32 1.0, %v6614_v52  ;;  %v6449_v52 = vld [vmem:[%s9452_s2 + $0x40] sm:$0xff]  }
  0x4f   : > { %v6618_v56 = vpop.eup %6617  ;;  %6637 = vrcp.f32 %v1120_v53  ;;  %v1118_v57 = vadd.f32 1.0, %v6616_v54  ;;  %v6450_v53 = vld [vmem:[%s9452_s2 + $0x48] sm:$0xff]   ;;  %6048 = vmatprep.subr.bf16.mxu0 %v6449_v52  ;;  %v6451_v54 = vld [vmem:[%s9452_s2 + $0x50] sm:$0xff]  }
  0x50   : > { %v6620_v59 = vpop.eup %6619  ;;  %6639 = vrcp.f32 %v1121_v55  ;;  %v1119_v60 = vadd.f32 1.0, %v6618_v56  ;;  %6049 = vmatpush3.bf16.msra.mxu0 %v6449_v52  ;;  %v6452_v55 = vld [vmem:[%s9452_s2 + $0x58] sm:$0xff]   ;;  %v6453_v56 = vld [vmem:[%s9452_s2 + $0x60] sm:$0xff]  }
  0x51   : > { %v6622_v63 = vpop.eup %6621  ;;  %6641 = vrcp.f32 %v1118_v57  ;;  %v1124_v0 = vadd.f32 1.0, %v6620_v59  ;;  %6050 = vmatprep.subr.bf16.mxu0 %v6450_v53  ;;  %v423_v57 = vlaneseq }
  0x52   : > { %v6624_v3 = vpop.eup %6623  ;;  %v1201_v4 = vpack.c.bf16 %v6622_v63, %v6598_v36  ;;  %6643 = vrcp.f32 %v1119_v60 }
  0x53   : > { %v6626_v7 = vpop.eup %6625  ;;  %v1125_v8 = vadd.f32 1.0, %v6624_v3  ;;  %6645 = vrcp.f32 %v1124_v0  ;;  %v6919_v58 = vshrl.u32 %v423_v57, 7 }
  0x54   : > { %v6628_v11 = vpop.eup %6627  ;;  %1272 = vperm.xlu1 %6448, %v1201_v4   ;;  %6647 = vpow2.f32 %v5672_v61  ;;  %6051 = vmatpush3.bf16.msra.mxu0 %v6450_v53 }
  0x55   : > { %v6630_v13 = vpop.eup %6629  ;;  %v1200_v14 = vpack.c.bf16 %v6628_v11, %v6626_v7  ;;  %6649 = vrcp.f32 %v1125_v8  ;;  %6052 = vmatprep.subr.bf16.mxu0 %v6451_v54  ;;  %9537 = vst [vmem:[#allocation6_spill] sm:$0xff] %v6919_v58  ;;  %v427_v59 = vadd.s32 24, %v6919_v58  ;;  %v429_v60 = vadd.s32 40, %v6919_v58 }
  0x56   : > { %v6632_v16 = vpop.eup %6631  ;;  %6651 = vpow2.f32 %v5673_v5  ;;  %v431_v61 = vadd.s32 56, %v6919_v58  ;;  %v433_v62 = vadd.s32 72, %v6919_v58  ;;  %v435_v0 = vadd.s32 88, %v6919_v58 }
  0x57   : > { %v6634_v18 = vpop.eup %6633  ;;  %1268 = vperm.xlu0 %6447, %v1200_v14   ;;  %v1203_v19 = vpack.c.bf16 %v6632_v16, %v6630_v13  ;;  %6653 = vpow2.f32 %v5678_v9  ;;  %v485_v63 = vand.u32 15, %v427_v59  ;;  %v499_v2 = vand.u32 15, %v429_v60 }
  0x58   : > { %v6636_v20 = vpop.eup %6635  ;;  %6655 = vpow2.f32 %v5679_v12  ;;  %6053 = vmatpush3.bf16.msra.mxu0 %v6451_v54  ;;  %v437_v3 = vadd.s32 104, %v6919_v58  ;;  %v513_v4 = vand.u32 15, %v431_v61  ;;  %v527_v5 = vand.u32 15, %v433_v62  ;;  %v1216_v61 = vld [vmem:[%s6995_s13 + $0x18] sm:$0xf] }
  0x59   : > { %v6638_v21 = vpop.eup %6637  ;;  %1280 = vperm.xlu1 %6448, %v1203_v19   ;;  %v1202_v22 = vpack.c.bf16 %v6636_v20, %v6634_v18  ;;  %6657 = vpow2.f32 %v5676_v15  ;;  %6054 = vmatprep.subr.bf16.mxu0 %v6452_v55  ;;  %v439_v6 = vadd.s32 120, %v6919_v58  ;;  %v6738_v7 = vmov 839922192  }
  0x5a   : > { %v6640_v23 = vpop.eup %6639  ;;  %6659 = vpow2.f32 %v5677_v17  ;;  %v1323_v8 = vunpack.c.l.s4 %v6738_v7  ;;  %v6739_v9 = vmov 1985246804   ;;  %vm6928_vm0 = vcmp.eq.s32.totalorder %v485_v63, 15 }
  0x5b   : > { %v6642_v24 = vpop.eup %6641  ;;  %1276 = vperm.xlu0 %6447, %v1202_v22   ;;  %v1205_v25 = vpack.c.bf16 %v6640_v23, %v6638_v21  ;;  %v1330_v10 = vunpack.c.l.s4 %v6739_v9  ;;  %v541_v12 = vand.u32 15, %v435_v0  ;;  %vm6932_vm1 = vcmp.eq.s32.totalorder %v499_v2, 15  ;;  %vm2232_vm5 = vmpackc.low %vm6928_vm0, %vm6928_vm0  ;;  %v1213_v9 = vld [vmem:[%s6995_s13 + $0xc] sm:$0xf]  ;;  %v7128_v23 = vld [vmem:[%s9452_s2] sm:$0xff]  }
  0x5c   : > { %v6644_v26 = vpop.eup %6643  ;;  %6055 = vmatpush3.bf16.msra.mxu0 %v6452_v55  ;;  %v555_v14 = vand.u32 15, %v437_v3  ;;  %v441_v15 = vadd.s32 136, %v6919_v58  ;;  %vm6941_vm4 = vcmp.eq.s32.totalorder %v513_v4, 15  ;;  %vm6948_vm6 = vcmp.eq.s32.totalorder %v527_v5, 15  ;;  %vm2234_vm7 = vmpackc.low %vm6932_vm1, %vm6932_vm1  ;;  %v1217_v3 = vld [vmem:[%s6995_s13 + $0x1c] sm:$0xf] }
  0x5d   : > { %v6646_v27 = vpop.eup %6645  ;;  %1288 = vperm.xlu1 %6448, %v1205_v25   ;;  %v1204_v28 = vpack.c.bf16 %v6644_v26, %v6642_v24  ;;  %6056 = vmatprep.subr.bf16.mxu0 %v6453_v56  ;;  %v569_v19 = vand.u32 15, %v439_v6  ;;  %v1324_v20 = vunpack.c.0.s8 %v1323_v8  ;;  %v1331_v21 = vunpack.c.0.s8 %v1330_v10  ;;  %vm2236_vm9 = vmpackc.low %vm6941_vm4, %vm6941_vm4  ;;  %v6454_v26 = vld [vmem:[%s9452_s2 + $0x68] sm:$0xff]  }
  0x5e   : > { %v6648_v29 = vpop.eup %6647  ;;  %vm6955_vm8 = vcmp.eq.s32.totalorder %v541_v12, 15  ;;  %vm6962_vm10 = vcmp.eq.s32.totalorder %v555_v14, 15  ;;  %v583_v24 = vand.u32 15, %v441_v15  ;;  %vm2238_vm11 = vmpackc.low %vm6948_vm6, %vm6948_vm6  ;;  %v6971_v25 = vadd.s32 8, %v6919_v58  ;;  %v1212_v5 = vld [vmem:[%s6995_s13 + $0x8] sm:$0xf] }
  0x5f   : > { %v6650_v30 = vpop.eup %6649  ;;  %1284 = vperm.xlu0 %6447, %v1204_v28   ;;  %v1122_v31 = vadd.f32 1.0, %v6648_v29  ;;  %vm2240_vm12 = vmpackc.low %vm6955_vm8, %vm6955_vm8  ;;  %vm6979_vm13 = vcmp.eq.s32.totalorder %v569_v19, 15  ;;  %v6984_v28 = vsub.s32 %v1324_v20, %v6919_v58  ;;  %v6987_v29 = vsub.s32 %v1331_v21, %v6919_v58 }
  0x60   : > { %v6652_v32 = vpop.eup %6651  ;;  %v1207_v33 = vpack.c.bf16 %v6650_v30, %v6646_v27  ;;  %6057 = vmatpush3.bf16.msra.mxu0 %v6453_v56  ;;  %vm2242_vm14 = vmpackc.low %vm6962_vm10, %vm6962_vm10  ;;  %v2268_v30 = vsel %vm2232_vm5, 65537, %v9464_v1  ;;  %vm7019_vm15 = vcmp.eq.s32.totalorder %v583_v24, 15  ;;  %v443_v52 = vadd.s32 152, %v6919_v58 }
  0x61   : > { %v6654_v34 = vpop.eup %6653  ;;  %v1123_v35 = vadd.f32 1.0, %v6652_v32  ;;  %6661 = vrcp.f32 %v1122_v31  ;;  %6058 = vmatprep.subr.bf16.mxu0 %v6454_v26  ;;  %v7009_v31 = vsel %vm2234_vm7, 65537, %v9464_v1  ;;  %v7017_v32 = vsel %vm2236_vm9, 65537, %v9464_v1  ;;  %vm2244_vm0 = vmpackc.low %vm6979_vm13, %vm6979_vm13 }
  0x62   : > { %v6656_v36 = vpop.eup %6655  ;;  %1296 = vperm.xlu1 %6448, %v1207_v33   ;;  %v1128_v37 = vadd.f32 1.0, %v6654_v34  ;;  %vm2246_vm1 = vmpackc.low %vm7019_vm15, %vm7019_vm15  ;;  %v7087_v56 = vsel %vm2244_vm0, 65537, %v9464_v1  ;;  %v597_v11 = vand.u32 15, %v443_v52  ;;  %v7110_v12 = vadd.s32 168, %v6919_v58  ;;  %v1221_v33 = vld [vmem:[%s6995_s13 + $0x2c] sm:$0xf] }
  0x63   : > { %v6658_v38 = vpop.eup %6657  ;;  %6663 = vrcp.f32 %v1123_v35  ;;  %v1129_v39 = vadd.f32 1.0, %v6656_v36  ;;  %v7026_v35 = vsel %vm6937_vm3, 65537, %v9464_v1  ;;  %v7034_v36 = vsel %vm2238_vm11, 65537, %v9464_v1 }
  0x64   : > { %v6660_v40 = vpop.eup %6659  ;;  %6665 = vrcp.f32 %v1128_v37  ;;  %v1126_v41 = vadd.f32 1.0, %v6658_v38  ;;  %6059 = vmatpush3.bf16.msra.mxu0 %v6454_v26  ;;  %v6455_v38 = vld [vmem:[%s9452_s2 + $0x70] sm:$0xff]   ;;  %v5718_v55 = vcombine.low %v7026_v35, %v7034_v36  ;;  %v7103_v6 = vsel %vm2246_vm1, 65537, %v9464_v1 }
  0x65   : > { %6667 = vrcp.f32 %v1129_v39  ;;  %v1127_v42 = vadd.f32 1.0, %v6660_v40  ;;  %v6456_v39 = vld [vmem:[%s9452_s2 + $0x78] sm:$0xff]   ;;  %v1214_v40 = vld [vmem:[%s6995_s13 + $0x10] sm:$0xf]  ;;  %6060 = vmatprep.subr.bf16.mxu0 %v6455_v38  ;;  %v5721_v10 = vcombine.low %v7026_v35, %v7087_v56  ;;  %vm9467_vm3 = vsmask.f32 7424 }
  0x66   : > { %6669 = vrcp.f32 %v1126_v41  ;;  %v1215_v41 = vld [vmem:[%s6995_s13 + $0x14] sm:$0xf]  ;;  %v5722_v21 = vcombine.low %v7026_v35, %v7103_v6  ;;  %v7123_v22 = vadd.s32 184, %v6919_v58  ;;  %vm7147_vm5 = vcmp.eq.s32.totalorder %v597_v11, 15 }
  0x67   : > { %6671 = vrcp.f32 %v1127_v42  ;;  %vm9466_vm7 = vsmask.f32 256  ;;  %vm7184_vm8 = vcmp.ne.s16.totalorder %v5718_v55, 0  ;;  %vm2248_vm9 = vmpackc.low %vm7147_vm5, %vm7147_vm5  ;;  %vm7315_vm1 = vcmp.ne.s16.totalorder %v5721_v10, 0  ;;  %v1232_v10 = vld [vmem:[%s6995_s13 + $0x58] sm:$0xf] }
  0x68   : > { %6061 = vmatpush3.bf16.msra.mxu0 %v6455_v38 }
  0x69   : > { %6062 = vmatprep.subr.bf16.mxu0 %v6456_v39 }
  0x6b   : > { %v6662_v43 = vpop.eup %6661 }
  0x6c   : > { %6063 = vmatpush3.bf16.msra.mxu0 %v6456_v39 }
  0x6d   : > { %v6664_v44 = vpop.eup %6663  ;;  %6096 = vmatprep.subr.bf16.mxu0 %v7128_v23 }
  0x6e   : > { %v6666_v45 = vpop.eup %6665  ;;  %v1206_v46 = vpack.c.bf16 %v6664_v44, %v6662_v43  ;;  %v7056_v44 = vsel %vm2240_vm12, 65537, %v9464_v1 }
  0x6f   : > { %v6668_v47 = vpop.eup %6667  ;;  %v5719_v62 = vcombine.low %v7026_v35, %v7056_v44  ;;  %v1225_v44 = vld [vmem:[%s6995_s13 + $0x3c] sm:$0xf] }
  0x70   : > { %v6670_v48 = vpop.eup %6669  ;;  %1292 = vperm.xlu0 %6447, %v1206_v46   ;;  %v1209_v49 = vpack.c.bf16 %v6668_v47, %v6666_v45  ;;  %v7064_v45 = vsel %vm2242_vm14, 65537, %v9464_v1  ;;  %v1210_v47 = vld [vmem:[%s6995_s13] sm:$0xf] }
  0x71   : > { %v6672_v50 = vpop.eup %6671  ;;  %v5720_v63 = vcombine.low %v7026_v35, %v7064_v45  ;;  %vm7220_vm12 = vcmp.ne.s16.totalorder %v5719_v62, 0  ;;  %v7236_v62 = vadd.s32 232, %v6919_v58 }
  0x72   : > { %1304 = vperm.xlu1 %6448, %v1209_v49   ;;  %v1208_v51 = vpack.c.bf16 %v6672_v50, %v6670_v48  ;;  %v1211_v48 = vld [vmem:[%s6995_s13 + $0x4] sm:$0xf]  ;;  %v5715_v49 = vcombine.low %v7026_v35, %v2268_v30  ;;  %v5716_v50 = vcombine.low %v7026_v35, %v7009_v31  ;;  %v1220_v31 = vld [vmem:[%s6995_s13 + $0x28] sm:$0xf] }
  0x73   : > { %vm7295_vm15 = vcmp.ne.s16.totalorder %v5720_v63, 0 }
  0x74   : > { %1300 = vperm.xlu0 %6447, %v1208_v51   ;;  %v5717_v51 = vcombine.low %v7026_v35, %v7017_v32  ;;  %vm7114_vm2 = vcmp.ne.s16.totalorder %v5715_v49, 0  ;;  %vm7133_vm4 = vcmp.ne.s16.totalorder %v5716_v50, 0 }
  0x76   : > { %vm7166_vm6 = vcmp.ne.s16.totalorder %v5717_v51, 0  ;;  %v9565_v51 = vmov 0 }
  0x77   : > { %v9566_v51 = vsel %vm7184_vm8, 4294967295, %v9565_v51 }
  0xbb   : > { %v1253_v34 = vpop.permute.xlu1 %1252 }
  0xbc   : > { %v1356_v42 = vrot.slane %v1253_v34, %v6984_v28  ;;  %v1363_v43 = vrot.slane %v1253_v34, %v6987_v29 }
  0xbd   : > { %v1245_v46 = vpop.permute.xlu0 %1244 }
  0xbe   : > { %v1328_v53 = vrot.slane %v1245_v46, %v6984_v28  ;;  %v1335_v54 = vrot.slane %v1245_v46, %v6987_v29  ;;  %v1582_v57 = vmul.bf16 %v1356_v42, %v1214_v40  ;;  %v1583_v59 = vmul.bf16 %v1363_v43, %v1215_v41  ;;  %v1218_v41 = vld [vmem:[%s6995_s13 + $0x20] sm:$0xf]  ;;  %v1219_v42 = vld [vmem:[%s6995_s13 + $0x24] sm:$0xf] }
  0xbf   : > { %v1257_v60 = vpop.permute.xlu1 %1256 }
  0xc0   : > { %v1578_v0 = vmul.bf16 %v1328_v53, %v1210_v47  ;;  %v1579_v2 = vmul.bf16 %v1335_v54, %v1211_v48  ;;  %v1370_v4 = vrot.slane %v1257_v60, %v6984_v28  ;;  %v1377_v7 = vrot.slane %v1257_v60, %v6987_v29 }
  0xc1   : > { %v1249_v8 = vpop.permute.xlu0 %1248  ;;  %v7118_v18 = vcombine.low %v1582_v57, %v1583_v59 }
  0xc2   : > { %v1584_v13 = vmul.bf16 %v1370_v4, %v1216_v61  ;;  %v1342_v14 = vrot.slane %v1249_v8, %v6984_v28  ;;  %v1349_v15 = vrot.slane %v1249_v8, %v6987_v29  ;;  %v5680_v16 = vcombine.low %v1578_v0, %v1579_v2 }
  0xc3   : > { %v1585_v19 = vmul.bf16 %v1377_v7, %v1217_v3  ;;  %v1265_v20 = vpop.permute.xlu1 %1264  ;;  %v1719_v43 = vshll.u32 %v7118_v18, 16  ;;  %v611_v0 = vand.u32 15, %v7110_v12 }
  0xc4   : > { %v1580_v24 = vmul.bf16 %v1342_v14, %v1212_v5  ;;  %v1581_v26 = vmul.bf16 %v1349_v15, %v1213_v9  ;;  %2394 = vrot.lane.b32.xlu0 %v5680_v16, %s6741_s25  ;;  %v1700_v27 = vshrl.u32 %v5680_v16, 16  ;;  %v1703_v30 = vshll.u32 %v5680_v16, 16 }
  0xc5   : > { %v1398_v38 = vrot.slane %v1265_v20, %v6984_v28  ;;  %v1405_v39 = vrot.slane %v1265_v20, %v6987_v29  ;;  %v1261_v40 = vpop.permute.xlu0 %1260  ;;  %v7142_v46 = vcombine.low %v1584_v13, %v1585_v19  ;;  %v2092_v3 = vrot.slane %v1719_v43, 1 }
  0xc6   : > { %v1384_v47 = vrot.slane %v1261_v40, %v6984_v28  ;;  %v1391_v48 = vrot.slane %v1261_v40, %v6987_v29  ;;  %v5681_v49 = vcombine.low %v1580_v24, %v1581_v26  ;;  %v7151_v52 = vrot.slane %v1700_v27, 7 }
  0xc7   : > { %v1588_v53 = vmul.bf16 %v1398_v38, %v1220_v31  ;;  %v1589_v54 = vmul.bf16 %v1405_v39, %v1221_v33  ;;  %v7153_v57 = vrot.slane %v1703_v30, 1  ;;  %v1724_v4 = vshrl.u32 %v7142_v46, 16 }
  0xc8   : > { %v1586_v59 = vmul.bf16 %v1384_v47, %v1218_v41  ;;  %v1587_v60 = vmul.bf16 %v1391_v48, %v1219_v42  ;;  %2396 = vrot.lane.b32.xlu1 %v5681_v49, %s6741_s25  ;;  %v1711_v61 = vshll.u32 %v5681_v49, 16  ;;  %v1708_v2 = vshrl.u32 %v5681_v49, 16  ;;  %v1228_v47 = vld [vmem:[%s6995_s13 + $0x48] sm:$0xf] }
  0xc9   : > { %v1716_v5 = vshrl.u32 %v7118_v18, 16  ;;  %v2088_v8 = vor.u32 %v7153_v57, %v1700_v27  ;;  %v1727_v11 = vshll.u32 %v7142_v46, 16  ;;  %v9563_v13 = vmov 0 }
  0xca   : > { %v7159_v7 = vcombine.low %v1586_v59, %v1587_v60  ;;  %v2089_v9 = vrot.slane %v1711_v61, 1  ;;  %v9564_v13 = vsel %vm7166_vm6, 4294967295, %v9563_v13  ;;  %v7170_v12 = vcombine.low %v1588_v53, %v1589_v54 }
  0xcb   : > { %v625_v14 = vand.u32 15, %v7123_v22  ;;  %v7174_v15 = vadd.s32 200, %v6919_v58  ;;  %v7177_v16 = vor.u32 %v1703_v30, %v7151_v52  ;;  %v1710_v24 = vrot.slane %v1708_v2, 7 }
  0xcc   : > { %v2090_v19 = vsel %vm9467_vm3, %v2088_v8, %v2089_v9  ;;  %v2091_v20 = vor.u32 %v2089_v9, %v1708_v2  ;;  %v1735_v32 = vshll.u32 %v7159_v7, 16  ;;  %v1732_v22 = vshrl.u32 %v7159_v7, 16  ;;  %v1224_v9 = vld [vmem:[%s6995_s13 + $0x38] sm:$0xf] }
  0xcd   : > { %v2374_v26 = vsel %vm7114_vm2, 0, %v2090_v19  ;;  %v1718_v27 = vrot.slane %v1716_v5, 7  ;;  %v1740_v30 = vshrl.u32 %v7170_v12, 16  ;;  %v1726_v55 = vrot.slane %v1724_v4, 7 }
  0xce   : > { %2446 = vrot.lane.b32.xlu0 %v2374_v26, %s6742_s26  ;;  %v2093_v36 = vsel %vm9467_vm3, %v2091_v20, %v2092_v3  ;;  %v2094_v31 = vor.u32 %v2092_v3, %v1716_v5  ;;  %v2095_v33 = vrot.slane %v1727_v11, 1  ;;  %v1734_v40 = vrot.slane %v1732_v22, 7  ;;  %v1222_v26 = vld [vmem:[%s6995_s13 + $0x30] sm:$0xf] }
  0xcf   : > { %v2375_v38 = vsel %vm7133_vm4, 0, %v2093_v36  ;;  %v7201_v39 = vrot.slane %v1740_v30, 7  ;;  %v7204_v41 = vsel %vm2248_vm9, 65537, %v9464_v1  ;;  %v2098_v42 = vrot.slane %v1735_v32, 1  ;;  %v1223_v36 = vld [vmem:[%s6995_s13 + $0x34] sm:$0xf] }
  0xd0   : > { %2448 = vrot.lane.b32.xlu1 %v2375_v38, %s6742_s26  ;;  %vm7207_vm10 = vcmp.eq.s32.totalorder %v611_v0, 15  ;;  %vm7211_vm11 = vcmp.eq.s32.totalorder %v625_v14, 15  ;;  %v639_v49 = vand.u32 15, %v7174_v15  ;;  %v1743_v50 = vshll.u32 %v7170_v12, 16 }
  0xd1   : > { %v9571_v53 = vmov 0  ;;  %v7225_v54 = vadd.s32 216, %v6919_v58  ;;  %v1713_v59 = vor.u32 %v1711_v61, %v1710_v24  ;;  %v1721_v60 = vor.u32 %v1719_v43, %v1718_v27  ;;  %vm2250_vm13 = vmpackc.low %vm7207_vm10, %vm7207_vm10 }
  0xd2   : > { %v9572_v53 = vsel %vm7220_vm12, 4294967295, %v9571_v53  ;;  %2398 = vrot.lane.b32.xlu0 %v7118_v18, %s6741_s25  ;;  %v2096_v0 = vsel %vm9467_vm3, %v2094_v31, %v2095_v33  ;;  %v2097_v2 = vor.u32 %v2095_v33, %v1724_v4  ;;  %v1729_v3 = vor.u32 %v1727_v11, %v1726_v55  ;;  %vm2252_vm14 = vmpackc.low %vm7211_vm11, %vm7211_vm11 }
  0xd3   : > { %v1737_v5 = vor.u32 %v1735_v32, %v1734_v40  ;;  %v1273_v8 = vpop.permute.xlu1 %1272  ;;  %v7240_v43 = vsel %vm9466_vm7, %v7151_v52, %v1713_v59  ;;  %v7243_v18 = vsel %vm9466_vm7, %v1710_v24, %v1721_v60  ;;  %v1745_v61 = vor.u32 %v1743_v50, %v7201_v39 }
  0xd4   : > { %v1426_v4 = vrot.slane %v1273_v8, %v6984_v28  ;;  %v1433_v11 = vrot.slane %v1273_v8, %v6987_v29  ;;  %2400 = vrot.lane.b32.xlu1 %v7142_v46, %s6741_s25  ;;  %v2099_v14 = vsel %vm9467_vm3, %v2097_v2, %v2098_v42  ;;  %v2100_v15 = vor.u32 %v2098_v42, %v1732_v22 }
  0xd5   : > { %v2376_v52 = vsel %vm7166_vm6, 0, %v2096_v0  ;;  %v7257_v19 = vsel %vm9466_vm7, %v1718_v27, %v1729_v3  ;;  %v7260_v20 = vsel %vm9466_vm7, %v1726_v55, %v1737_v5  ;;  %v7263_v46 = vsel %vm9466_vm7, %v1734_v40, %v1745_v61 }
  0xd6   : > { %v1592_v32 = vmul.bf16 %v1426_v4, %v1224_v9  ;;  %v1593_v22 = vmul.bf16 %v1433_v11, %v1225_v44  ;;  %v1269_v24 = vpop.permute.xlu0 %1268  ;;  %2450 = vrot.lane.b32.xlu0 %v2376_v52, %s6742_s26  ;;  %v2101_v31 = vrot.slane %v1743_v50, 1  ;;  %v7274_v27 = vsel %vm2250_vm13, 65537, %v9464_v1  ;;  %v1229_v50 = vld [vmem:[%s6995_s13 + $0x4c] sm:$0xf]  ;;  %v1226_v9 = vld [vmem:[%s6995_s13 + $0x40] sm:$0xf] }
  0xd7   : > { %v1412_v55 = vrot.slane %v1269_v24, %v6984_v28  ;;  %v1419_v33 = vrot.slane %v1269_v24, %v6987_v29  ;;  %v2377_v38 = vsel %vm7184_vm8, 0, %v2099_v14  ;;  %v7286_v40 = vsel %vm2252_vm14, 65537, %v9464_v1 }
  0xd8   : > { %v1281_v42 = vpop.permute.xlu1 %1280  ;;  %2452 = vrot.lane.b32.xlu1 %v2377_v38, %s6742_s26  ;;  %v2102_v59 = vsel %vm9467_vm3, %v2100_v15, %v2101_v31  ;;  %v9573_v60 = vmov 0  ;;  %v7299_v0 = vcombine.low %v1592_v32, %v1593_v22  ;;  %v5723_v48 = vcombine.low %v7026_v35, %v7204_v41  ;;  %v1227_v15 = vld [vmem:[%s6995_s13 + $0x44] sm:$0xf]  ;;  %v1233_v22 = vld [vmem:[%s6995_s13 + $0x5c] sm:$0xf] }
  0xd9   : > { %v9574_v60 = vsel %vm7295_vm15, 4294967295, %v9573_v60  ;;  %vm7303_vm0 = vcmp.eq.s32.totalorder %v639_v49, 15  ;;  %v1590_v3 = vmul.bf16 %v1412_v55, %v1222_v26  ;;  %v1591_v5 = vmul.bf16 %v1419_v33, %v1223_v36 }
  0xda   : > { %v1454_v8 = vrot.slane %v1281_v42, %v6984_v28  ;;  %v1461_v45 = vrot.slane %v1281_v42, %v6987_v29  ;;  %v1277_v63 = vpop.permute.xlu0 %1276  ;;  %2402 = vrot.lane.b32.xlu0 %v7159_v7, %s6741_s25  ;;  %v9577_v41 = vmov 0  ;;  %v5724_v49 = vcombine.low %v7026_v35, %v7274_v27  ;;  %vm2254_vm5 = vmpackc.low %vm7303_vm0, %vm7303_vm0 }
  0xdb   : > { %v9578_v41 = vsel %vm7315_vm1, 4294967295, %v9577_v41  ;;  %v5725_v44 = vcombine.low %v7026_v35, %v7286_v40  ;;  %v653_v61 = vand.u32 15, %v7225_v54  ;;  %v7325_v11 = vcombine.low %v1590_v3, %v1591_v5  ;;  %v1230_v3 = vld [vmem:[%s6995_s13 + $0x50] sm:$0xf]  ;;  %v1231_v5 = vld [vmem:[%s6995_s13 + $0x54] sm:$0xf] }
  0xdc   : > { %v1596_v7 = vmul.bf16 %v1454_v8, %v1228_v47  ;;  %v1597_v14 = vmul.bf16 %v1461_v45, %v1229_v50  ;;  %v1440_v56 = vrot.slane %v1277_v63, %v6984_v28  ;;  %v1447_v52 = vrot.slane %v1277_v63, %v6987_v29  ;;  %v1289_v32 = vpop.permute.xlu1 %1288  ;;  %2404 = vrot.lane.b32.xlu1 %v7170_v12, %s6741_s25 }
  0xdd   : > { %v2378_v24 = vsel %vm7220_vm12, 0, %v2102_v59  ;;  %v1759_v26 = vshll.u32 %v7299_v0, 16  ;;  %v7341_v36 = vadd.s32 248, %v6919_v58  ;;  %v1482_v33 = vrot.slane %v1289_v32, %v6984_v28 }
  0xde   : > { %v1594_v55 = vmul.bf16 %v1440_v56, %v1226_v9  ;;  %v1489_v38 = vrot.slane %v1289_v32, %v6987_v29  ;;  %v1751_v42 = vshll.u32 %v7325_v11, 16  ;;  %v1595_v47 = vmul.bf16 %v1447_v52, %v1227_v15  ;;  %v1285_v50 = vpop.permute.xlu0 %1284  ;;  %2454 = vrot.lane.b32.xlu0 %v2378_v24, %s6742_s26  ;;  %v1236_v32 = vld [vmem:[%s6995_s13 + $0x68] sm:$0xf] }
  0xdf   : > { %v2103_v59 = vor.u32 %v2101_v31, %v1740_v30  ;;  %v7351_v8 = vcombine.low %v1596_v7, %v1597_v14  ;;  %v7359_v45 = vsel %vm2254_vm5, 65537, %v9464_v1  ;;  %v1600_v63 = vmul.bf16 %v1482_v33, %v1232_v10 }
  0xe0   : > { %v1601_v9 = vmul.bf16 %v1489_v38, %v1233_v22  ;;  %v1468_v15 = vrot.slane %v1285_v50, %v6984_v28  ;;  %v1475_v56 = vrot.slane %v1285_v50, %v6987_v29  ;;  %v7363_v12 = vcombine.low %v1594_v55, %v1595_v47  ;;  %v1237_v55 = vld [vmem:[%s6995_s13 + $0x6c] sm:$0xf] }
  0xe1   : > { %v2104_v30 = vrot.slane %v1751_v42, 1  ;;  %v1756_v31 = vshrl.u32 %v7299_v0, 16  ;;  %v1748_v7 = vshrl.u32 %v7325_v11, 16  ;;  %vm7372_vm9 = vcmp.ne.s16.totalorder %v5722_v21, 0  ;;  %v1297_v52 = vpop.permute.xlu1 %1296 }
  0xe2   : > { %v9579_v2 = vmov 0  ;;  %v1598_v14 = vmul.bf16 %v1468_v15, %v1230_v3  ;;  %v1599_v10 = vmul.bf16 %v1475_v56, %v1231_v5  ;;  %v2107_v22 = vrot.slane %v1759_v26, 1  ;;  %2406 = vrot.lane.b32.xlu0 %v7325_v11, %s6741_s25 }
  0xe3   : > { %v9580_v2 = vsel %vm7372_vm9, 4294967295, %v9579_v2  ;;  %v1772_v24 = vshrl.u32 %v7351_v8, 16  ;;  %v1510_v33 = vrot.slane %v1297_v52, %v6984_v28  ;;  %v1517_v38 = vrot.slane %v1297_v52, %v6987_v29 }
  0xe4   : > { %9581 = vst [vmem:[#allocation7_spill] sm:$0xff] %v9580_v2  ;;  %v2105_v6 = vsel %vm9467_vm3, %v2103_v59, %v2104_v30  ;;  %v2106_v21 = vor.u32 %v2104_v30, %v1748_v7  ;;  %vm7386_vm10 = vcmp.ne.s16.totalorder %v5723_v48, 0  ;;  %v9582_v47 = vmov 0 }
  0xe5   : > { %v9583_v47 = vsel %vm7386_vm10, 4294967295, %v9582_v47  ;;  %v7390_v50 = vcombine.low %v1598_v14, %v1599_v10  ;;  %v2379_v3 = vsel %vm7295_vm15, 0, %v2105_v6  ;;  %v1767_v5 = vshll.u32 %v7363_v12, 16 }
  0xe6   : > { %9584 = vst [vmem:[#allocation8_spill] sm:$0xff] %v9583_v47  ;;  %v7395_v15 = vcombine.low %v1600_v63, %v1601_v9  ;;  %v1604_v56 = vmul.bf16 %v1510_v33, %v1236_v32  ;;  %2456 = vrot.lane.b32.xlu1 %v2379_v3, %s6742_s26  ;;  %v2108_v59 = vsel %vm9467_vm3, %v2106_v21, %v2107_v22  ;;  %v1775_v30 = vshll.u32 %v7351_v8, 16 }
  0xe7   : > { %v1764_v48 = vshrl.u32 %v7363_v12, 16  ;;  %v1605_v52 = vmul.bf16 %v1517_v38, %v1237_v55  ;;  %v2380_v14 = vsel %vm7315_vm1, 0, %v2108_v59  ;;  %v2110_v10 = vrot.slane %v1767_v5, 1  ;;  %v1241_v55 = vld [vmem:[%s6995_s13 + $0x7c] sm:$0xf] }
  0xe8   : > { %v1783_v6 = vshll.u32 %v7390_v50, 16  ;;  %v1750_v37 = vrot.slane %v1748_v7, 7  ;;  %2458 = vrot.lane.b32.xlu0 %v2380_v14, %s6742_s26  ;;  %v2109_v63 = vor.u32 %v2107_v22, %v1756_v31  ;;  %v1780_v9 = vshrl.u32 %v7390_v50, 16 }
  0xe9   : > { %v7407_v32 = vadd.s32 264, %v6919_v58  ;;  %v1758_v33 = vrot.slane %v1756_v31, 7  ;;  %v2112_v21 = vor.u32 %v2110_v10, %v1764_v48  ;;  %v9463_v3 = vshrl.u32 %v7395_v15, 16 }
  0xea   : > { %2408 = vrot.lane.b32.xlu1 %v7299_v0, %s6741_s25  ;;  %v2111_v7 = vsel %vm9467_vm3, %v2109_v63, %v2110_v10  ;;  %v1774_v38 = vrot.slane %v1772_v24, 7  ;;  %v1766_v59 = vrot.slane %v1764_v48, 7  ;;  %v2113_v22 = vrot.slane %v1775_v30, 1 }
  0xeb   : > { %vm7418_vm11 = vcmp.ne.s16.totalorder %v5724_v49, 0  ;;  %v9585_v14 = vmov 0  ;;  %v2116_v31 = vrot.slane %v1783_v6, 1  ;;  %v7422_v4 = vcombine.low %v1604_v56, %v1605_v52 }
  0xec   : > { %v9586_v14 = vsel %vm7418_vm11, 4294967295, %v9585_v14  ;;  %vm7426_vm13 = vcmp.eq.s32.totalorder %v653_v61, 15  ;;  %v681_v10 = vand.u32 15, %v7341_v36  ;;  %2410 = vrot.lane.b32.xlu0 %v7363_v12, %s6741_s25  ;;  %v2114_v27 = vsel %vm9467_vm3, %v2112_v21, %v2113_v22 }
  0xed   : > { %9587 = vst [vmem:[#allocation9_spill] sm:$0xff] %v9586_v14  ;;  %v1791_v49 = vshll.u32 %v7395_v15, 16  ;;  %v1782_v48 = vrot.slane %v1780_v9, 7  ;;  %vm7438_vm14 = vcmp.ne.s16.totalorder %v5725_v44, 0  ;;  %v9590_v56 = vmov 0  ;;  %vm2256_vm0 = vmpackc.low %vm7426_vm13, %vm7426_vm13 }
  0xee   : > { %v9591_v56 = vsel %vm7438_vm14, 4294967295, %v9590_v56  ;;  %v1753_v54 = vor.u32 %v1751_v42, %v1750_v37  ;;  %v2381_v61 = vsel %vm7372_vm9, 0, %v2111_v7  ;;  %v7448_v36 = vrot.slane %v9463_v3, 7  ;;  %v1234_v7 = vld [vmem:[%s6995_s13 + $0x60] sm:$0xf] }
  0xef   : > { %9592 = vst [vmem:[#allocation10_spill] sm:$0xff] %v9591_v56  ;;  %v9462_v12 = vshrl.u32 %v7422_v4, 16  ;;  %v1761_v52 = vor.u32 %v1759_v26, %v1758_v33  ;;  %2460 = vrot.lane.b32.xlu1 %v2381_v61, %s6742_s26  ;;  %v2115_v40 = vor.u32 %v2113_v22, %v1772_v24  ;;  %v1769_v11 = vor.u32 %v1767_v5, %v1766_v59  ;;  %v1235_v22 = vld [vmem:[%s6995_s13 + $0x64] sm:$0xf] }
  0xf0   : > { %v7459_v44 = vsel %vm9466_vm7, %v7201_v39, %v1753_v54  ;;  %v1777_v42 = vor.u32 %v1775_v30, %v1774_v38  ;;  %v2382_v63 = vsel %vm7386_vm10, 0, %v2114_v27  ;;  %v2118_v0 = vor.u32 %v2116_v31, %v1780_v9  ;;  %v1293_v9 = vpop.permute.xlu0 %1292 }
  0xf1   : > { %v7465_v26 = vrot.slane %v9462_v12, 7  ;;  %v7468_v24 = vsel %vm9466_vm7, %v1750_v37, %v1761_v52  ;;  %2462 = vrot.lane.b32.xlu0 %v2382_v63, %s6742_s26  ;;  %v1807_v21 = vshll.u32 %v7422_v4, 16  ;;  %v7473_v39 = vsel %vm9466_vm7, %v1758_v33, %v1769_v11  ;;  %v1305_v52 = vpop.permute.xlu1 %1304 }
  0xf2   : > { %v7476_v5 = vsel %vm9466_vm7, %v1766_v59, %v1777_v42  ;;  %v1785_v30 = vor.u32 %v1783_v6, %v1782_v48  ;;  %v2117_v27 = vsel %vm9467_vm3, %v2115_v40, %v2116_v31  ;;  %v2119_v37 = vrot.slane %v1791_v49, 1  ;;  %v1240_v40 = vld [vmem:[%s6995_s13 + $0x78] sm:$0xf] }
  0xf3   : > { %v2292_v33 = vsel %vm2256_vm0, 65537, %v9464_v1  ;;  %v1793_v54 = vor.u32 %v1791_v49, %v7448_v36  ;;  %v1496_v59 = vrot.slane %v1293_v9, %v6984_v28  ;;  %v1503_v61 = vrot.slane %v1293_v9, %v6987_v29  ;;  %2412 = vrot.lane.b32.xlu1 %v7351_v8, %s6741_s25 }
  0xf4   : > { %v7493_v6 = vsel %vm9466_vm7, %v1774_v38, %v1785_v30  ;;  %v1809_v31 = vor.u32 %v1807_v21, %v7465_v26  ;;  %v2120_v11 = vsel %vm9467_vm3, %v2118_v0, %v2119_v37  ;;  %v9593_v49 = vand.u32 15, %v7236_v62  ;;  %v1301_v62 = vpop.permute.xlu0 %1300  ;;  %v1238_v0 = vld [vmem:[%s6995_s13 + $0x70] sm:$0xf] }
  0xf5   : > { %v459_v63 = vadd.s32 280, %v6919_v58  ;;  %v7507_v8 = vsel %vm9466_vm7, %v1782_v48, %v1793_v54  ;;  %v1602_v38 = vmul.bf16 %v1496_v59, %v1234_v7  ;;  %v1603_v30 = vmul.bf16 %v1503_v61, %v1235_v22  ;;  %2414 = vrot.lane.b32.xlu0 %v7390_v50, %s6741_s25  ;;  %v1239_v59 = vld [vmem:[%s6995_s13 + $0x74] sm:$0xf]  ;;  %s5535_s13 = sshll.u32 %s9038_s16, 4  ;;  %s9300_s13 = int_to_ptr.vmem [resolvable:$true] %s5535_s13 }
  0xf6   : > { %vm7501_vm5 = vcmp.eq.s32.totalorder %v9593_v49, 15  ;;  %v1538_v9 = vrot.slane %v1305_v52, %v6984_v28  ;;  %v1545_v12 = vrot.slane %v1305_v52, %v6987_v29  ;;  %v2383_v49 = vsel %vm7418_vm11, 0, %v2117_v27  ;;  %s6673_s15 = scalar_lea.vmem %s9300_s13, 4096  ;;  %p6680_p0 = scmp.lt.s32.totalorder %s9300_s13, %s6678_s18 }
  0xf7   : > { %v5727_v3 = vcombine.low %v7026_v35, %v2292_v33  ;;  %vm7517_vm13 = vcmp.eq.s32.totalorder %v681_v10, 15  ;;  %v695_v48 = vand.u32 15, %v7407_v32  ;;  %v5692_v7 = vcombine.low %v1602_v38, %v1603_v30  ;;  %2464 = vrot.lane.b32.xlu1 %v2383_v49, %s6742_s26  ;;  %vm2258_vm0 = vmpackc.low %vm7501_vm5, %vm7501_vm5  ;;  %p6674_p11 = scmp.ne.s32.totalorder %s9300_s13, %s6673_s15 }
  0xf8   : > { %v1608_v22 = vmul.bf16 %v1538_v9, %v1240_v40  ;;  %v1609_v54 = vmul.bf16 %v1545_v12, %v1241_v55  ;;  %v1524_v61 = vrot.slane %v1301_v62, %v6984_v28  ;;  %v1531_v50 = vrot.slane %v1301_v62, %v6987_v29  ;;  %vm2260_vm5 = vmpackc.low %vm7517_vm13, %vm7517_vm13 }
  0xf9   : > { %v2384_v10 = vsel %vm7438_vm14, 0, %v2120_v11  ;;  %v9598_v32 = vcombine.low %v7026_v35, %v7359_v45  ;;  %v9599_v27 = vmov 0  ;;  %v709_v12 = vand.u32 15, %v459_v63  ;;  %p6675_p12 = pnand %p6674_p11, %p6847_p5 }
  0xfa   : > { %v1606_v28 = vmul.bf16 %v1524_v61, %v1238_v0  ;;  %2466 = vrot.lane.b32.xlu0 %v2384_v10, %s6742_s26  ;;  %v1799_v33 = vshll.u32 %v5692_v7, 16  ;;  %v1796_v52 = vshrl.u32 %v5692_v7, 16  ;;  %v5695_v40 = vcombine.low %v1608_v22, %v1609_v54 }
  0xfb   : > { %vm7534_vm7 = vcmp.ne.s16.totalorder %v9598_v32, 0  ;;  %v1607_v29 = vmul.bf16 %v1531_v50, %v1239_v59  ;;  %vm7542_vm3 = vcmp.ne.s16.totalorder %v5727_v3, 0  ;;  %v9604_v45 = vmov 0   ;;  %2416 = vrot.lane.b32.xlu1 %v7395_v15, %s6741_s25  ;;  %p6676_p13 = pneg %p6675_p12 }
  0xfc   : > { %v9600_v27 = vsel %vm7534_vm7, 4294967295, %v9599_v27  ;;  %v2294_v11 = vsel %vm2258_vm0, 65537, %v9604_v45  ;;  %vm7547_vm14 = vcmp.eq.s32.totalorder %v695_v48, 15  ;;  %v9607_v63 = vshrl.u32 %v7395_v15, 16 }
  0xfd   : > { %9601 = vst [vmem:[#allocation11_spill] sm:$0xff] %v9600_v27  ;;  %v2122_v1 = vrot.slane %v1799_v33, 1  ;;  %v1798_v30 = vrot.slane %v1796_v52, 7  ;;  %v1820_v9 = vshrl.u32 %v5695_v40, 16  ;;  %v5694_v62 = vcombine.low %v1606_v28, %v1607_v29 }
  0xfe   : > { %v2121_v38 = vor.u32 %v2119_v37, %v9607_v63  ;;  %v2125_v3 = vrot.slane %v1807_v21, 1  ;;  %v2296_v0 = vsel %vm2260_vm5, 65537, %v9604_v45  ;;  %vm7556_vm13 = vcmp.eq.s32.totalorder %v709_v12, 15  ;;  %2418 = vrot.lane.b32.xlu0 %v5692_v7, %s6741_s25 }
  0xff   : > { %vm9610_vm0 = vsmask.f32 7424  ;;  %v2124_v22 = vor.u32 %v2122_v1, %v1796_v52  ;;  %v7562_v54 = vrot.slane %v1820_v9, 7  ;;  %v1823_v15 = vshll.u32 %v5695_v40, 16 }
 0x100   : > { %v2123_v48 = vsel %vm9610_vm0, %v2121_v38, %v2122_v1  ;;  %v1815_v59 = vshll.u32 %v5694_v62, 16  ;;  %v1812_v61 = vshrl.u32 %v5694_v62, 16  ;;  %v1801_v21 = vor.u32 %v1799_v33, %v1798_v30  ;;  %vm9611_vm5 = vmmov %vm9610_vm0 }
 0x101   : > { %v2385_v37 = vsel %vm7534_vm7, 0, %v2123_v48  ;;  %v2126_v50 = vsel %vm9611_vm5, %v2124_v22, %v2125_v3  ;;  %v5728_v10 = vcombine.low %v7026_v35, %v2294_v11  ;;  %vm9612_vm11 = vsmask.f32 256  ;;  %vm2262_vm0 = vmpackc.low %vm7547_vm14, %vm7547_vm14 }
 0x102   : > { %2468 = vrot.lane.b32.xlu1 %v2385_v37, %s6742_s26  ;;  %v7570_v32 = vsel %vm9612_vm11, %v1798_v30, %v1809_v31  ;;  %v1825_v7 = vor.u32 %v1823_v15, %v7562_v54  ;;  %v2386_v12 = vsel %vm7542_vm3, 0, %v2126_v50  ;;  %v2128_v28 = vrot.slane %v1815_v59, 1  ;;  %vm9613_vm7 = vmmov %vm9612_vm11 }
 0x103   : > { %v1814_v52 = vrot.slane %v1812_v61, 7  ;;  %v7580_v33 = vsel %vm9613_vm7, %v7448_v36, %v1801_v21  ;;  %2470 = vrot.lane.b32.xlu0 %v2386_v12, %s6742_s26  ;;  %v9614_v31 = vshrl.u32 %v7422_v4, 16  ;;  %v5729_v11 = vcombine.low %v7026_v35, %v2296_v0  ;;  %vm2264_vm11 = vmpackc.low %vm7556_vm13, %vm7556_vm13 }
 0x104   : > { %v2130_v63 = vor.u32 %v2128_v28, %v1812_v61  ;;  %v9615_v42 = vand.u32 15, %v6971_v25  ;;  %vm9618_vm7 = vsmask.f32 7424  ;;  %vm7598_vm14 = vcmp.ne.s16.totalorder %v5728_v10, 0 }
 0x105   : > { %v2127_v29 = vor.u32 %v2125_v3, %v9614_v31  ;;  %v1817_v36 = vor.u32 %v1815_v59, %v1814_v52  ;;  %v2131_v3 = vrot.slane %v1823_v15, 1  ;;  %vm9621_vm10 = vsmask.f32 256  ;;  %vm9623_vm9 = vmmov %vm9618_vm7 }
 0x106   : > { %vm7591_vm5 = vcmp.eq.s32.totalorder %v9615_v42, 15  ;;  %2420 = vrot.lane.b32.xlu1 %v7422_v4, %s6741_s25  ;;  %v7603_v0 = vsel %vm9621_vm10, %v1814_v52, %v1825_v7  ;;  %v2298_v25 = vsel %vm2262_vm0, 65537, %v9604_v45  ;;  %v2300_v49 = vsel %vm2264_vm11, 65537, %v9604_v45  ;;  %vm9622_vm13 = vmmov %vm9621_vm10 }
 0x107   : > { %v2129_v1 = vsel %vm9618_vm7, %v2127_v29, %v2128_v28  ;;  %v7609_v48 = vsel %vm9622_vm13, %v7465_v26, %v1817_v36  ;;  %2422 = vrot.lane.b32.xlu0 %v5694_v62, %s6741_s25  ;;  %v2132_v4 = vsel %vm9623_vm9, %v2130_v63, %v2131_v3  ;;  %vm7613_vm7 = vcmp.ne.s16.totalorder %v5729_v11, 0  ;;  %vm2230_vm10 = vmpackc.low %vm7591_vm5, %vm7591_vm5 }
 0x108   : > { %v2387_v15 = vsel %vm7598_vm14, 0, %v2129_v1  ;;  %v2133_v37 = vor.u32 %v2131_v3, %v1820_v9  ;;  %v5730_v26 = vcombine.low %v7026_v35, %v2298_v25  ;;  %v5731_v62 = vcombine.low %v7026_v35, %v2300_v49  ;;  %vm9628_vm5 = vmmov %vm9623_vm9  ;;  %v9835_v9 = vld [vmem:[#allocation7_spill] sm:$0xff] }
 0x109   : > { %v2388_v59 = vsel %vm7613_vm7, 0, %v2132_v4  ;;  %v2266_v61 = vsel %vm2230_vm10, 65537, %v9604_v45  ;;  %v7630_v21 = vrot.slane %v9604_v45, 1  ;;  %v426_v31 = vadd.s32 16, %v6919_v58 }
 0x10a   : > { %2472 = vrot.lane.b32.xlu1 %v2387_v15, %s6742_s26  ;;  %vm7635_vm0 = vcmp.ne.s16.totalorder %v5730_v26, 0  ;;  %v5714_v10 = vcombine.low %v7026_v35, %v2266_v61  ;;  %vm2372_vm11 = vcmp.ne.s16.totalorder %v5731_v62, 0  ;;  %v428_v29 = vadd.s32 32, %v6919_v58 }
 0x10b   : > { %2474 = vrot.lane.b32.xlu0 %v2388_v59, %s6742_s26  ;;  %v2134_v50 = vsel %vm9623_vm9, %v2133_v37, %v7630_v21  ;;  %v2390_v12 = vsel %vm2372_vm11, 0, %v7630_v21  ;;  %v478_v11 = vand.u32 15, %v426_v31  ;;  %v432_v42 = vadd.s32 64, %v6919_v58 }
 0x10c   : > { %v2389_v7 = vsel %vm7635_vm0, 0, %v2134_v50  ;;  %vm7649_vm13 = vcmp.ne.s16.totalorder %v5714_v10, 0  ;;  %v492_v63 = vand.u32 15, %v428_v29  ;;  %v434_v3 = vadd.s32 80, %v6919_v58 }
 0x10d   : > { %vm894_vm10 = vcmp.eq.s32.totalorder %v478_v11, 0  ;;  %v520_v1 = vand.u32 15, %v432_v42  ;;  %v7665_v49 = vrot.slane %v9604_v45, 7  ;;  %v9634_v62 = vmov 0 }
 0x10e   : > { %2424 = vrot.lane.b32.xlu1 %v5695_v40, %s6741_s25  ;;  %v2087_v40 = vsel %vm9628_vm5, %v7630_v21, %v7153_v57  ;;  %v430_v57 = vadd.s32 48, %v6919_v58  ;;  %vm896_vm9 = vcmp.eq.s32.totalorder %v492_v63, 0  ;;  %vm1923_vm11 = vmpackc.low %vm894_vm10, %vm894_vm10  ;;  %v534_v26 = vand.u32 15, %v434_v3 }
 0x10f   : > { %2392 = vrot.lane.b32.xlu0 %v9604_v45, %s6741_s25  ;;  %v2373_v52 = vsel %vm7649_vm13, 0, %v2087_v40  ;;  %vm1925_vm5 = vmpackc.low %vm896_vm9, %vm896_vm9  ;;  %v1959_v36 = vsel %vm1923_vm11, 65537, %v9604_v45  ;;  %9631 = vst [vmem:[#allocation12_spill] sm:$0xff] %v7665_v49  ;;  %vm7668_vm15 = vcmp.eq.s32.totalorder %v520_v1, 0  ;;  %vm9637_vm11 = vsmask.f32 256 }
 0x110   : > { %v506_v38 = vand.u32 15, %v430_v57  ;;  %v1961_v25 = vsel %vm1925_vm5, 65537, %v9604_v45  ;;  %v5697_v4 = vcombine.low %v1959_v36, %v7026_v35  ;;  %v1706_v61 = vsel %vm9637_vm11, %v7665_v49, %v7177_v16  ;;  %vm1929_vm5 = vmpackc.low %vm7668_vm15, %vm7668_vm15 }
 0x111   : > { %v5698_v37 = vcombine.low %v1961_v25, %v7026_v35  ;;  %vm9480_vm12 = vcmask 261120   ;;  %v436_v10 = vadd.s32 96, %v6919_v58  ;;  %vm9483_vm8 = vcmask 523264   ;;  %v6458_v25 = vld [vmem:[%s9452_s2 + $0x8] sm:$0xff]  }
 0x112   : > { %2476 = vrot.lane.b32.xlu1 %v2389_v7, %s6742_s26  ;;  %vm898_vm1 = vcmp.eq.s32.totalorder %v506_v38, 0  ;;  %vm7673_vm9 = vcmp.ne.s16.totalorder %v5697_v4, 0  ;;  %v9638_v7 = vmov 0  ;;  %vm7689_vm6 = vcmp.eq.s32.totalorder %v534_v26, 0 }
 0x113   : > { %2478 = vrot.lane.b32.xlu0 %v2390_v12, %s6742_s26  ;;  %vm1927_vm10 = vmpackc.low %vm898_vm1, %vm898_vm1  ;;  %v9635_v62 = vsel %vm7673_vm9, 4294967295, %v9634_v62  ;;  %vm7685_vm1 = vcmp.ne.s16.totalorder %v5698_v37, 0  ;;  %v2066_v16 = vsel %vm7673_vm9, 0, %v1706_v61  ;;  %vm9478_vm11 = vcmask 785408  }
 0x114   : > { %9636 = vst [vmem:[#allocation13_spill] sm:$0xff] %v9635_v62  ;;  %v1963_v50 = vsel %vm1927_vm10, 65537, %v9604_v45  ;;  %v9639_v7 = vsel %vm7685_vm1, 4294967295, %v9638_v7  ;;  %v438_v31 = vadd.s32 112, %v6919_v58  ;;  %v2067_v57 = vsel %vm7685_vm1, 0, %v7240_v43  ;;  %vm1931_vm15 = vmpackc.low %vm7689_vm6, %vm7689_vm6 }
 0x115   : > { %9640 = vst [vmem:[#allocation14_spill] sm:$0xff] %v9639_v7  ;;  %v5699_v63 = vcombine.low %v1963_v50, %v7026_v35  ;;  %v548_v38 = vand.u32 15, %v436_v10  ;;  %v9643_v15 = vmov 0  ;;  %v1967_v26 = vsel %vm1931_vm15, 65537, %v9604_v45 }
 0x116   : > { %2444 = vrot.lane.b32.xlu1 %v2373_v52, %s6742_s26  ;;  %v1965_v52 = vsel %vm1929_vm5, 65537, %v9604_v45  ;;  %v562_v4 = vand.u32 15, %v438_v31  ;;  %v440_v61 = vadd.s32 128, %v6919_v58  ;;  %v9648_v50 = vmov 0 }
 0x117   : > { %v5700_v3 = vcombine.low %v1965_v52, %v7026_v35  ;;  %vm7718_vm10 = vcmp.ne.s16.totalorder %v5699_v63, 0  ;;  %vm7726_vm5 = vcmp.eq.s32.totalorder %v548_v38, 0  ;;  %vm9721_vm1 = vcmask 785408  }
 0x118   : > { %v9644_v15 = vsel %vm7718_vm10, 4294967295, %v9643_v15  ;;  %vm7741_vm15 = vcmp.eq.s32.totalorder %v562_v4, 0  ;;  %v576_v63 = vand.u32 15, %v440_v61 }
 0x119   : > { %9645 = vst [vmem:[#allocation15_spill] sm:$0xff] %v9644_v15  ;;  %vm7731_vm6 = vcmp.ne.s16.totalorder %v5700_v3, 0 }
 0x11a   : > { %v9649_v50 = vsel %vm7731_vm6, 4294967295, %v9648_v50 }
 0x11b   : > { %9650 = vst [vmem:[#allocation16_spill] sm:$0xff] %v9649_v50 }
 0x136   : > { %v2395_v59 = vpop.permute.xlu0 %2394 }
 0x137   : > { %v2486_v29 = vsel %vm9480_vm12, %v2066_v16, %v2395_v59  ;;  %v442_v16 = vadd.s32 144, %v6919_v58  ;;  %v444_v59 = vadd.s32 160, %v6919_v58 }
 0x139   : > { %v590_v3 = vand.u32 15, %v442_v16 }
 0x13a   : > { %v2397_v12 = vpop.permute.xlu1 %2396 }
 0x13b   : > { %v2489_v36 = vsel %vm9480_vm12, %v2067_v57, %v2397_v12  ;;  %v6459_v12 = vld [vmem:[%s9452_s2 + $0x10] sm:$0xff]  }
 0x140   : > { %v2447_v11 = vpop.permute.xlu0 %2446 }
 0x141   : > { %v7703_v42 = vsel %vm9483_vm8, %v2486_v29, %v2447_v11  ;;  %v5701_v29 = vcombine.low %v1967_v26, %v7026_v35  ;;  %v2069_v11 = vsel %vm7731_vm6, 0, %v7257_v19  ;;  %v6460_v19 = vld [vmem:[%s9452_s2 + $0x18] sm:$0xff]   ;;  %vm9665_vm6 = vcmask 785408  }
 0x142   : > { %v2449_v1 = vpop.permute.xlu1 %2448  ;;  %6064 = vmatprep.mubr.msk.bf16.mxu0 %vm9478_vm11, %v7703_v42  ;;  %v9681_v26 = vmov 0 }
 0x143   : > { %v7716_v43 = vsel %vm9483_vm8, %v2489_v36, %v2449_v1 }
 0x144   : > { %v2399_v37 = vpop.permute.xlu0 %2398  ;;  %6065 = vmatmul.mubr.msk.bf16.vlgmr.msra.gmra.mrb[0].mxu0 %vm9478_vm11, %v7716_v43  ;;  %vm1933_vm11 = vmpackc.low %vm7726_vm5, %vm7726_vm5 }
 0x145   : > { %6097 = vmatpush3.bf16.msra.mxu0 %v7128_v23  ;;  %v2068_v23 = vsel %vm7718_vm10, 0, %v7243_v18  ;;  %vm9653_vm10 = vcmask 785408   ;;  %vm1935_vm5 = vmpackc.low %vm7741_vm15, %vm7741_vm15  ;;  %v1969_v1 = vsel %vm1933_vm11, 65537, %v9604_v45  ;;  %vm7777_vm15 = vcmp.eq.s32.totalorder %v576_v63, 0 }
 0x146   : > { %v2401_v10 = vpop.permute.xlu1 %2400  ;;  %6098 = vmatprep.subr.bf16.mxu0 %v6458_v25  ;;  %v2492_v52 = vsel %vm9480_vm12, %v2068_v23, %v2399_v37  ;;  %v1971_v37 = vsel %vm1935_vm5, 65537, %v9604_v45  ;;  %v5702_v61 = vcombine.low %v1969_v1, %v7026_v35  ;;  %vm7789_vm11 = vcmp.eq.s32.totalorder %v590_v3, 0 }
 0x147   : > { %v2495_v57 = vsel %vm9480_vm12, %v2069_v11, %v2401_v10  ;;  %vm7770_vm12 = vcmp.ne.s16.totalorder %v5701_v29, 0  ;;  %v6461_v10 = vld [vmem:[%s9452_s2 + $0x20] sm:$0xff]   ;;  %vm9661_vm5 = vcmask 261120   ;;  %v5703_v29 = vcombine.low %v1971_v37, %v7026_v35 }
 0x148   : > { %v2451_v31 = vpop.permute.xlu0 %2450  ;;  %v2070_v23 = vsel %vm7770_vm12, 0, %v7260_v20  ;;  %v604_v20 = vand.u32 15, %v444_v59  ;;  %v9662_v63 = vmov 0  ;;  %v9666_v1 = vmov 0 }
 0x149   : > { %v7755_v18 = vsel %vm9483_vm8, %v2492_v52, %v2451_v31  ;;  %6099 = vmatpush3.bf16.msra.mxu0 %v6458_v25  ;;  %v9654_v25 = vmov 0  ;;  %v448_v59 = vadd.s32 192, %v6919_v58 }
 0x14a   : > { %v2453_v38 = vpop.permute.xlu1 %2452  ;;  %6068 = vmatprep.mubr.msk.bf16.mxu0 %vm9653_vm10, %v7755_v18  ;;  %6100 = vmatprep.subr.bf16.mxu0 %v6459_v12  ;;  %v9655_v25 = vsel %vm7770_vm12, 4294967295, %v9654_v25  ;;  %vm7802_vm12 = vcmp.ne.s16.totalorder %v5702_v61, 0 }
 0x14b   : > { %v7767_v36 = vsel %vm9483_vm8, %v2495_v57, %v2453_v38  ;;  %9656 = vst [vmem:[#allocation17_spill] sm:$0xff] %v9655_v25  ;;  %v9663_v63 = vsel %vm7802_vm12, 4294967295, %v9662_v63  ;;  %v6462_v57 = vld [vmem:[%s9452_s2 + $0x28] sm:$0xff]  }
 0x14c   : > { %v2403_v4 = vpop.permute.xlu0 %2402  ;;  %6069 = vmatmul.mubr.msk.bf16.gmra.mrb[4].mxu0 %vm9653_vm10, %v7767_v36  ;;  %vm1937_vm10 = vmpackc.low %vm7777_vm15, %vm7777_vm15  ;;  %9664 = vst [vmem:[#allocation18_spill] sm:$0xff] %v9663_v63  ;;  %vm7815_vm15 = vcmp.ne.s16.totalorder %v5703_v29, 0 }
 0x14d   : > { %6101 = vmatpush3.bf16.msra.mxu0 %v6459_v12  ;;  %v446_v12 = vadd.s32 176, %v6919_v58  ;;  %v2498_v16 = vsel %vm9661_vm5, %v2070_v23, %v2403_v4  ;;  %vm1939_vm5 = vmpackc.low %vm7789_vm11, %vm7789_vm11  ;;  %v1973_v38 = vsel %vm1937_vm10, 65537, %v9604_v45  ;;  %v9667_v1 = vsel %vm7815_vm15, 4294967295, %v9666_v1 }
 0x14e   : > { %6102 = vmatprep.subr.bf16.mxu0 %v6460_v19  ;;  %v2405_v52 = vpop.permute.xlu1 %2404  ;;  %9668 = vst [vmem:[#allocation19_spill] sm:$0xff] %v9667_v1  ;;  %v2071_v4 = vsel %vm7802_vm12, 0, %v7263_v46  ;;  %v1975_v37 = vsel %vm1939_vm5, 65537, %v9604_v45  ;;  %vm9671_vm11 = vcmask 261120   ;;  %v5704_v40 = vcombine.low %v1973_v38, %v7026_v35 }
 0x14f   : > { %v2501_v61 = vsel %vm9671_vm11, %v2071_v4, %v2405_v52  ;;  %v450_v52 = vadd.s32 208, %v6919_v58  ;;  %vm9674_vm5 = vmmov %vm9671_vm11  ;;  %vm9675_vm11 = vcmask 785408   ;;  %vm9676_vm12 = vcmask 523264   ;;  %v6464_v4 = vld [vmem:[%s9452_s2 + $0x38] sm:$0xff]  }
 0x150   : > { %v2455_v31 = vpop.permute.xlu0 %2454  ;;  %v632_v38 = vand.u32 15, %v448_v59 }
 0x151   : > { %v7800_v11 = vsel %vm9483_vm8, %v2498_v16, %v2455_v31  ;;  %6103 = vmatpush3.bf16.msra.mxu0 %v6460_v19  ;;  %v618_v19 = vand.u32 15, %v446_v12  ;;  %v6463_v12 = vld [vmem:[%s9452_s2 + $0x30] sm:$0xff]   ;;  %v2072_v16 = vsel %vm7815_vm15, 0, %v7459_v44  ;;  %vm7854_vm15 = vcmp.ne.s16.totalorder %v5704_v40, 0 }
 0x152   : > { %6072 = vmatprep.mubr.msk.bf16.mxu0 %vm9665_vm6, %v7800_v11  ;;  %6104 = vmatprep.subr.bf16.mxu0 %v6461_v10  ;;  %vm7823_vm6 = vcmp.eq.s32.totalorder %v604_v20, 0  ;;  %v5705_v20 = vcombine.low %v1975_v37, %v7026_v35 }
 0x153   : > { %vm7839_vm10 = vcmp.eq.s32.totalorder %v618_v19, 0  ;;  %v9677_v19 = vmov 0 }
 0x154   : > { %v2407_v3 = vpop.permute.xlu0 %2406  ;;  %v9678_v19 = vsel %vm7854_vm15, 4294967295, %v9677_v19 }
 0x155   : > { %6105 = vmatpush3.bf16.msra.mxu0 %v6461_v10  ;;  %v2504_v31 = vsel %vm9674_vm5, %v2072_v16, %v2407_v3  ;;  %9679 = vst [vmem:[#allocation20_spill] sm:$0xff] %v9678_v19  ;;  %vm9680_vm5 = vmmov %vm9675_vm11  ;;  %v452_v16 = vadd.s32 224, %v6919_v58 }
 0x156   : > { %6106 = vmatprep.subr.bf16.mxu0 %v6462_v57 }
 0x158   : > { %v2457_v23 = vpop.permute.xlu1 %2456 }
 0x159   : > { %v7834_v46 = vsel %vm9483_vm8, %v2501_v61, %v2457_v23  ;;  %vm1941_vm8 = vmpackc.low %vm7823_vm6, %vm7823_vm6  ;;  %6107 = vmatpush3.bf16.msra.mxu0 %v6462_v57  ;;  %v646_v57 = vand.u32 15, %v450_v52  ;;  %v2073_v61 = vsel %vm7854_vm15, 0, %v7468_v24  ;;  %vm7875_vm6 = vcmp.eq.s32.totalorder %v632_v38, 0 }
 0x15a   : > { %6073 = vmatmul.mubr.msk.bf16.gmra.mrb[8].mxu0 %vm9675_vm11, %v7834_v46  ;;  %v2459_v29 = vpop.permute.xlu0 %2458  ;;  %vm1943_vm11 = vmpackc.low %vm7839_vm10, %vm7839_vm10  ;;  %6108 = vmatprep.subr.bf16.mxu0 %v6463_v12  ;;  %v1977_v37 = vsel %vm1941_vm8, 65537, %v9604_v45  ;;  %vm9686_vm8 = vcmask 261120   ;;  %vm9687_vm10 = vcmask 523264   ;;  %v454_v38 = vadd.s32 240, %v6919_v58 }
 0x15b   : > { %v7852_v44 = vsel %vm9676_vm12, %v2504_v31, %v2459_v29  ;;  %vm7867_vm12 = vcmp.ne.s16.totalorder %v5705_v20, 0  ;;  %v1979_v23 = vsel %vm1943_vm11, 65537, %v9604_v45  ;;  %v5706_v31 = vcombine.low %v1977_v37, %v7026_v35  ;;  %v7885_v29 = vld [vmem:[%s9452_s2 + $0x80] sm:$0xff]   ;;  %vm9690_vm11 = vmmov %vm9686_vm8 }
 0x15c   : > { %v2409_v3 = vpop.permute.xlu1 %2408  ;;  %6076 = vmatprep.mubr.msk.bf16.mxu0 %vm9680_vm5, %v7852_v44  ;;  %v9682_v26 = vsel %vm7867_vm12, 4294967295, %v9681_v26  ;;  %v2074_v20 = vsel %vm7867_vm12, 0, %v7473_v39  ;;  %vm7893_vm5 = vcmp.eq.s32.totalorder %v646_v57, 0  ;;  %vm9692_vm15 = vcmask 523264  }
 0x15d   : > { %9683 = vst [vmem:[#allocation21_spill] sm:$0xff] %v9682_v26  ;;  %6109 = vmatpush3.bf16.msra.mxu0 %v6463_v12  ;;  %v2507_v10 = vsel %vm9686_vm8, %v2073_v61, %v2409_v3  ;;  %vm9691_vm8 = vcmask 785408   ;;  %v5707_v61 = vcombine.low %v1979_v23, %v7026_v35  ;;  %v660_v57 = vand.u32 15, %v452_v16 }
 0x15e   : > { %v2411_v59 = vpop.permute.xlu0 %2410  ;;  %6110 = vmatprep.subr.bf16.mxu0 %v6464_v4  ;;  %vm7908_vm12 = vcmp.ne.s16.totalorder %v5706_v31, 0  ;;  %v674_v40 = vand.u32 15, %v454_v38  ;;  %v9697_v16 = vmov 0 }
 0x15f   : > { %v2510_v3 = vsel %vm9690_vm11, %v2074_v20, %v2411_v59  ;;  %vm9696_vm11 = vmmov %vm9691_vm8  ;;  %v2075_v31 = vsel %vm7908_vm12, 0, %v7476_v5 }
 0x161   : > { %v2461_v52 = vpop.permute.xlu1 %2460  ;;  %6111 = vmatpush3.bf16.msra.mxu0 %v6464_v4 }
 0x162   : > { %v7888_v24 = vsel %vm9687_vm10, %v2507_v10, %v2461_v52  ;;  %vm1945_vm10 = vmpackc.low %vm7875_vm6, %vm7875_vm6  ;;  %v9693_v10 = vmov 0  ;;  %6144 = vmatprep.subr.bf16.mxu0 %v7885_v29  ;;  %v456_v52 = vadd.s32 256, %v6919_v58  ;;  %vm7928_vm6 = vcmp.eq.s32.totalorder %v660_v57, 0 }
 0x163   : > { %6077 = vmatmul.mubr.msk.bf16.gmra.mrb[12].mxu0 %vm9691_vm8, %v7888_v24  ;;  %v2463_v37 = vpop.permute.xlu0 %2462  ;;  %v9694_v10 = vsel %vm7908_vm12, 4294967295, %v9693_v10  ;;  %vm1947_vm8 = vmpackc.low %vm7893_vm5, %vm7893_vm5  ;;  %v1981_v23 = vsel %vm1945_vm10, 65537, %v9604_v45  ;;  %vm9702_vm5 = vcmask 261120   ;;  %vm9703_vm10 = vcmask 523264  }
 0x164   : > { %v7906_v39 = vsel %vm9692_vm15, %v2510_v3, %v2463_v37  ;;  %9695 = vst [vmem:[#allocation22_spill] sm:$0xff] %v9694_v10  ;;  %vm7919_vm15 = vcmp.ne.s16.totalorder %v5707_v61, 0  ;;  %v1983_v20 = vsel %vm1947_vm8, 65537, %v9604_v45  ;;  %v5708_v37 = vcombine.low %v1981_v23, %v7026_v35  ;;  %vm9706_vm8 = vmmov %vm9702_vm5 }
 0x165   : > { %v2413_v59 = vpop.permute.xlu1 %2412  ;;  %6080 = vmatprep.mubr.msk.bf16.mxu0 %vm9696_vm11, %v7906_v39  ;;  %v9698_v16 = vsel %vm7919_vm15, 4294967295, %v9697_v16  ;;  %v2076_v26 = vsel %vm7919_vm15, 0, %v7493_v6  ;;  %vm7940_vm11 = vcmp.eq.s32.totalorder %v674_v40, 0  ;;  %vm9707_vm12 = vcmask 785408  }
 0x166   : > { %9699 = vst [vmem:[#allocation23_spill] sm:$0xff] %v9698_v16  ;;  %v2513_v3 = vsel %vm9702_vm5, %v2075_v31, %v2413_v59  ;;  %v5709_v31 = vcombine.low %v1983_v20, %v7026_v35  ;;  %vm1949_vm5 = vmpackc.low %vm7928_vm6, %vm7928_vm6  ;;  %v688_v23 = vand.u32 15, %v456_v52  ;;  %v464_v6 = vand.u32 15, %v6919_v58 }
 0x167   : > { %v2415_v4 = vpop.permute.xlu0 %2414  ;;  %vm7955_vm15 = vcmp.ne.s16.totalorder %v5708_v37, 0  ;;  %v9708_v40 = vmov 0  ;;  %v9711_v52 = vmov 0 }
 0x168   : > { %v2516_v57 = vsel %vm9706_vm8, %v2076_v26, %v2415_v4  ;;  %v9709_v40 = vsel %vm7955_vm15, 4294967295, %v9708_v40  ;;  %vm1951_vm8 = vmpackc.low %vm7940_vm11, %vm7940_vm11  ;;  %v1985_v4 = vsel %vm1949_vm5, 65537, %v9604_v45  ;;  %vm7965_vm6 = vcmp.ne.s16.totalorder %v5709_v31, 0 }
 0x169   : > { %v2465_v38 = vpop.permute.xlu1 %2464  ;;  %9710 = vst [vmem:[#allocation24_spill] sm:$0xff] %v9709_v40  ;;  %v9712_v52 = vsel %vm7965_vm6, 4294967295, %v9711_v52  ;;  %v1987_v37 = vsel %vm1951_vm8, 65537, %v9604_v45  ;;  %vm9718_vm11 = vcmask 261120   ;;  %v5710_v31 = vcombine.low %v1985_v4, %v7026_v35 }
 0x16a   : > { %v7935_v61 = vsel %vm9703_vm10, %v2513_v3, %v2465_v38  ;;  %9713 = vst [vmem:[#allocation25_spill] sm:$0xff] %v9712_v52  ;;  %v2077_v38 = vsel %vm7955_vm15, 0, %v7507_v8  ;;  %vm9719_vm5 = vcmask 523264   ;;  %v2078_v16 = vsel %vm7965_vm6, 0, %v7580_v33  ;;  %vm9720_vm15 = vmmov %vm9718_vm11 }
 0x16b   : > { %6081 = vmatmul.mubr.msk.bf16.gmra.mrb[16].mxu0 %vm9707_vm12, %v7935_v61  ;;  %vm8002_vm9 = vcmp.ne.s16.totalorder %v5710_v31, 0  ;;  %v9722_v33 = vmov 0 }
 0x16c   : > { %v2467_v59 = vpop.permute.xlu0 %2466  ;;  %v9723_v33 = vsel %vm8002_vm9, 4294967295, %v9722_v33  ;;  %v2079_v5 = vsel %vm8002_vm9, 0, %v7570_v32 }
 0x16d   : > { %v7952_v3 = vsel %vm9703_vm10, %v2516_v57, %v2467_v59  ;;  %v2417_v26 = vpop.permute.xlu1 %2416  ;;  %vm7969_vm10 = vcmp.eq.s32.totalorder %v688_v23, 0  ;;  %9724 = vst [vmem:[#allocation26_spill] sm:$0xff] %v9723_v33 }
 0x16e   : > { %6084 = vmatprep.mubr.msk.bf16.mxu0 %vm9707_vm12, %v7952_v3  ;;  %vm7977_vm12 = vcmp.eq.s32.totalorder %v464_v6, 0  ;;  %v2519_v57 = vsel %vm9718_vm11, %v2077_v38, %v2417_v26  ;;  %vm1953_vm8 = vmpackc.low %vm7969_vm10, %vm7969_vm10  ;;  %v5711_v26 = vcombine.low %v1987_v37, %v7026_v35  ;;  %v9726_v38 = vmov 0 }
 0x16f   : > { %vm1921_vm11 = vmpackc.low %vm7977_vm12, %vm7977_vm12  ;;  %vm9729_vm10 = vcmask 261120  }
 0x170   : > { %v2419_v20 = vpop.permute.xlu0 %2418  ;;  %vm9730_vm12 = vmmov %vm9719_vm5 }
 0x171   : > { %v2522_v8 = vsel %vm9720_vm15, %v2078_v16, %v2419_v20  ;;  %vm9725_vm15 = vmmov %vm9721_vm1  ;;  %v1989_v16 = vsel %vm1953_vm8, 65537, %v9604_v45  ;;  %v1957_v20 = vsel %vm1921_vm11, 65537, %v9604_v45 }
 0x172   : > { %v5712_v31 = vcombine.low %v1989_v16, %v7026_v35  ;;  %vm9731_vm8 = vmmov %vm9729_vm10  ;;  %v9733_v16 = vmov 0 }
 0x173   : > { %vm9732_vm11 = vmmov %vm9725_vm15 }
 0x174   : > { %v2469_v59 = vpop.permute.xlu1 %2468 }
 0x175   : > { %v7984_v23 = vsel %vm9719_vm5, %v2519_v57, %v2469_v59  ;;  %v2471_v6 = vpop.permute.xlu0 %2470 }
 0x176   : > { %6085 = vmatmul.mubr.msk.bf16.gmra.mrb[20].mxu0 %vm9721_vm1, %v7984_v23  ;;  %v8000_v4 = vsel %vm9719_vm5, %v2522_v8, %v2471_v6  ;;  %vm8010_vm1 = vcmp.ne.s16.totalorder %v5711_v26, 0  ;;  %v5696_v8 = vcombine.low %v1957_v20, %v7026_v35 }
 0x177   : > { %6088 = vmatprep.mubr.msk.bf16.mxu0 %vm9725_vm15, %v8000_v4  ;;  %v9727_v38 = vsel %vm8010_vm1, 4294967295, %v9726_v38  ;;  %v2080_v26 = vsel %vm8010_vm1, 0, %v7609_v48  ;;  %vm8032_vm15 = vcmp.ne.s16.totalorder %v5712_v31, 0 }
 0x178   : > { %v2421_v12 = vpop.permute.xlu1 %2420  ;;  %9728 = vst [vmem:[#allocation27_spill] sm:$0xff] %v9727_v38  ;;  %v9734_v16 = vsel %vm8032_vm15, 4294967295, %v9733_v16  ;;  %v2081_v48 = vsel %vm8032_vm15, 0, %v7603_v0 }
 0x179   : > { %v2423_v37 = vpop.permute.xlu0 %2422  ;;  %v2525_v57 = vsel %vm9729_vm10, %v2079_v5, %v2421_v12  ;;  %9735 = vst [vmem:[#allocation28_spill] sm:$0xff] %v9734_v16  ;;  %vm9736_vm10 = vmmov %vm9732_vm11 }
 0x17a   : > { %v2528_v40 = vsel %vm9731_vm8, %v2080_v26, %v2423_v37  ;;  %v6466_v26 = vld [vmem:[%s9452_s2 + $0x88] sm:$0xff]  }
 0x17c   : > { %v2473_v59 = vpop.permute.xlu1 %2472 }
 0x17d   : > { %v8021_v6 = vsel %vm9730_vm12, %v2525_v57, %v2473_v59  ;;  %v2475_v32 = vpop.permute.xlu0 %2474  ;;  %vm2047_vm12 = vcmp.ne.s16.totalorder %v5696_v8, 0 }
 0x17e   : > { %6089 = vmatmul.mubr.msk.bf16.gmra.mrb[24].mxu0 %vm9732_vm11, %v8021_v6  ;;  %v8030_v12 = vsel %vm9719_vm5, %v2528_v40, %v2475_v32  ;;  %v2065_v37 = vsel %vm2047_vm12, 0, %v7665_v49  ;;  %vm9738_vm11 = vmmov %vm9719_vm5  ;;  %v6467_v32 = vld [vmem:[%s9452_s2 + $0x90] sm:$0xff]  }
 0x17f   : > { %6092 = vmatprep.mubr.msk.bf16.mxu0 %vm9736_vm10, %v8030_v12  ;;  %vm9739_vm5 = vmmov %vm9731_vm8 }
 0x180   : > { %v2425_v20 = vpop.permute.xlu1 %2424  ;;  %vm9741_vm15 = vmmov %vm9738_vm11 }
 0x181   : > { %v8042_v5 = vpop.permute.xlu0 %2392  ;;  %v2531_v40 = vsel %vm9731_vm8, %v2081_v48, %v2425_v20  ;;  %vm9742_vm12 = vmmov %vm9736_vm10  ;;  %v6468_v20 = vld [vmem:[%s9452_s2 + $0x98] sm:$0xff]   ;;  %v6471_v48 = vld [vmem:[%s9452_s2 + $0xb0] sm:$0xff]  }
 0x182   : > { %9737 = vst [vmem:[#allocation29_spill] sm:$0xff] %v8042_v5  ;;  %v8050_v31 = vsel %vm9739_vm5, %v2065_v37, %v8042_v5  ;;  %vm9743_vm8 = vmmov %vm9736_vm10  ;;  %v6472_v37 = vld [vmem:[%s9452_s2 + $0xb8] sm:$0xff]  }
 0x183   : > { %9740 = vst [vmem:[#allocation30_spill] sm:$0xff] %v8050_v31  ;;  %vm9746_vm5 = vmmov %vm9743_vm8 }
 0x184   : > { %v2477_v57 = vpop.permute.xlu1 %2476  ;;  %vm9756_vm1 = vmmov %vm9746_vm5 }
 0x185   : > { %v8046_v59 = vsel %vm9738_vm11, %v2531_v40, %v2477_v57  ;;  %vm9744_vm11 = vmmov %vm9743_vm8  ;;  %v6473_v57 = vld [vmem:[%s9455_s5 + $0x84] ss:$8 sps:$4 sm:$0xff]  }
 0x186   : > { %6093 = vmatmul.mubr.msk.bf16.gmra.mrb[28].mxu0 %vm9736_vm10, %v8046_v59  ;;  %vm9747_vm10 = vmmov %vm9746_vm5  ;;  %6192 = vmatprep.subr.bf16.mxu1 %v6473_v57 }
 0x187   : > { %vm9767_vm9 = vmmov %vm9756_vm1 }
 0x188   : > { %v2445_v8 = vpop.permute.xlu1 %2444 }
 0x189   : > { %v2536_v0 = vsel %vm9741_vm15, %v8050_v31, %v2445_v8  ;;  %vm9745_vm15 = vmmov %vm9743_vm8 }
 0x18a   : > { %6112 = vmatprep.mubr.msk.bf16.mxu0 %vm9742_vm12, %v2536_v0  ;;  %vm9748_vm12 = vmmov %vm9746_vm5 }
 0x18e   : > { %6113 = vmatmul.mubr.msk.bf16.vlgmr.msra.gmra.mrb[0].mxu0 %vm9743_vm8, %v7703_v42  ;;  %v6469_v42 = vld [vmem:[%s9452_s2 + $0xa0] sm:$0xff]   ;;  %vm9749_vm8 = vmmov %vm9746_vm5 }
 0x18f   : > { %6145 = vmatpush3.bf16.msra.mxu0 %v7885_v29  ;;  %6116 = vmatprep.mubr.msk.bf16.mxu0 %vm9744_vm11, %v7716_v43  ;;  %v6470_v29 = vld [vmem:[%s9452_s2 + $0xa8] sm:$0xff]   ;;  %vm9750_vm11 = vmmov %vm9746_vm5 }
 0x190   : > { %6146 = vmatprep.subr.bf16.mxu0 %v6466_v26 }
 0x193   : > { %6147 = vmatpush3.bf16.msra.mxu0 %v6466_v26 }
 0x194   : > { %6148 = vmatprep.subr.bf16.mxu0 %v6467_v32 }
 0x196   : > { %6117 = vmatmul.mubr.msk.bf16.gmra.mrb[4].mxu0 %vm9745_vm15, %v7755_v18  ;;  %vm9751_vm15 = vmmov %vm9746_vm5 }
 0x197   : > { %6120 = vmatprep.mubr.msk.bf16.mxu0 %vm9746_vm5, %v7767_v36  ;;  %6149 = vmatpush3.bf16.msra.mxu0 %v6467_v32  ;;  %v6476_v32 = vld [vmem:[%s9455_s5 + $0x94] ss:$8 sps:$4 sm:$0xff]  }
 0x198   : > { %6150 = vmatprep.subr.bf16.mxu0 %v6468_v20 }
 0x19b   : > { %6151 = vmatpush3.bf16.msra.mxu0 %v6468_v20 }
 0x19c   : > { %6152 = vmatprep.subr.bf16.mxu0 %v6469_v42 }
 0x19e   : > { %6121 = vmatmul.mubr.msk.bf16.gmra.mrb[8].mxu0 %vm9747_vm10, %v7800_v11  ;;  %vm9752_vm10 = vmmov %vm9746_vm5 }
 0x19f   : > { %6124 = vmatprep.mubr.msk.bf16.mxu0 %vm9748_vm12, %v7834_v46  ;;  %6153 = vmatpush3.bf16.msra.mxu0 %v6469_v42  ;;  %vm9753_vm12 = vmmov %vm9746_vm5 }
 0x1a0   : > { %6154 = vmatprep.subr.bf16.mxu0 %v6470_v29 }
 0x1a3   : > { %6155 = vmatpush3.bf16.msra.mxu0 %v6470_v29 }
 0x1a4   : > { %6156 = vmatprep.subr.bf16.mxu0 %v6471_v48 }
 0x1a6   : > { %6125 = vmatmul.mubr.msk.bf16.gmra.mrb[12].mxu0 %vm9749_vm8, %v7852_v44  ;;  %vm9754_vm8 = vmmov %vm9746_vm5 }
 0x1a7   : > { %6128 = vmatprep.mubr.msk.bf16.mxu0 %vm9750_vm11, %v7888_v24  ;;  %6157 = vmatpush3.bf16.msra.mxu0 %v6471_v48  ;;  %vm9755_vm11 = vmmov %vm9746_vm5  ;;  %v6478_v48 = vld [vmem:[%s9455_s5 + $0x90] ss:$8 sps:$4 sm:$0xff]  }
 0x1a8   : > { %6158 = vmatprep.subr.bf16.mxu0 %v6472_v37 }
 0x1ab   : > { %6159 = vmatpush3.bf16.msra.mxu0 %v6472_v37 }
 0x1ac   : > { %4017 = vmatprep.subr.bf16.mxu0 %v6473_v57  ;;  %v6482_v57 = vld [vmem:[%s9455_s5 + $0xb4] ss:$8 sps:$4 sm:$0xff]  }
 0x1ae   : > { %6129 = vmatmul.mubr.msk.bf16.gmra.mrb[16].mxu0 %vm9751_vm15, %v7906_v39  ;;  %vm9757_vm15 = vmmov %vm9756_vm1 }
 0x1af   : > { %6132 = vmatprep.mubr.msk.bf16.mxu0 %vm9746_vm5, %v7935_v61  ;;  %vm9758_vm5 = vmmov %vm9756_vm1 }
 0x1b6   : > { %6133 = vmatmul.mubr.msk.bf16.gmra.mrb[20].mxu0 %vm9752_vm10, %v7952_v3  ;;  %vm9759_vm10 = vmmov %vm9756_vm1 }
 0x1b7   : > { %6136 = vmatprep.mubr.msk.bf16.mxu0 %vm9753_vm12, %v7984_v23  ;;  %vm9760_vm12 = vmmov %vm9756_vm1 }
 0x1be   : > { %6137 = vmatmul.mubr.msk.bf16.gmra.mrb[24].mxu0 %vm9754_vm8, %v8000_v4  ;;  %vm9761_vm8 = vmmov %vm9756_vm1 }
 0x1bf   : > { %6140 = vmatprep.mubr.msk.bf16.mxu0 %vm9755_vm11, %v8021_v6  ;;  %vm9762_vm11 = vmmov %vm9756_vm1 }
 0x1c6   : > { %6141 = vmatmul.mubr.msk.bf16.gmra.mrb[28].mxu0 %vm9756_vm1, %v8030_v12 }
 0x1c7   : > { %6160 = vmatprep.mubr.msk.bf16.mxu0 %vm9757_vm15, %v7716_v43  ;;  %vm9763_vm15 = vmmov %vm9756_vm1  ;;  %v458_v43 = vadd.s32 272, %v6919_v58 }
 0x1ce   : > { %6161 = vmatmul.mubr.msk.bf16.vlgmr.msra.gmra.mrb[0].mxu0 %vm9758_vm5, %v7755_v18  ;;  %vm9764_vm5 = vmmov %vm9756_vm1  ;;  %v702_v18 = vand.u32 15, %v458_v43  ;;  %v6479_v43 = vld [vmem:[%s9455_s5 + $0xa4] ss:$8 sps:$4 sm:$0xff]  }
 0x1cf   : > { %6164 = vmatprep.mubr.msk.bf16.mxu0 %vm9759_vm10, %v7767_v36  ;;  %vm9765_vm10 = vmmov %vm9756_vm1 }
 0x1d6   : > { %6165 = vmatmul.mubr.msk.bf16.gmra.mrb[4].mxu0 %vm9760_vm12, %v7800_v11  ;;  %vm9766_vm12 = vmmov %vm9756_vm1 }
 0x1d7   : > { %6168 = vmatprep.mubr.msk.bf16.mxu0 %vm9761_vm8, %v7834_v46  ;;  %vm926_vm8 = vcmp.eq.s32.totalorder %v702_v18, 0 }
 0x1de   : > { %6169 = vmatmul.mubr.msk.bf16.gmra.mrb[8].mxu0 %vm9762_vm11, %v7852_v44  ;;  %vm1955_vm11 = vmpackc.low %vm926_vm8, %vm926_vm8  ;;  %v9771_v44 = vmov 0  ;;  %vm9776_vm8 = vcmask 523264  }
 0x1df   : > { %6172 = vmatprep.mubr.msk.bf16.mxu0 %vm9756_vm1, %v7888_v24  ;;  %v1991_v36 = vsel %vm1955_vm11, 65537, %v9604_v45  ;;  %v8149_v24 = vpop.permute.xlu0 %2478  ;;  %vm9777_vm11 = vmmov %vm9756_vm1 }
 0x1e0   : > { %v5713_v11 = vcombine.low %v1991_v36, %v7026_v35  ;;  %9774 = vst [vmem:[#allocation32_spill] sm:$0xff] %v8149_v24 }
 0x1e6   : > { %6173 = vmatmul.mubr.msk.bf16.gmra.mrb[12].mxu0 %vm9763_vm15, %v7906_v39  ;;  %vm9768_vm15 = vmmov %vm9756_vm1 }
 0x1e7   : > { %6176 = vmatprep.mubr.msk.bf16.mxu0 %vm9764_vm5, %v7935_v61  ;;  %vm9769_vm5 = vmmov %vm9756_vm1 }
 0x1ee   : > { %6177 = vmatmul.mubr.msk.bf16.gmra.mrb[16].mxu0 %vm9765_vm10, %v7952_v3  ;;  %vm9770_vm10 = vsmask.f32 256  ;;  %v8167_v3 = vld [vmem:[%s9454_s4] ss:$0 sm:$0xff] }
 0x1ef   : > { %6180 = vmatprep.mubr.msk.bf16.mxu0 %vm9766_vm12, %v7984_v23  ;;  %v1827_v46 = vsel %vm9770_vm10, %v7562_v54, %v7665_v49  ;;  %vm8145_vm12 = vcmp.ne.s16.totalorder %v5713_v11, 0  ;;  %v8162_v54 = vld [vmem:[%s9453_s3] ss:$0 sm:$0xff] }
 0x1f0   : > { %v9772_v44 = vsel %vm8145_vm12, 4294967295, %v9771_v44  ;;  %v2082_v39 = vsel %vm8145_vm12, 0, %v1827_v46 }
 0x1f1   : > { %9773 = vst [vmem:[#allocation31_spill] sm:$0xff] %v9772_v44 }
 0x1f6   : > { %6181 = vmatmul.mubr.msk.bf16.gmra.mrb[20].mxu0 %vm9767_vm9, %v8000_v4  ;;  %vm9775_vm9 = vcmask 261120  }
 0x1f7   : > { %6184 = vmatprep.mubr.msk.bf16.mxu0 %vm9756_vm1, %v8021_v6  ;;  %v2533_v35 = vsel %vm9775_vm9, %v2082_v39, %v8042_v5  ;;  %vm9779_vm1 = vmmov %vm9770_vm10 }
 0x1f8   : > { %v2570_v61 = vsel %vm9776_vm8, %v2533_v35, %v8149_v24  ;;  %vm9784_vm9 = vmmov %vm9779_vm1 }
 0x1fe   : > { %6185 = vmatmul.mubr.msk.bf16.gmra.mrb[24].mxu0 %vm9768_vm15, %v8030_v12  ;;  %vm9781_vm15 = vsmask.f32 7424 }
 0x1ff   : > { %6188 = vmatprep.mubr.msk.bf16.mxu0 %vm9769_vm5, %v8046_v59  ;;  %v6475_v59 = vld [vmem:[%s9455_s5 + $0x80] ss:$8 sps:$4 sm:$0xff]   ;;  %vm9782_vm5 = vmmov %vm9781_vm15 }
 0x200   : > { %6200 = vmatpush1.bf16.msra.mxu1 %v6475_v59  ;;  %4018 = vmatpush1.bf16.msra.mxu0 %v6475_v59  ;;  %vm9783_vm10 = vmmov %vm9782_vm5 }
 0x201   : > { %6193 = vmatprep.subr.bf16.mxu1 %v6476_v32  ;;  %4019 = vmatprep.subr.bf16.mxu0 %v6476_v32  ;;  %vm9786_vm8 = vmmov %vm9782_vm5 }
 0x204   : > { %6201 = vmatpush1.bf16.msra.mxu1 %v6478_v48  ;;  %4020 = vmatpush1.bf16.msra.mxu0 %v6478_v48 }
 0x205   : > { %6194 = vmatprep.subr.bf16.mxu1 %v6479_v43  ;;  %4021 = vmatprep.subr.bf16.mxu0 %v6479_v43 }
 0x206   : > { %6189 = vmatmul.mubr.msk.bf16.gmra.mrb[28].mxu0 %vm9777_vm11, %v2570_v61  ;;  %vm9788_vm11 = vmmov %vm9779_vm1 }
 0x207   : > { %4049 = vmatprep.mubr.bf16.mxu0 %v9604_v45 }
 0x2a1   : > { %v6162_v23 = vpop.f32.mrb[0].mxu0 }
 0x2a2   : > { %v3323_v4 = vmul.f32 %v6162_v23, %v8162_v54  ;;  %v3156_v6 = vpop.f32.mrb[1].mxu0 }
 0x2a3   : > { %v3321_v12 = vmul.f32 %v8162_v54, %v3156_v6  ;;  %v6163_v40 = vpop.f32.mrb[2].mxu0 }
 0x2a4   : > { %v3361_v8 = vadd.f32 %v8167_v3, %v3323_v4  ;;  %v3324_v0 = vmul.f32 %v6163_v40, %v8162_v54  ;;  %v3159_v26 = vpop.f32.mrb[3].mxu0  ;;  %v6481_v4 = vld [vmem:[%s9455_s5 + $0xa0] ss:$8 sps:$4 sm:$0xff]  }
 0x2a5   : > { %v3359_v20 = vadd.f32 %v8167_v3, %v3321_v12  ;;  %v3322_v42 = vmul.f32 %v8162_v54, %v3159_v26  ;;  %6202 = vmatpush1.bf16.msra.mxu1 %v6481_v4  ;;  %4022 = vmatpush1.bf16.msra.mxu0 %v6481_v4 }
 0x2a6   : > { %v3362_v29 = vadd.f32 %v8167_v3, %v3324_v0  ;;  %v3393_v18 = vmax.f32 %v3361_v8, 0.0  ;;  %6195 = vmatprep.subr.bf16.mxu1 %v6482_v57  ;;  %4023 = vmatprep.subr.bf16.mxu0 %v6482_v57  ;;  %v6487_v57 = vld [vmem:[%s9455_s5 + $0xc0] ss:$8 sps:$4 sm:$0xff]  }
 0x2a7   : > { %v3360_v37 = vadd.f32 %v8167_v3, %v3322_v42  ;;  %v3391_v11 = vmax.f32 %v3359_v20, 0.0 }
 0x2a8   : > { %v3394_v36 = vmax.f32 %v3362_v29, 0.0 }
 0x2a9   : > { %v3392_v46 = vmax.f32 %v3360_v37, 0.0  ;;  %v6166_v39 = vpop.f32.mrb[4].mxu0 }
 0x2aa   : > { %v8192_v35 = vpack.c.bf16 %v3394_v36, %v3393_v18  ;;  %v3327_v61 = vmul.f32 %v6166_v39, %v8162_v54  ;;  %v3172_v23 = vpop.f32.mrb[5].mxu0  ;;  %v6484_v18 = vld [vmem:[%s9455_s5 + $0xb0] ss:$8 sps:$4 sm:$0xff]   ;;  %v6485_v39 = vld [vmem:[%s9455_s5 + $0xc4] ss:$8 sps:$4 sm:$0xff]  }
 0x2ab   : > { %v8198_v6 = vpack.c.bf16 %v3392_v46, %v3391_v11  ;;  %v3325_v12 = vmul.f32 %v8162_v54, %v3172_v23  ;;  %v6167_v40 = vpop.f32.mrb[6].mxu0  ;;  %6203 = vmatpush1.bf16.msra.mxu1 %v6484_v18  ;;  %4024 = vmatpush1.bf16.msra.mxu0 %v6484_v18 }
 0x2ac   : > { %v3365_v59 = vadd.f32 %v8167_v3, %v3327_v61  ;;  %v3328_v8 = vmul.f32 %v6167_v40, %v8162_v54  ;;  %v3175_v0 = vpop.f32.mrb[7].mxu0  ;;  %v3451_v26 = vshll.u32 %v8192_v35, 16  ;;  %v3448_v32 = vshrl.u32 %v8192_v35, 16  ;;  %6196 = vmatprep.subr.bf16.mxu1 %v6485_v39  ;;  %4025 = vmatprep.subr.bf16.mxu0 %v6485_v39 }
 0x2ad   : > { %v3363_v20 = vadd.f32 %v8167_v3, %v3325_v12  ;;  %v3326_v42 = vmul.f32 %v8162_v54, %v3175_v0  ;;  %v3443_v29 = vshll.u32 %v8198_v6, 16  ;;  %v3440_v48 = vshrl.u32 %v8198_v6, 16 }
 0x2ae   : > { %v3366_v37 = vadd.f32 %v8167_v3, %v3328_v8  ;;  %v8213_v43 = vrot.slane %v3448_v32, 7  ;;  %v3397_v61 = vmax.f32 %v3365_v59, 0.0  ;;  %v3605_v12 = vrot.slane %v3451_v26, 1 }
 0x2af   : > { %v3364_v36 = vadd.f32 %v8167_v3, %v3326_v42  ;;  %v8219_v11 = vrot.slane %v3443_v29, 1  ;;  %v3442_v46 = vrot.slane %v3440_v48, 7  ;;  %v3395_v8 = vmax.f32 %v3363_v20, 0.0  ;;  %6204 = vmatpush1.bf16.msra.mxu1 %v6487_v57  ;;  %4026 = vmatpush1.bf16.msra.mxu0 %v6487_v57 }
 0x2b0   : > { %v3398_v23 = vmax.f32 %v3366_v37, 0.0  ;;  %v3453_v40 = vor.u32 %v3451_v26, %v8213_v43 }
 0x2b1   : > { %v3396_v0 = vmax.f32 %v3364_v36, 0.0  ;;  %v6170_v58 = vpop.f32.mrb[8].mxu0  ;;  %v3604_v4 = vor.u32 %v8219_v11, %v3440_v48  ;;  %v8226_v42 = vor.u32 %v3443_v29, %v3442_v46 }
 0x2b2   : > { %v8228_v24 = vpack.c.bf16 %v3398_v23, %v3397_v61  ;;  %v3331_v5 = vmul.f32 %v6170_v58, %v8162_v54  ;;  %v3188_v44 = vpop.f32.mrb[9].mxu0  ;;  %v8235_v59 = vsel %vm9779_vm1, %v3442_v46, %v3453_v40  ;;  %v6488_v58 = vld [vmem:[%s9455_s5 + $0xd4] ss:$8 sps:$4 sm:$0xff]   ;;  %vm9791_vm1 = vmmov %vm9782_vm5 }
 0x2b3   : > { %9778 = vst [vmem:[#allocation33_spill] sm:$0xff] %v8226_v42  ;;  %9780 = vst [vmem:[#allocation34_spill] sm:$0xff] %v8235_v59  ;;  %v8237_v26 = vpack.c.bf16 %v3396_v0, %v3395_v8  ;;  %v3329_v20 = vmul.f32 %v8162_v54, %v3188_v44  ;;  %v6171_v29 = vpop.f32.mrb[10].mxu0  ;;  %v8241_v48 = vsel %vm9781_vm15, %v3604_v4, %v3605_v12  ;;  %6197 = vmatprep.subr.bf16.mxu1 %v6488_v58 }
 0x2b4   : > { %v3369_v37 = vadd.f32 %v8167_v3, %v3331_v5  ;;  %v3332_v18 = vmul.f32 %v6171_v29, %v8162_v54  ;;  %v3191_v36 = vpop.f32.mrb[11].mxu0  ;;  %v3467_v46 = vshll.u32 %v8228_v24, 16  ;;  %v3464_v0 = vshrl.u32 %v8228_v24, 16  ;;  %v6490_v5 = vld [vmem:[%s9455_s5 + $0xd0] ss:$8 sps:$4 sm:$0xff]   ;;  %4027 = vmatprep.subr.bf16.mxu0 %v6488_v58  ;;  %vm9792_vm15 = vmmov %vm9791_vm1 }
 0x2b5   : > { %v3367_v61 = vadd.f32 %v8167_v3, %v3329_v20  ;;  %v3330_v44 = vmul.f32 %v8162_v54, %v3191_v36  ;;  %v3459_v23 = vshll.u32 %v8237_v26, 16  ;;  %v3456_v40 = vshrl.u32 %v8237_v26, 16  ;;  %6205 = vmatpush1.bf16.msra.mxu1 %v6490_v5  ;;  %4028 = vmatpush1.bf16.msra.mxu0 %v6490_v5 }
 0x2b6   : > { %v3370_v8 = vadd.f32 %v8167_v3, %v3332_v18  ;;  %v3607_v4 = vor.u32 %v3605_v12, %v3448_v32  ;;  %v3401_v36 = vmax.f32 %v3369_v37, 0.0  ;;  %v3611_v19 = vrot.slane %v3467_v46, 1 }
 0x2b7   : > { %v3368_v39 = vadd.f32 %v8167_v3, %v3330_v44  ;;  %v3608_v20 = vrot.slane %v3459_v23, 1  ;;  %v3458_v29 = vrot.slane %v3456_v40, 7  ;;  %v8259_v1 = vrot.slane %v3464_v0, 7 }
 0x2b8   : > { %v3402_v10 = vmax.f32 %v3370_v8, 0.0  ;;  %v3399_v18 = vmax.f32 %v3367_v61, 0.0 }
 0x2b9   : > { %v3400_v63 = vmax.f32 %v3368_v39, 0.0  ;;  %v6174_v25 = vpop.f32.mrb[12].mxu0  ;;  %v8262_v50 = vsel %vm9782_vm5, %v3607_v4, %v3608_v20  ;;  %v3610_v31 = vor.u32 %v3608_v20, %v3456_v40  ;;  %v3461_v58 = vor.u32 %v3459_v23, %v3458_v29  ;;  %vm9793_vm5 = vmmov %vm9784_vm9 }
 0x2ba   : > { %v8264_v57 = vpack.c.bf16 %v3402_v10, %v3401_v36  ;;  %v3335_v32 = vmul.f32 %v6174_v25, %v8162_v54  ;;  %v3204_v12 = vpop.f32.mrb[13].mxu0  ;;  %v3469_v39 = vor.u32 %v3467_v46, %v8259_v1  ;;  %v3613_v36 = vor.u32 %v3611_v19, %v3464_v0 }
 0x2bb   : > { %v8267_v37 = vpack.c.bf16 %v3400_v63, %v3399_v18  ;;  %v3333_v44 = vmul.f32 %v8162_v54, %v3204_v12  ;;  %v6175_v8 = vpop.f32.mrb[14].mxu0  ;;  %v8271_v61 = vsel %vm9783_vm10, %v3610_v31, %v3611_v19  ;;  %vm9796_vm10 = vmmov %vm9791_vm1  ;;  %v3670_v22 = vsel %vm7133_vm4, 0, %v8262_v50 }
 0x2bc   : > { %v3373_v40 = vadd.f32 %v8167_v3, %v3335_v32  ;;  %v3336_v10 = vmul.f32 %v6175_v8, %v8162_v54  ;;  %v3207_v4 = vpop.f32.mrb[15].mxu0  ;;  %v3483_v25 = vshll.u32 %v8264_v57, 16  ;;  %v3480_v15 = vshrl.u32 %v8264_v57, 16 }
 0x2bd   : > { %v3371_v5 = vadd.f32 %v8167_v3, %v3333_v44  ;;  %v3334_v63 = vmul.f32 %v8162_v54, %v3207_v4  ;;  %v3475_v23 = vshll.u32 %v8267_v37, 16  ;;  %v3472_v32 = vshrl.u32 %v8267_v37, 16 }
 0x2be   : > { %v3374_v20 = vadd.f32 %v8167_v3, %v3336_v10  ;;  %v3405_v31 = vmax.f32 %v3373_v40, 0.0  ;;  %v3617_v8 = vrot.slane %v3483_v25, 1  ;;  %v8286_v44 = vsel %vm9784_vm9, %v8213_v43, %v3461_v58  ;;  %vm9798_vm9 = vmmov %vm9793_vm5 }
 0x2bf   : > { %v3372_v18 = vadd.f32 %v8167_v3, %v3334_v63  ;;  %v3614_v46 = vrot.slane %v3475_v23, 1  ;;  %9785 = vst [vmem:[#allocation35_spill] sm:$0xff] %v8286_v44  ;;  %v3403_v4 = vmax.f32 %v3371_v5, 0.0  ;;  %vm9831_vm4 = vnez %v9572_v53 }
 0x2c0   : > { %v3406_v12 = vmax.f32 %v3374_v20, 0.0  ;;  %v8295_v20 = vsel %vm9788_vm11, %v3458_v29, %v3469_v39  ;;  %vm9802_vm11 = vmmov %vm9791_vm1 }
 0x2c1   : > { %v3404_v7 = vmax.f32 %v3372_v18, 0.0  ;;  %v6178_v59 = vpop.f32.mrb[16].mxu0  ;;  %v8289_v10 = vsel %vm9786_vm8, %v3613_v36, %v3614_v46  ;;  %v3616_v19 = vor.u32 %v3614_v46, %v3472_v32  ;;  %9789 = vst [vmem:[#allocation37_spill] sm:$0xff] %v8295_v20  ;;  %v3474_v46 = vrot.slane %v3472_v32, 7  ;;  %vm9800_vm8 = vmmov %vm9791_vm1 }
 0x2c2   : > { %v8291_v0 = vpack.c.bf16 %v3406_v12, %v3405_v31  ;;  %v3339_v40 = vmul.f32 %v6178_v59, %v8162_v54  ;;  %v3220_v63 = vpop.f32.mrb[17].mxu0 }
 0x2c3   : > { %v8297_v16 = vpack.c.bf16 %v3404_v7, %v3403_v4  ;;  %v3337_v43 = vmul.f32 %v8162_v54, %v3220_v63  ;;  %v6179_v58 = vpop.f32.mrb[18].mxu0  ;;  %v8301_v5 = vsel %vm9791_vm1, %v3616_v19, %v3617_v8  ;;  %v8308_v7 = vrot.slane %v3480_v15, 7  ;;  %vm9805_vm1 = vmmov %vm9793_vm5 }
 0x2c4   : > { %9787 = vst [vmem:[#allocation36_spill] sm:$0xff] %v8291_v0  ;;  %v3377_v36 = vadd.f32 %v8167_v3, %v3339_v40  ;;  %v3340_v18 = vmul.f32 %v6179_v58, %v8162_v54  ;;  %v3223_v31 = vpop.f32.mrb[19].mxu0  ;;  %v9518_v59 = vshll.u32 %v8291_v0, 16  ;;  %v3619_v19 = vor.u32 %v3617_v8, %v3480_v15 }
 0x2c5   : > { %9790 = vst [vmem:[#allocation38_spill] sm:$0xff] %v8297_v16  ;;  %v3375_v12 = vadd.f32 %v8167_v3, %v3337_v43  ;;  %v3338_v29 = vmul.f32 %v8162_v54, %v3223_v31  ;;  %v3491_v39 = vshll.u32 %v8297_v16, 16  ;;  %v3488_v58 = vshrl.u32 %v8297_v16, 16 }
 0x2c6   : > { %v3378_v4 = vadd.f32 %v8167_v3, %v3340_v18  ;;  %v3409_v63 = vmax.f32 %v3377_v36, 0.0  ;;  %v3623_v43 = vrot.slane %v9518_v59, 1  ;;  %v3477_v62 = vor.u32 %v3475_v23, %v3474_v46 }
 0x2c7   : > { %v3376_v40 = vadd.f32 %v8167_v3, %v3338_v29  ;;  %v3620_v20 = vrot.slane %v3491_v39, 1  ;;  %v3407_v32 = vmax.f32 %v3375_v12, 0.0  ;;  %v3485_v15 = vor.u32 %v3483_v25, %v8308_v7 }
 0x2c8   : > { %v3410_v44 = vmax.f32 %v3378_v4, 0.0  ;;  %v8325_v12 = vsel %vm9793_vm5, %v8259_v1, %v3477_v62  ;;  %v9809_v14 = vshll.u32 %v8291_v0, 16  ;;  %vm9810_vm5 = vmmov %vm9800_vm8  ;;  %v3673_v34 = vsel %vm9831_vm4, 0, %v8301_v5  ;;  %v9849_v5 = vld [vmem:[#allocation11_spill] sm:$0xff] }
 0x2c9   : > { %v3408_v31 = vmax.f32 %v3376_v40, 0.0  ;;  %v6182_v49 = vpop.f32.mrb[20].mxu0  ;;  %v8317_v42 = vsel %vm9792_vm15, %v3619_v19, %v3620_v20  ;;  %v3622_v38 = vor.u32 %v3620_v20, %v3488_v58  ;;  %9794 = vst [vmem:[#allocation39_spill] sm:$0xff] %v8325_v12  ;;  %vm9807_vm15 = vmmov %vm9800_vm8 }
 0x2ca   : > { %v8320_v8 = vpack.c.bf16 %v3410_v44, %v3409_v63  ;;  %v3343_v36 = vmul.f32 %v6182_v49, %v8162_v54  ;;  %v3236_v18 = vpop.f32.mrb[21].mxu0  ;;  %v3496_v49 = vshrl.u32 %v8291_v0, 16 }
 0x2cb   : > { %v8327_v29 = vpack.c.bf16 %v3408_v31, %v3407_v32  ;;  %v3341_v23 = vmul.f32 %v8162_v54, %v3236_v18  ;;  %v6183_v4 = vpop.f32.mrb[22].mxu0  ;;  %v8331_v19 = vsel %vm9796_vm10, %v3622_v38, %v3623_v43  ;;  %v8341_v31 = vrot.slane %v3488_v58, 7  ;;  %v6493_v58 = vld [vmem:[%s9455_s5 + $0xe0] ss:$8 sps:$4 sm:$0xff]   ;;  %vm9813_vm10 = vmmov %vm9810_vm5 }
 0x2cc   : > { %v3381_v20 = vadd.f32 %v8167_v3, %v3343_v36  ;;  %v3344_v25 = vmul.f32 %v6183_v4, %v8162_v54  ;;  %v3239_v44 = vpop.f32.mrb[23].mxu0  ;;  %v3625_v38 = vor.u32 %v3623_v43, %v3496_v49  ;;  %v8356_v43 = vsel %vm9798_vm9, %v3474_v46, %v3485_v15  ;;  %vm9815_vm9 = vmmov %vm9805_vm1 }
 0x2cd   : > { %9795 = vst [vmem:[#allocation40_spill] sm:$0xff] %v8327_v29  ;;  %v3379_v62 = vadd.f32 %v8167_v3, %v3341_v23  ;;  %v3342_v1 = vmul.f32 %v8162_v54, %v3239_v44  ;;  %v9519_v40 = vshll.u32 %v8327_v29, 16  ;;  %v3504_v59 = vshrl.u32 %v8327_v29, 16  ;;  %v6491_v44 = vld [vmem:[%s9455_s5 + $0xe4] ss:$8 sps:$4 sm:$0xff]   ;;  %9799 = vst [vmem:[#allocation41_spill] sm:$0xff] %v8356_v43 }
 0x2ce   : > { %v3382_v32 = vadd.f32 %v8167_v3, %v3344_v25  ;;  %v3413_v18 = vmax.f32 %v3381_v20, 0.0  ;;  %v9797_v23 = vshll.u32 %v8320_v8, 16  ;;  %6198 = vmatprep.subr.bf16.mxu1 %v6491_v44  ;;  %4029 = vmatprep.subr.bf16.mxu0 %v6491_v44  ;;  %v3493_v52 = vor.u32 %v3491_v39, %v8341_v31  ;;  %v6494_v39 = vld [vmem:[%s9455_s5 + $0xf4] ss:$8 sps:$4 sm:$0xff]  }
 0x2cf   : > { %v3380_v36 = vadd.f32 %v8167_v3, %v3342_v1  ;;  %v3626_v4 = vrot.slane %v9519_v40, 1  ;;  %v3411_v20 = vmax.f32 %v3379_v62, 0.0  ;;  %6206 = vmatpush1.bf16.msra.mxu1 %v6493_v58  ;;  %4030 = vmatpush1.bf16.msra.mxu0 %v6493_v58  ;;  %v9524_v44 = vshrl.u32 %v8320_v8, 16  ;;  %v6496_v58 = vld [vmem:[%s9455_s5 + $0xf0] ss:$8 sps:$4 sm:$0xff]  }
 0x2d0   : > { %v3414_v63 = vmax.f32 %v3382_v32, 0.0  ;;  %v3629_v12 = vrot.slane %v9797_v23, 1  ;;  %6199 = vmatprep.subr.bf16.mxu1 %v6494_v39  ;;  %4031 = vmatprep.subr.bf16.mxu0 %v6494_v39  ;;  %v6499_v39 = vld [vmem:[%s9455_s5 + $0x4] ss:$8 sps:$4 sm:$0xff]  }
 0x2d1   : > { %v3412_v25 = vmax.f32 %v3380_v36, 0.0  ;;  %v6186_v1 = vpop.f32.mrb[24].mxu0  ;;  %v8359_v40 = vsel %vm9800_vm8, %v3625_v38, %v3626_v4  ;;  %v3628_v32 = vor.u32 %v3626_v4, %v3504_v59  ;;  %vm9816_vm8 = vmmov %vm9805_vm1 }
 0x2d2   : > { %9801 = vst [vmem:[#allocation42_spill] sm:$0xff] %v8359_v40  ;;  %v8361_v33 = vpack.c.bf16 %v3414_v63, %v3413_v18  ;;  %v3347_v23 = vmul.f32 %v6186_v1, %v8162_v54  ;;  %v3252_v45 = vpop.f32.mrb[25].mxu0  ;;  %v8385_v1 = vrot.slane %v3496_v49, 7 }
 0x2d3   : > { %v8365_v27 = vpack.c.bf16 %v3412_v25, %v3411_v20  ;;  %v3345_v46 = vmul.f32 %v8162_v54, %v3252_v45  ;;  %v6187_v15 = vpop.f32.mrb[26].mxu0  ;;  %v8369_v62 = vsel %vm9802_vm11, %v3628_v32, %v3629_v12  ;;  %v8387_v32 = vrot.slane %v3504_v59, 7  ;;  %6207 = vmatpush1.bf16.msra.mxu1 %v6496_v58  ;;  %4032 = vmatpush1.bf16.msra.mxu0 %v6496_v58  ;;  %vm9817_vm11 = vmmov %vm9810_vm5 }
 0x2d4   : > { %9803 = vst [vmem:[#allocation43_spill] sm:$0xff] %v8369_v62  ;;  %v3385_v63 = vadd.f32 %v8167_v3, %v3347_v23  ;;  %v3348_v38 = vmul.f32 %v6187_v15, %v8162_v54  ;;  %v3255_v18 = vpop.f32.mrb[27].mxu0  ;;  %v9804_v49 = vshll.u32 %v8361_v33, 16  ;;  %4290 = vmatprep.subr.bf16.mxu1 %v6499_v39  ;;  %v3501_v47 = vor.u32 %v9809_v14, %v8385_v1 }
 0x2d5   : > { %v3383_v4 = vadd.f32 %v8167_v3, %v3345_v46  ;;  %v3346_v45 = vmul.f32 %v8162_v54, %v3255_v18  ;;  %v9525_v20 = vshll.u32 %v8365_v27, 16  ;;  %v3631_v46 = vor.u32 %v3629_v12, %v9524_v44 }
 0x2d6   : > { %v3386_v25 = vadd.f32 %v8167_v3, %v3348_v38  ;;  %v3520_v18 = vshrl.u32 %v8365_v27, 16  ;;  %v3417_v36 = vmax.f32 %v3385_v63, 0.0  ;;  %v3635_v59 = vrot.slane %v9804_v49, 1 }
 0x2d7   : > { %v3384_v23 = vadd.f32 %v8167_v3, %v3346_v45  ;;  %v3632_v15 = vrot.slane %v9525_v20, 1  ;;  %v8402_v45 = vsel %vm9805_vm1, %v8308_v7, %v3493_v52  ;;  %v3415_v12 = vmax.f32 %v3383_v4, 0.0 }
 0x2d8   : > { %v3418_v38 = vmax.f32 %v3386_v25, 0.0  ;;  %9806 = vst [vmem:[#allocation44_spill] sm:$0xff] %v8402_v45  ;;  %v3528_v49 = vshrl.u32 %v8361_v33, 16 }
 0x2d9   : > { %v3416_v44 = vmax.f32 %v3384_v23, 0.0  ;;  %v6190_v20 = vpop.f32.mrb[28].mxu0  ;;  %v8405_v43 = vsel %vm9807_vm15, %v3631_v46, %v3632_v15  ;;  %v3634_v58 = vor.u32 %v3632_v15, %v3520_v18  ;;  %v9812_v46 = vshll.u32 %v8327_v29, 16  ;;  %vm9818_vm15 = vmmov %vm9805_vm1  ;;  %v9834_v53 = vld [vmem:[#allocation42_spill] sm:$0xff] }
 0x2da   : > { %9808 = vst [vmem:[#allocation45_spill] sm:$0xff] %v8405_v43  ;;  %v3351_v63 = vmul.f32 %v6190_v20, %v8162_v54  ;;  %v3268_v25 = vpop.f32.mrb[29].mxu0  ;;  %v3436_v56 = vpack.c.bf16 %v3418_v38, %v3417_v36  ;;  %v3637_v29 = vor.u32 %v3635_v59, %v3528_v49 }
 0x2db   : > { %v3349_v52 = vmul.f32 %v8162_v54, %v3268_v25  ;;  %v6191_v7 = vpop.f32.mrb[30].mxu0  ;;  %v3435_v4 = vpack.c.bf16 %v3416_v44, %v3415_v12  ;;  %v8414_v23 = vsel %vm9810_vm5, %v3634_v58, %v3635_v59  ;;  %v3509_v20 = vor.u32 %v9812_v46, %v8387_v32 }
 0x2dc   : > { %9811 = vst [vmem:[#allocation46_spill] sm:$0xff] %v8414_v23  ;;  %v3389_v36 = vadd.f32 %v8167_v3, %v3351_v63  ;;  %v3352_v15 = vmul.f32 %v6191_v7, %v8162_v54  ;;  %v3271_v38 = vpop.f32.mrb[31].mxu0  ;;  %v3544_v39 = vshrl.u32 %v3436_v56, 16  ;;  %v3547_v45 = vshll.u32 %v3436_v56, 16 }
 0x2dd   : > { %v3387_v14 = vadd.f32 %v8167_v3, %v3349_v52  ;;  %v3350_v25 = vmul.f32 %v8162_v54, %v3271_v38  ;;  %3725 = vrot.lane.b32.xlu1 %v3435_v4, %s6741_s25  ;;  %v3536_v44 = vshrl.u32 %v3435_v4, 16  ;;  %v3539_v12 = vshll.u32 %v3435_v4, 16 }
 0x2de   : > { %v3390_v58 = vadd.f32 %v8167_v3, %v3352_v15  ;;  %v3546_v23 = vrot.slane %v3544_v39, 7  ;;  %v3530_v46 = vrot.slane %v3528_v49, 7  ;;  %v3421_v43 = vmax.f32 %v3389_v36, 0.0 }
 0x2df   : > { %v3388_v63 = vadd.f32 %v8167_v3, %v3350_v25  ;;  %v3538_v7 = vrot.slane %v3536_v44, 7  ;;  %v3638_v0 = vrot.slane %v3539_v12, 1  ;;  %v3419_v62 = vmax.f32 %v3387_v14, 0.0 }
 0x2e0   : > { %v3422_v16 = vmax.f32 %v3390_v58, 0.0  ;;  %v3641_v2 = vrot.slane %v3547_v45, 1  ;;  %v3549_v52 = vor.u32 %v3547_v45, %v3546_v23  ;;  %v9814_v59 = vshrl.u32 %v8320_v8, 16 }
 0x2e1   : > { %v3420_v40 = vmax.f32 %v3388_v63, 0.0  ;;  %3727 = vrot.lane.b32.xlu1 %v3436_v56, %s6741_s25  ;;  %v3640_v54 = vor.u32 %v3638_v0, %v3536_v44  ;;  %v8428_v4 = vsel %vm9813_vm10, %v3637_v29, %v3638_v0  ;;  %v3541_v15 = vor.u32 %v3539_v12, %v3538_v7  ;;  %vm9823_vm10 = vmmov %vm9810_vm5 }
 0x2e2   : > { %v3438_v38 = vpack.c.bf16 %v3422_v16, %v3421_v43  ;;  %v3514_v49 = vrot.slane %v9814_v59, 7  ;;  %v8433_v3 = vsel %vm9815_vm9, %v3538_v7, %v3549_v52  ;;  %v8437_v36 = vsel %vm9816_vm8, %v8341_v31, %v3501_v47  ;;  %vm9824_vm9 = vmmov %vm9805_vm1 }
 0x2e3   : > { %v3642_v45 = vsel %vm9817_vm11, %v3640_v54, %v3641_v2  ;;  %v3437_v14 = vpack.c.bf16 %v3420_v40, %v3419_v62  ;;  %v3522_v56 = vrot.slane %v3520_v18, 7  ;;  %v8441_v25 = vsel %vm9805_vm1, %v3530_v46, %v3541_v15  ;;  %vm9825_vm8 = vmmov %vm9805_vm1 }
 0x2e4   : > { %v3681_v16 = vsel %vm7542_vm3, 0, %v3642_v45  ;;  %v3560_v0 = vshrl.u32 %v3438_v38, 16  ;;  %v3563_v29 = vshll.u32 %v3438_v38, 16  ;;  %v8449_v47 = vsel %vm9818_vm15, %v8385_v1, %v3509_v20  ;;  %vm9822_vm3 = vmmov %vm9805_vm1 }
 0x2e5   : > { %3776 = vrot.lane.b32.xlu0 %v3681_v16, %s6742_s26  ;;  %3729 = vrot.lane.b32.xlu1 %v3437_v14, %s6741_s25  ;;  %v3552_v43 = vshrl.u32 %v3437_v14, 16  ;;  %v3555_v44 = vshll.u32 %v3437_v14, 16  ;;  %v3643_v31 = vor.u32 %v3641_v2, %v3544_v39  ;;  %v9819_v18 = vshll.u32 %v8320_v8, 16  ;;  %vm9826_vm11 = vmmov %vm9810_vm5 }
 0x2e6   : > { %v8451_v40 = vrot.slane %v3560_v0, 7  ;;  %v3647_v62 = vrot.slane %v3563_v29, 1  ;;  %v9820_v63 = vshll.u32 %v8365_v27, 16  ;;  %v9821_v52 = vshll.u32 %v8361_v33, 16  ;;  %vm9827_vm15 = vmmov %vm9805_vm1 }
 0x2e7   : > { %v3517_v55 = vor.u32 %v9819_v18, %v3514_v49  ;;  %v3554_v12 = vrot.slane %v3552_v43, 7  ;;  %v3644_v58 = vrot.slane %v3555_v44, 1  ;;  %v3603_v20 = vsel %vm9823_vm10, %v7630_v21, %v8219_v11 }
 0x2e8   : > { %v3525_v7 = vor.u32 %v9820_v63, %v3522_v56  ;;  %v3533_v54 = vor.u32 %v9821_v52, %v3530_v46  ;;  %v3565_v15 = vor.u32 %v3563_v29, %v8451_v40  ;;  %v3668_v11 = vsel %vm7649_vm13, 0, %v3603_v20  ;;  %v6503_v52 = vld [vmem:[%s9455_s5 + $0x20] ss:$8 sps:$4 sm:$0xff]   ;;  %v6506_v20 = vld [vmem:[%s9455_s5 + $0x30] ss:$8 sps:$4 sm:$0xff]  }
 0x2e9   : > { %v8462_v1 = vsel %vm9822_vm3, %v8387_v32, %v3517_v55  ;;  %3731 = vrot.lane.b32.xlu1 %v3438_v38, %s6741_s25  ;;  %v3645_v2 = vsel %vm9810_vm5, %v3643_v31, %v3644_v58  ;;  %v3646_v39 = vor.u32 %v3644_v58, %v3552_v43  ;;  %v3557_v59 = vor.u32 %v3555_v44, %v3554_v12  ;;  %v6505_v55 = vld [vmem:[%s9455_s5 + $0x24] ss:$8 sps:$4 sm:$0xff]  }
 0x2ea   : > { %v3682_v45 = vsel %vm7598_vm14, 0, %v3645_v2  ;;  %v8472_v46 = vsel %vm9824_vm9, %v3554_v12, %v3565_v15  ;;  %v8475_v14 = vsel %vm9825_vm8, %v3514_v49, %v3525_v7  ;;  %v3649_v38 = vor.u32 %v3647_v62, %v3560_v0  ;;  %vm9828_vm14 = vmmov %vm9810_vm5  ;;  %v9856_v58 = vld [vmem:[#allocation26_spill] sm:$0xff]  ;;  %v6508_v15 = vld [vmem:[%s9455_s5 + $0x34] ss:$8 sps:$4 sm:$0xff]  }
 0x2eb   : > { %3778 = vrot.lane.b32.xlu0 %v3682_v45, %s6742_s26  ;;  %v3648_v32 = vsel %vm9826_vm11, %v3646_v39, %v3647_v62  ;;  %v8480_v16 = vsel %vm9805_vm1, %v3546_v23, %v3557_v59  ;;  %v8485_v30 = vsel %vm9827_vm15, %v3522_v56, %v3533_v54  ;;  %v3669_v23 = vsel %vm7114_vm2, 0, %v8241_v48  ;;  %v6511_v39 = vld [vmem:[%s9455_s5 + $0x44] ss:$8 sps:$4 sm:$0xff]  }
 0x2ec   : > { %v3683_v49 = vsel %vm7613_vm7, 0, %v3648_v32  ;;  %v3650_v29 = vsel %vm9828_vm14, %v3649_v38, %v7630_v21  ;;  %vm9829_vm7 = vnez %v9564_v13  ;;  %vm9830_vm2 = vnez %v9566_v51  ;;  %v9861_v32 = vld [vmem:[#allocation27_spill] sm:$0xff] }
 0x2ed   : > { %3750 = vrot.lane.b32.xlu1 %v3668_v11, %s6742_s26  ;;  %v3684_v28 = vsel %vm7635_vm0, 0, %v3650_v29  ;;  %v3671_v17 = vsel %vm9829_vm7, 0, %v8271_v61  ;;  %v3672_v21 = vsel %vm9830_vm2, 0, %v8289_v10  ;;  %vm9832_vm0 = vnez %v9574_v60  ;;  %v9837_v60 = vld [vmem:[#allocation38_spill] sm:$0xff]  ;;  %v9864_v29 = vld [vmem:[#allocation12_spill] sm:$0xff]  ;;  %v9884_v43 = vld [vmem:[#allocation35_spill] sm:$0xff] }
 0x2ee   : > { %v3674_v13 = vsel %vm9832_vm0, 0, %v8317_v42  ;;  %vm9833_vm13 = vnez %v9578_v41  ;;  %vm9836_vm3 = vnez %v9835_v9  ;;  %v9841_v41 = vld [vmem:[#allocation36_spill] sm:$0xff]  ;;  %v9842_v42 = vld [vmem:[#allocation45_spill] sm:$0xff]  ;;  %v9847_v61 = vld [vmem:[#allocation10_spill] sm:$0xff]  ;;  %vm9850_vm8 = vnez %v9849_v5 }
 0x2ef   : > { %3780 = vrot.lane.b32.xlu0 %v3683_v49, %s6742_s26  ;;  %v3675_v51 = vsel %vm9833_vm13, 0, %v8331_v19  ;;  %v3676_v50 = vsel %vm9836_vm3, 0, %v9834_v53  ;;  %vm9848_vm9 = vnez %v9847_v61  ;;  %v3680_v19 = vsel %vm9850_vm8, 0, %v8428_v4  ;;  %v6509_v11 = vld [vmem:[%s9455_s5 + $0x40] ss:$8 sps:$4 sm:$0xff]  }
 0x2f0   : > { %v3597_v44 = vsel %vm7965_vm6, 0, %v8441_v25  ;;  %vm9852_vm11 = vcmask 261120   ;;  %vm9853_vm1 = vcmask 523264   ;;  %vm9854_vm15 = vcmask 785408   ;;  %v6500_v25 = vld [vmem:[%s9455_s5 + $0x10] ss:$8 sps:$4 sm:$0xff]  }
 0x2f1   : > { %3752 = vrot.lane.b32.xlu1 %v3669_v23, %s6742_s26  ;;  %v9855_v18 = vmov 0   ;;  %vm9857_vm6 = vnez %v9856_v58  ;;  %vm9858_vm14 = vmmov %vm9852_vm11  ;;  %vm9862_vm4 = vnez %v9861_v32  ;;  %v9863_v49 = vld [vmem:[#allocation33_spill] sm:$0xff]  ;;  %vm9865_vm0 = vsmask.f32 256  ;;  %v6529_v58 = vld [vmem:[%s9455_s5 + $0x124] ss:$8 sps:$4 sm:$0xff]  }
 0x2f2   : > { %v3598_v63 = vsel %vm9857_vm6, 0, %v8433_v3  ;;  %vm9859_vm7 = vmmov %vm9853_vm1  ;;  %v3599_v38 = vsel %vm9862_vm4, 0, %v8480_v16  ;;  %v3446_v23 = vsel %vm9865_vm0, %v9864_v29, %v9863_v49  ;;  %v9868_v16 = vld [vmem:[#allocation13_spill] sm:$0xff]  ;;  %v6535_v32 = vld [vmem:[%s9455_s5 + $0x144] ss:$8 sps:$4 sm:$0xff]  }
 0x2f3   : > { %3782 = vrot.lane.b32.xlu0 %v3684_v28, %s6742_s26  ;;  %vm9860_vm2 = vmmov %vm9854_vm15  ;;  %v6512_v53 = vld [vmem:[%s9455_s5 + $0x50] ss:$8 sps:$4 sm:$0xff]  }
 0x2f4   : > { %vm9866_vm13 = vmmov %vm9852_vm11  ;;  %v9899_v49 = vld [vmem:[#allocation39_spill] sm:$0xff] }
 0x2f5   : > { %3754 = vrot.lane.b32.xlu1 %v3670_v22, %s6742_s26  ;;  %v6514_v22 = vld [vmem:[%s9455_s5 + $0x54] ss:$8 sps:$4 sm:$0xff]   ;;  %vm9867_vm3 = vmmov %vm9853_vm1 }
 0x2f6   : > { %vm9872_vm8 = vmmov %vm9853_vm1 }
 0x2f7   : > { %3701 = vrot.lane.b32.xlu0 %v8198_v6, %s6741_s25  ;;  %vm9882_vm4 = vmmov %vm9867_vm3 }
 0x2f8   : > { %vm9883_vm0 = vmmov %vm9860_vm2 }
 0x2f9   : > { %3756 = vrot.lane.b32.xlu1 %v3671_v17, %s6742_s26 }
 0x2fb   : > { %3703 = vrot.lane.b32.xlu0 %v8192_v35, %s6741_s25  ;;  %v9839_v35 = vld [vmem:[#allocation8_spill] sm:$0xff] }
 0x2fc   : > { %vm9840_vm5 = vnez %v9839_v35 }
 0x2fd   : > { %3758 = vrot.lane.b32.xlu1 %v3672_v21, %s6742_s26 }
 0x2ff   : > { %3705 = vrot.lane.b32.xlu0 %v8237_v26, %s6741_s25  ;;  %v9843_v26 = vld [vmem:[#allocation9_spill] sm:$0xff] }
 0x300   : > { %vm9844_vm10 = vnez %v9843_v26  ;;  %v9878_v26 = vld [vmem:[#allocation14_spill] sm:$0xff] }
 0x301   : > { %3760 = vrot.lane.b32.xlu1 %v3673_v34, %s6742_s26  ;;  %v3678_v48 = vsel %vm9844_vm10, 0, %v9842_v42  ;;  %vm9870_vm10 = vmmov %vm9860_vm2  ;;  %v9877_v42 = vld [vmem:[#allocation34_spill] sm:$0xff]  ;;  %vm9879_vm6 = vnez %v9878_v26 }
 0x303   : > { %3707 = vrot.lane.b32.xlu0 %v8228_v24, %s6741_s25  ;;  %v9838_v24 = vld [vmem:[#allocation43_spill] sm:$0xff] }
 0x304   : > { %v3677_v6 = vsel %vm9840_vm5, 0, %v9838_v24  ;;  %vm9869_vm5 = vnez %v9868_v16  ;;  %v9874_v24 = vld [vmem:[#allocation28_spill] sm:$0xff] }
 0x305   : > { %3762 = vrot.lane.b32.xlu1 %v3674_v13, %s6742_s26  ;;  %v3585_v21 = vsel %vm9869_vm5, 0, %v3446_v23  ;;  %v9900_v23 = vld [vmem:[#allocation17_spill] sm:$0xff] }
 0x307   : > { %3709 = vrot.lane.b32.xlu0 %v8267_v37, %s6741_s25  ;;  %v9846_v37 = vld [vmem:[#allocation46_spill] sm:$0xff] }
 0x308   : > { %v3679_v10 = vsel %vm9848_vm9, 0, %v9846_v37  ;;  %vm9871_vm9 = vmmov %vm9852_vm11 }
 0x309   : > { %3764 = vrot.lane.b32.xlu1 %v3675_v51, %s6742_s26 }
 0x30b   : > { %3711 = vrot.lane.b32.xlu0 %v8264_v57, %s6741_s25  ;;  %v9845_v57 = vld [vmem:[#allocation40_spill] sm:$0xff] }
 0x30d   : > { %3766 = vrot.lane.b32.xlu1 %v3676_v50, %s6742_s26  ;;  %v6517_v50 = vld [vmem:[%s9455_s5 + $0x64] ss:$8 sps:$4 sm:$0xff]  }
 0x30f   : > { %3713 = vrot.lane.b32.xlu0 %v9837_v60, %s6741_s25 }
 0x311   : > { %3768 = vrot.lane.b32.xlu1 %v3677_v6, %s6742_s26  ;;  %v6515_v6 = vld [vmem:[%s9455_s5 + $0x60] ss:$8 sps:$4 sm:$0xff]  }
 0x313   : > { %3715 = vrot.lane.b32.xlu0 %v9841_v41, %s6741_s25 }
 0x315   : > { %3770 = vrot.lane.b32.xlu1 %v3678_v48, %s6742_s26  ;;  %v3586_v48 = vsel %vm9879_vm6, 0, %v9877_v42  ;;  %vm9897_vm6 = vmmov %vm9867_vm3  ;;  %v6542_v42 = vld [vmem:[%s9455_s5 + $0x170] ss:$8 sps:$4 sm:$0xff]  }
 0x317   : > { %3717 = vrot.lane.b32.xlu0 %v9845_v57, %s6741_s25  ;;  %v6520_v57 = vld [vmem:[%s9455_s5 + $0x74] ss:$8 sps:$4 sm:$0xff]  }
 0x319   : > { %3772 = vrot.lane.b32.xlu1 %v3679_v10, %s6742_s26  ;;  %v6518_v10 = vld [vmem:[%s9455_s5 + $0x70] ss:$8 sps:$4 sm:$0xff]  }
 0x31b   : > { %3719 = vrot.lane.b32.xlu0 %v8320_v8, %s6741_s25  ;;  %v6497_v8 = vld [vmem:[%s9455_s5] ss:$8 sps:$4 sm:$0xff]  }
 0x31d   : > { %3774 = vrot.lane.b32.xlu1 %v3680_v19, %s6742_s26  ;;  %v6523_v19 = vld [vmem:[%s9455_s5 + $0x104] ss:$8 sps:$4 sm:$0xff]   ;;  %s9297_s26 = scalar_lea.hbm %s9460_s10, %s5975_s17  ;;  %s6679_s17 = scalar_lea.vmem %s6678_s18, 8192 }
 0x31e   : > { %p6681_p1 = scmp.lt.s32.totalorder %s6679_s17, %s6673_s15 }
 0x31f   : > { %3721 = vrot.lane.b32.xlu0 %v8365_v27, %s6741_s25  ;;  %v6502_v27 = vld [vmem:[%s9455_s5 + $0x14] ss:$8 sps:$4 sm:$0xff]  }
 0x320   : > { %p6682_p2 = por %p6681_p1, %p6680_p0 }
 0x322   : > { %p6683_p3 = pnand %p6682_p2, %p6676_p13 }
 0x323   : > { %3723 = vrot.lane.b32.xlu0 %v8361_v33, %s6741_s25  ;;  %s9306_s25 = scalar_lea.sflag [#allocation4], %s395_s14 }
 0x34f   : > { %v3726_v56 = vpop.permute.xlu1 %3725 }
 0x350   : > { %v3822_v4 = vsel %vm9852_vm11, %v3597_v44, %v3726_v56  ;;  %vm9873_vm11 = vmmov %vm9860_vm2  ;;  %v9885_v44 = vld [vmem:[#allocation15_spill] sm:$0xff] }
 0x353   : > { %v3728_v0 = vpop.permute.xlu1 %3727 }
 0x354   : > { %v3825_v54 = vsel %vm9858_vm14, %v3598_v63, %v3728_v0  ;;  %vm9880_vm14 = vmmov %vm9867_vm3  ;;  %v6521_v0 = vld [vmem:[%s9455_s5 + $0x100] ss:$8 sps:$4 sm:$0xff]  }
 0x357   : > { %v3777_v31 = vpop.permute.xlu0 %3776  ;;  %v3730_v33 = vpop.permute.xlu1 %3729 }
 0x358   : > { %v8579_v62 = vsel %vm9853_vm1, %v3822_v4, %v3777_v31  ;;  %v3828_v28 = vsel %vm9866_vm13, %v3599_v38, %v3730_v33  ;;  %vm9875_vm1 = vnez %v9874_v24  ;;  %vm9886_vm13 = vnez %v9885_v44  ;;  %v6526_v4 = vld [vmem:[%s9455_s5 + $0x114] ss:$8 sps:$4 sm:$0xff]   ;;  %v9887_v31 = vld [vmem:[#allocation30_spill] sm:$0xff] }
 0x359   : > { %5834 = vmatmul.mubr.msk.bf16.vlgmr.msra.gmra.mrb[0].mxu1 %vm9854_vm15, %v8579_v62  ;;  %v3600_v35 = vsel %vm9875_vm1, 0, %v8472_v46  ;;  %vm9876_vm15 = vmmov %vm9871_vm9 }
 0x35a   : > { %4291 = vmatpush1.bf16.msra.mxu1 %v6497_v8  ;;  %4179 = vmatprep.mubr.bf16.mxu1 %v9855_v18  ;;  %v3587_v8 = vsel %vm9886_vm13, 0, %v9884_v43  ;;  %v9919_v43 = vld [vmem:[#allocation20_spill] sm:$0xff] }
 0x35b   : > { %4292 = vmatprep.subr.bf16.mxu1 %v6502_v27  ;;  %v3732_v7 = vpop.permute.xlu1 %3731 }
 0x35c   : > { %v3831_v41 = vsel %vm9876_vm15, %v3600_v35, %v3732_v7  ;;  %v6527_v7 = vld [vmem:[%s9455_s5 + $0x120] ss:$8 sps:$4 sm:$0xff]   ;;  %vm9896_vm15 = vmmov %vm9883_vm0  ;;  %v6544_v35 = vld [vmem:[%s9455_s5 + $0x174] ss:$8 sps:$4 sm:$0xff]  }
 0x35d   : > { %v3779_v12 = vpop.permute.xlu0 %3778 }
 0x35e   : > { %4293 = vmatpush1.bf16.msra.mxu1 %v6500_v25  ;;  %v8601_v2 = vsel %vm9859_vm7, %v3825_v54, %v3779_v12  ;;  %vm9881_vm7 = vmmov %vm9871_vm9  ;;  %v9893_v54 = vld [vmem:[#allocation16_spill] sm:$0xff] }
 0x35f   : > { %4294 = vmatprep.subr.bf16.mxu1 %v6505_v55  ;;  %v3751_v59 = vpop.permute.xlu1 %3750  ;;  %vm9888_vm5 = vmmov %vm9881_vm7  ;;  %v6524_v55 = vld [vmem:[%s9455_s5 + $0x110] ss:$8 sps:$4 sm:$0xff]  }
 0x360   : > { %v3835_v27 = vsel %vm9867_vm3, %v9887_v31, %v3751_v59  ;;  %vm9895_vm1 = vmmov %vm9888_vm5  ;;  %v6530_v59 = vld [vmem:[%s9455_s5 + $0x130] ss:$8 sps:$4 sm:$0xff]  }
 0x361   : > { %5835 = vmatmul.mubr.msk.bf16.gmra.mrb[4].mxu1 %vm9860_vm2, %v8601_v2  ;;  %v3781_v3 = vpop.permute.xlu0 %3780 }
 0x362   : > { %4295 = vmatpush1.bf16.msra.mxu1 %v6503_v52  ;;  %4189 = vmatprep.mubr.bf16.mxu1 %v9855_v18  ;;  %v8626_v17 = vsel %vm9867_vm3, %v3828_v28, %v3781_v3  ;;  %v9892_v52 = vld [vmem:[#allocation37_spill] sm:$0xff] }
 0x363   : > { %4296 = vmatprep.subr.bf16.mxu1 %v6508_v15  ;;  %v3753_v13 = vpop.permute.xlu1 %3752  ;;  %v6532_v3 = vld [vmem:[%s9455_s5 + $0x134] ss:$8 sps:$4 sm:$0xff]  }
 0x365   : > { %v3783_v45 = vpop.permute.xlu0 %3782 }
 0x366   : > { %4297 = vmatpush1.bf16.msra.mxu1 %v6506_v20  ;;  %v8657_v37 = vsel %vm9880_vm14, %v3831_v41, %v3783_v45  ;;  %vm9898_vm14 = vmmov %vm9883_vm0 }
 0x367   : > { %4298 = vmatprep.subr.bf16.mxu1 %v6511_v39  ;;  %v3755_v61 = vpop.permute.xlu1 %3754 }
 0x369   : > { %v3702_v34 = vpop.permute.xlu0 %3701  ;;  %5836 = vmatmul.mubr.msk.bf16.gmra.mrb[8].mxu1 %vm9870_vm10, %v8626_v17  ;;  %vm9889_vm10 = vmmov %vm9883_vm0 }
 0x36a   : > { %4299 = vmatpush1.bf16.msra.mxu1 %v6509_v11  ;;  %v3786_v51 = vsel %vm9871_vm9, %v3585_v21, %v3702_v34  ;;  %4199 = vmatprep.mubr.bf16.mxu1 %v9855_v18  ;;  %vm9890_vm9 = vmmov %vm9867_vm3  ;;  %v6533_v11 = vld [vmem:[%s9455_s5 + $0x140] ss:$8 sps:$4 sm:$0xff]   ;;  %v6536_v34 = vld [vmem:[%s9455_s5 + $0x150] ss:$8 sps:$4 sm:$0xff]  }
 0x36b   : > { %v3837_v9 = vsel %vm9872_vm8, %v3786_v51, %v3753_v13  ;;  %4300 = vmatprep.subr.bf16.mxu1 %v6514_v22  ;;  %v3757_v25 = vpop.permute.xlu1 %3756  ;;  %vm9891_vm8 = vmmov %vm9883_vm0  ;;  %v6538_v22 = vld [vmem:[%s9455_s5 + $0x154] ss:$8 sps:$4 sm:$0xff]   ;;  %v6541_v51 = vld [vmem:[%s9455_s5 + $0x164] ss:$8 sps:$4 sm:$0xff]  }
 0x36c   : > { %5822 = vmatmul.mubr.msk.bf16.vlgmr.msra.gmra.mrb[32].mxu0 %vm9873_vm11, %v3837_v9  ;;  %vm9894_vm11 = vnez %v9893_v54 }
 0x36d   : > { %v3704_v60 = vpop.permute.xlu0 %3703  ;;  %4059 = vmatprep.mubr.bf16.mxu0 %v9855_v18  ;;  %v3588_v15 = vsel %vm9894_vm11, 0, %v9892_v52 }
 0x36e   : > { %4301 = vmatpush1.bf16.msra.mxu1 %v6512_v53  ;;  %v3789_v46 = vsel %vm9881_vm7, %v3586_v48, %v3704_v60  ;;  %vm9901_vm7 = vnez %v9900_v23  ;;  %v9907_v60 = vld [vmem:[#allocation18_spill] sm:$0xff] }
 0x36f   : > { %4302 = vmatprep.subr.bf16.mxu1 %v6517_v50  ;;  %v8667_v5 = vsel %vm9882_vm4, %v3789_v46, %v3755_v61  ;;  %v3759_v39 = vpop.permute.xlu1 %3758  ;;  %v3589_v28 = vsel %vm9901_vm7, 0, %v9899_v49  ;;  %vm9903_vm4 = vmmov %vm9883_vm0  ;;  %v9906_v50 = vld [vmem:[#allocation41_spill] sm:$0xff]  ;;  %v9914_v46 = vld [vmem:[#allocation19_spill] sm:$0xff]  ;;  %vm9920_vm7 = vnez %v9919_v43 }
 0x370   : > { %vm9905_vm13 = vmmov %vm9903_vm4  ;;  %vm9915_vm11 = vnez %v9914_v46  ;;  %v3592_v44 = vsel %vm9920_vm7, 0, %v8437_v36 }
 0x371   : > { %5837 = vmatmul.mubr.msk.bf16.gmra.mrb[12].mxu1 %vm9860_vm2, %v8657_v37  ;;  %v3706_v56 = vpop.permute.xlu0 %3705  ;;  %vm9902_vm2 = vmmov %vm9895_vm1 }
 0x372   : > { %4303 = vmatpush1.bf16.msra.mxu1 %v6515_v6  ;;  %4322 = vmatprep.mubr.bf16.mxu1 %v9855_v18  ;;  %v3792_v33 = vsel %vm9888_vm5, %v3587_v8, %v3706_v56  ;;  %vm9909_vm5 = vmmov %vm9895_vm1 }
 0x373   : > { %4304 = vmatprep.subr.bf16.mxu1 %v6520_v57  ;;  %v8693_v12 = vsel %vm9890_vm9, %v3792_v33, %v3757_v25  ;;  %v3761_v21 = vpop.permute.xlu1 %3760  ;;  %v9913_v57 = vld [vmem:[#allocation44_spill] sm:$0xff]  ;;  %v9923_v33 = vld [vmem:[#allocation21_spill] sm:$0xff] }
 0x374   : > { %5823 = vmatmul.mubr.msk.bf16.gmra.mrb[36].mxu0 %vm9883_vm0, %v8667_v5  ;;  %vm9904_vm0 = vmmov %vm9867_vm3  ;;  %vm9908_vm3 = vnez %v9907_v60  ;;  %v3591_v61 = vsel %vm9915_vm11, 0, %v9913_v57 }
 0x375   : > { %4069 = vmatprep.mubr.bf16.mxu0 %v9855_v18  ;;  %v3708_v63 = vpop.permute.xlu0 %3707  ;;  %v3590_v24 = vsel %vm9908_vm3, 0, %v9906_v50  ;;  %vm9911_vm9 = vmmov %vm9904_vm0  ;;  %vm9924_vm3 = vnez %v9923_v33 }
 0x376   : > { %4305 = vmatpush1.bf16.msra.mxu1 %v6518_v10  ;;  %v3795_v20 = vsel %vm9895_vm1, %v3588_v15, %v3708_v63  ;;  %v3593_v25 = vsel %vm9924_vm3, 0, %v8449_v47 }
 0x377   : > { %4579 = vmatprep.subr.bf16.mxu1 %v6523_v19  ;;  %v8717_v45 = vsel %vm9897_vm6, %v3795_v20, %v3759_v39  ;;  %v3763_v41 = vpop.permute.xlu1 %3762  ;;  %vm9917_vm6 = vmmov %vm9904_vm0  ;;  %v9934_v20 = vld [vmem:[#allocation23_spill] sm:$0xff] }
 0x378   : > { %vm9935_vm7 = vnez %v9934_v20 }
 0x379   : > { %5854 = vmatmul.mubr.msk.bf16.vlgmr.msra.gmra.mrb[16].mxu1 %vm9889_vm10, %v3835_v27  ;;  %v3710_v38 = vpop.permute.xlu0 %3709  ;;  %vm9910_vm10 = vmmov %vm9903_vm4  ;;  %v3595_v39 = vsel %vm9935_vm7, 0, %v8475_v14 }
 0x37a   : > { %4580 = vmatpush1.bf16.msra.mxu1 %v6521_v0  ;;  %4332 = vmatprep.mubr.bf16.mxu1 %v9855_v18  ;;  %v3798_v16 = vsel %vm9902_vm2, %v3589_v28, %v3710_v38  ;;  %vm9921_vm2 = vmmov %vm9895_vm1 }
 0x37b   : > { %4581 = vmatprep.subr.bf16.mxu1 %v6526_v4  ;;  %v8742_v13 = vsel %vm9904_vm0, %v3798_v16, %v3761_v21  ;;  %v3765_v19 = vpop.permute.xlu1 %3764 }
 0x37c   : > { %5824 = vmatmul.mubr.msk.bf16.gmra.mrb[40].mxu0 %vm9891_vm8, %v8693_v12  ;;  %vm9912_vm8 = vmmov %vm9903_vm4 }
 0x37d   : > { %4079 = vmatprep.mubr.bf16.mxu0 %v9855_v18  ;;  %v3712_v53 = vpop.permute.xlu0 %3711 }
 0x37e   : > { %4582 = vmatpush1.bf16.msra.mxu1 %v6524_v55  ;;  %v3801_v6 = vsel %vm9909_vm5, %v3590_v24, %v3712_v53  ;;  %vm9925_vm5 = vmmov %vm9895_vm1 }
 0x37f   : > { %4583 = vmatprep.subr.bf16.mxu1 %v6529_v58  ;;  %v8767_v26 = vsel %vm9911_vm9, %v3801_v6, %v3763_v41  ;;  %v3767_v4 = vpop.permute.xlu1 %3766  ;;  %vm9927_vm9 = vmmov %vm9904_vm0 }
 0x381   : > { %5855 = vmatmul.mubr.msk.bf16.gmra.mrb[20].mxu1 %vm9896_vm15, %v3837_v9  ;;  %v6539_v9 = vld [vmem:[%s9455_s5 + $0x160] ss:$8 sps:$4 sm:$0xff]   ;;  %v3714_v48 = vpop.permute.xlu0 %3713  ;;  %vm9916_vm15 = vmmov %vm9903_vm4 }
 0x382   : > { %4342 = vmatprep.mubr.bf16.mxu1 %v9855_v18  ;;  %4584 = vmatpush1.bf16.msra.mxu1 %v6527_v7  ;;  %v3804_v10 = vsel %vm9895_vm1, %v3591_v61, %v3714_v48  ;;  %v9929_v7 = vld [vmem:[#allocation22_spill] sm:$0xff] }
 0x383   : > { %4585 = vmatprep.subr.bf16.mxu1 %v6532_v3  ;;  %v8780_v56 = vsel %vm9917_vm6, %v3804_v10, %v3765_v19  ;;  %v3769_v55 = vpop.permute.xlu1 %3768  ;;  %vm9930_vm11 = vnez %v9929_v7  ;;  %vm9932_vm6 = vmmov %vm9904_vm0  ;;  %v9967_v10 = vld [vmem:[#allocation29_spill] sm:$0xff] }
 0x384   : > { %5825 = vmatmul.mubr.msk.bf16.gmra.mrb[44].mxu0 %vm9898_vm14, %v8717_v45  ;;  %vm9918_vm14 = vmmov %vm9903_vm4  ;;  %v3594_v52 = vsel %vm9930_vm11, 0, %v8462_v1 }
 0x385   : > { %4089 = vmatprep.mubr.bf16.mxu0 %v9855_v18  ;;  %v3716_v0 = vpop.permute.xlu0 %3715  ;;  %vm9944_vm11 = vmmov %vm9903_vm4 }
 0x386   : > { %4586 = vmatpush1.bf16.msra.mxu1 %v6530_v59  ;;  %v3807_v8 = vsel %vm9921_vm2, %v3592_v44, %v3716_v0  ;;  %vm9936_vm2 = vmmov %vm9895_vm1 }
 0x387   : > { %4587 = vmatprep.subr.bf16.mxu1 %v6535_v32  ;;  %v3851_v31 = vsel %vm9904_vm0, %v3807_v8, %v3767_v4  ;;  %v3771_v54 = vpop.permute.xlu1 %3770 }
 0x389   : > { %5856 = vmatmul.mubr.msk.bf16.gmra.mrb[24].mxu1 %vm9903_vm4, %v8667_v5  ;;  %v3718_v27 = vpop.permute.xlu0 %3717 }
 0x38a   : > { %4352 = vmatprep.mubr.bf16.mxu1 %v9855_v18  ;;  %4588 = vmatpush1.bf16.msra.mxu1 %v6533_v11  ;;  %v3810_v36 = vsel %vm9925_vm5, %v3593_v25, %v3718_v27  ;;  %v9938_v11 = vld [vmem:[#allocation24_spill] sm:$0xff]  ;;  %vm9940_vm5 = vmmov %vm9895_vm1 }
 0x38b   : > { %4589 = vmatprep.subr.bf16.mxu1 %v6538_v22  ;;  %v3853_v58 = vsel %vm9927_vm9, %v3810_v36, %v3769_v55  ;;  %v3773_v59 = vpop.permute.xlu1 %3772  ;;  %vm9939_vm3 = vnez %v9938_v11  ;;  %vm9942_vm9 = vmmov %vm9904_vm0  ;;  %v967_v11 = vld [vmem:[%s9457_s7] sm:$0x3] }
 0x38c   : > { %5826 = vmatmul.mubr.msk.bf16.gmra.mrb[48].mxu0 %vm9905_vm13, %v8742_v13  ;;  %vm9922_vm13 = vmmov %vm9903_vm4  ;;  %v3596_v49 = vsel %vm9939_vm3, 0, %v8485_v30 }
 0x38d   : > { %4099 = vmatprep.mubr.bf16.mxu0 %v9855_v18  ;;  %v3720_v63 = vpop.permute.xlu0 %3719 }
 0x38e   : > { %4590 = vmatpush1.bf16.msra.mxu1 %v6536_v34  ;;  %v3813_v47 = vsel %vm9895_vm1, %v3594_v52, %v3720_v63  ;;  %vm9945_vm1 = vmmov %vm9903_vm4 }
 0x38f   : > { %4591 = vmatprep.subr.bf16.mxu1 %v6541_v51  ;;  %v3855_v15 = vsel %vm9932_vm6, %v3813_v47, %v3771_v54  ;;  %v3775_v23 = vpop.permute.xlu1 %3774  ;;  %vm9947_vm6 = vmmov %vm9945_vm1 }
 0x390   : > { %vm9949_vm7 = vmmov %vm9945_vm1 }
 0x391   : > { %5857 = vmatmul.mubr.msk.bf16.gmra.mrb[28].mxu1 %vm9910_vm10, %v8693_v12  ;;  %vm9926_vm10 = vmmov %vm9903_vm4  ;;  %v3722_v3 = vpop.permute.xlu0 %3721 }
 0x392   : > { %4362 = vmatprep.mubr.bf16.mxu1 %v9855_v18  ;;  %4592 = vmatpush1.bf16.msra.mxu1 %v6539_v9  ;;  %v3816_v1 = vsel %vm9936_vm2, %v3595_v39, %v3722_v3  ;;  %vm9950_vm2 = vmmov %vm9945_vm1 }
 0x393   : > { %4593 = vmatprep.subr.bf16.mxu1 %v6544_v35  ;;  %v3857_v32 = vsel %vm9904_vm0, %v3816_v1, %v3773_v59  ;;  %vm9952_vm0 = vmmov %vm9945_vm1  ;;  %v9977_v1 = vld [vmem:[#allocation6_spill] sm:$0xff] }
 0x394   : > { %5827 = vmatmul.mubr.msk.bf16.gmra.mrb[52].mxu0 %vm9912_vm8, %v8767_v26  ;;  %vm9928_vm8 = vmmov %vm9903_vm4  ;;  %v4839_v59 = vsub.s32 0, %v9977_v1 }
 0x395   : > { %4109 = vmatprep.mubr.bf16.mxu0 %v9855_v18  ;;  %v3724_v38 = vpop.permute.xlu0 %3723  ;;  %vm9954_vm3 = vmmov %vm9952_vm0 }
 0x396   : > { %4594 = vmatpush1.bf16.msra.mxu1 %v6542_v42  ;;  %v3819_v14 = vsel %vm9940_vm5, %v3596_v49, %v3724_v38  ;;  %vm9955_vm5 = vmmov %vm9952_vm0  ;;  %v4843_v38 = vsub.s32 1, %v9977_v1 }
 0x397   : > { %v3859_v28 = vsel %vm9942_vm9, %v3819_v14, %v3775_v23  ;;  %vm9957_vm9 = vmmov %vm9952_vm0 }
 0x399   : > { %5858 = vmatmul.mubr.msk.bf16.gmra.mrb[32].mxu1 %vm9916_vm15, %v8717_v45  ;;  %vm9931_vm15 = vmmov %vm9903_vm4 }
 0x39a   : > { %4372 = vmatprep.mubr.bf16.mxu1 %v9855_v18 }
 0x39c   : > { %5828 = vmatmul.mubr.msk.bf16.gmra.mrb[56].mxu0 %vm9918_vm14, %v8780_v56  ;;  %vm9933_vm14 = vmmov %vm9903_vm4 }
 0x39d   : > { %4119 = vmatprep.mubr.bf16.mxu0 %v9855_v18 }
 0x3a1   : > { %5859 = vmatmul.mubr.msk.bf16.gmra.mrb[36].mxu1 %vm9903_vm4, %v8742_v13 }
 0x3a2   : > { %4382 = vmatprep.mubr.bf16.mxu1 %v9855_v18 }
 0x3a4   : > { %5829 = vmatmul.mubr.msk.bf16.gmra.mrb[60].mxu0 %vm9922_vm13, %v3851_v31  ;;  %vm9937_vm13 = vmmov %vm9903_vm4 }
 0x3a5   : > { %4129 = vmatprep.mubr.bf16.mxu0 %v9855_v18 }
 0x3a9   : > { %5860 = vmatmul.mubr.msk.bf16.gmra.mrb[40].mxu1 %vm9926_vm10, %v8767_v26  ;;  %vm9941_vm10 = vmmov %vm9903_vm4 }
 0x3aa   : > { %4392 = vmatprep.mubr.bf16.mxu1 %v9855_v18 }
 0x3ac   : > { %5830 = vmatmul.mubr.msk.bf16.gmra.mrb[64].mxu0 %vm9928_vm8, %v3853_v58  ;;  %vm9943_vm8 = vmmov %vm9903_vm4 }
 0x3ad   : > { %4139 = vmatprep.mubr.bf16.mxu0 %v9855_v18 }
 0x3b1   : > { %5861 = vmatmul.mubr.msk.bf16.gmra.mrb[44].mxu1 %vm9931_vm15, %v8780_v56  ;;  %vm9946_vm15 = vmmov %vm9945_vm1 }
 0x3b2   : > { %4402 = vmatprep.mubr.bf16.mxu1 %v9855_v18 }
 0x3b4   : > { %5831 = vmatmul.mubr.msk.bf16.gmra.mrb[68].mxu0 %vm9933_vm14, %v3855_v15  ;;  %vm9948_vm14 = vmmov %vm9945_vm1 }
 0x3b5   : > { %4149 = vmatprep.mubr.bf16.mxu0 %v9855_v18 }
 0x3b9   : > { %5862 = vmatmul.mubr.msk.bf16.gmra.mrb[48].mxu1 %vm9903_vm4, %v3851_v31  ;;  %vm9951_vm4 = vmmov %vm9945_vm1 }
 0x3ba   : > { %4412 = vmatprep.mubr.bf16.mxu1 %v9855_v18 }
 0x3bc   : > { %5832 = vmatmul.mubr.msk.bf16.gmra.mrb[72].mxu0 %vm9937_vm13, %v3857_v32  ;;  %vm9953_vm13 = vmmov %vm9952_vm0 }
 0x3bd   : > { %4159 = vmatprep.mubr.bf16.mxu0 %v9855_v18 }
 0x3c1   : > { %5863 = vmatmul.mubr.msk.bf16.gmra.mrb[52].mxu1 %vm9941_vm10, %v3853_v58  ;;  %vm9956_vm10 = vmmov %vm9952_vm0 }
 0x3c2   : > { %4422 = vmatprep.mubr.bf16.mxu1 %v9855_v18 }
 0x3c4   : > { %5833 = vmatmul.mubr.msk.bf16.gmra.mrb[76].mxu0 %vm9943_vm8, %v3859_v28  ;;  %vm9958_vm8 = vmmov %vm9952_vm0 }
 0x3c9   : > { %5864 = vmatmul.mubr.msk.bf16.gmra.mrb[56].mxu1 %vm9944_vm11, %v3855_v15  ;;  %vm9959_vm11 = vmmov %vm9952_vm0 }
 0x3ca   : > { %4432 = vmatprep.mubr.bf16.mxu1 %v9855_v18 }
 0x3d1   : > { %5865 = vmatmul.mubr.msk.bf16.gmra.mrb[60].mxu1 %vm9945_vm1, %v3857_v32  ;;  %vm9960_vm1 = vmmov %vm9952_vm0 }
 0x3d2   : > { %4442 = vmatprep.mubr.bf16.mxu1 %v9855_v18 }
 0x3d9   : > { %5866 = vmatmul.mubr.msk.bf16.gmra.mrb[0].mxu1 %vm9946_vm15, %v3859_v28  ;;  %vm9961_vm15 = vmmov %vm9952_vm0 }
 0x3da   : > { %4452 = vmatprep.mubr.bf16.mxu1 %v9855_v18 }
 0x3e1   : > { %5867 = vmatmul.mubr.msk.bf16.gmra.mrb[4].mxu1 %vm9947_vm6, %v8579_v62  ;;  %vm9962_vm6 = vmmov %vm9952_vm0 }
 0x3e2   : > { %4462 = vmatprep.mubr.bf16.mxu1 %v9855_v18 }
 0x3e9   : > { %5868 = vmatmul.mubr.msk.bf16.gmra.mrb[8].mxu1 %vm9948_vm14, %v8601_v2  ;;  %vm9963_vm14 = vmmov %vm9952_vm0 }
 0x3ea   : > { %4472 = vmatprep.mubr.bf16.mxu1 %v9855_v18 }
 0x3f1   : > { %5869 = vmatmul.mubr.msk.bf16.gmra.mrb[12].mxu1 %vm9949_vm7, %v8626_v17  ;;  %vm9964_vm7 = vsmask.f32 256 }
 0x3f2   : > { %4611 = vmatprep.mubr.bf16.mxu1 %v9855_v18 }
 0x3f9   : > { %5886 = vmatmul.mubr.msk.bf16.vlgmr.msra.gmra.mrb[16].mxu1 %vm9950_vm2, %v8667_v5  ;;  %vm9965_vm2 = vmmov %vm9952_vm0 }
 0x3fa   : > { %4621 = vmatprep.mubr.bf16.mxu1 %v9855_v18 }
 0x401   : > { %5887 = vmatmul.mubr.msk.bf16.gmra.mrb[20].mxu1 %vm9951_vm4, %v8693_v12  ;;  %vm9968_vm4 = vcmask 261120  }
 0x402   : > { %4631 = vmatprep.mubr.bf16.mxu1 %v9855_v18 }
 0x409   : > { %5888 = vmatmul.mubr.msk.bf16.gmra.mrb[24].mxu1 %vm9952_vm0, %v8717_v45  ;;  %vm9970_vm0 = vcmask 523264  }
 0x40a   : > { %4641 = vmatprep.mubr.bf16.mxu1 %v9855_v18 }
 0x411   : > { %5889 = vmatmul.mubr.msk.bf16.gmra.mrb[28].mxu1 %vm9953_vm13, %v8742_v13  ;;  %vm9971_vm13 = vmmov %vm9960_vm1 }
 0x412   : > { %4651 = vmatprep.mubr.bf16.mxu1 %v9855_v18 }
 0x419   : > { %5890 = vmatmul.mubr.msk.bf16.gmra.mrb[32].mxu1 %vm9954_vm3, %v8767_v26 }
 0x41a   : > { %4661 = vmatprep.mubr.bf16.mxu1 %v9855_v18 }
 0x421   : > { %5891 = vmatmul.mubr.msk.bf16.gmra.mrb[36].mxu1 %vm9955_vm5, %v8780_v56 }
 0x422   : > { %4671 = vmatprep.mubr.bf16.mxu1 %v9855_v18 }
 0x429   : > { %5892 = vmatmul.mubr.msk.bf16.gmra.mrb[40].mxu1 %vm9956_vm10, %v3851_v31 }
 0x42a   : > { %4681 = vmatprep.mubr.bf16.mxu1 %v9855_v18 }
 0x431   : > { %5893 = vmatmul.mubr.msk.bf16.gmra.mrb[44].mxu1 %vm9957_vm9, %v3853_v58 }
 0x432   : > { %4691 = vmatprep.mubr.bf16.mxu1 %v9855_v18 }
 0x439   : > { %5894 = vmatmul.mubr.msk.bf16.gmra.mrb[48].mxu1 %vm9958_vm8, %v3855_v15 }
 0x43a   : > { %4701 = vmatprep.mubr.bf16.mxu1 %v9855_v18 }
 0x43f   : > { %v8871_v30 = vpop.f32.mrb[32].mxu0 }
 0x440   : > { %v8873_v5 = vpop.f32.mrb[33].mxu0 }
 0x441   : > { %v8875_v12 = vpop.f32.mrb[34].mxu0  ;;  %5895 = vmatmul.mubr.msk.bf16.gmra.mrb[52].mxu1 %vm9959_vm11, %v3857_v32  ;;  %v966_v32 = vld [vmem:[%s9456_s6] sm:$0x3] }
 0x442   : > { %v8878_v45 = vpop.f32.mrb[35].mxu0  ;;  %4711 = vmatprep.mubr.bf16.mxu1 %v9855_v18  ;;  %v9001_v49 = vrot.slane %v966_v32, %v4839_v59  ;;  %v9003_v23 = vrot.slane %v966_v32, %v4843_v38 }
 0x447   : > { %v8881_v22 = vpop.f32.mrb[36].mxu0 }
 0x448   : > { %v8883_v16 = vpop.f32.mrb[37].mxu0 }
 0x449   : > { %v8885_v21 = vpop.f32.mrb[38].mxu0  ;;  %5896 = vmatmul.mubr.msk.bf16.gmra.mrb[56].mxu1 %vm9960_vm1, %v3859_v28 }
 0x44a   : > { %v8888_v34 = vpop.f32.mrb[39].mxu0  ;;  %4721 = vmatprep.mubr.bf16.mxu1 %v9855_v18 }
 0x44f   : > { %v8891_v13 = vpop.f32.mrb[40].mxu0 }
 0x450   : > { %v8893_v51 = vpop.f32.mrb[41].mxu0 }
 0x451   : > { %v8895_v53 = vpop.f32.mrb[42].mxu0  ;;  %5897 = vmatmul.mubr.msk.bf16.gmra.mrb[60].mxu1 %vm9961_vm15, %v8579_v62 }
 0x452   : > { %v8899_v9 = vpop.f32.mrb[43].mxu0  ;;  %4731 = vmatprep.mubr.bf16.mxu1 %v9855_v18 }
 0x457   : > { %v8902_v50 = vpop.f32.mrb[44].mxu0 }
 0x458   : > { %v8904_v60 = vpop.f32.mrb[45].mxu0 }
 0x459   : > { %v8906_v24 = vpop.f32.mrb[46].mxu0  ;;  %5898 = vmatmul.mubr.msk.bf16.gmra.mrb[0].mxu1 %vm9962_vm6, %v8601_v2  ;;  %v3567_v2 = vsel %vm9964_vm7, %v8451_v40, %v9864_v29  ;;  %v9969_v29 = vld [vmem:[#allocation32_spill] sm:$0xff] }
 0x45a   : > { %v8910_v35 = vpop.f32.mrb[47].mxu0  ;;  %4741 = vmatprep.mubr.bf16.mxu1 %v9855_v18  ;;  %v3601_v61 = vsel %vm8145_vm12, 0, %v3567_v2  ;;  %v9006_v2 = vrot.slane %v967_v11, %v4839_v59 }
 0x45b   : > { %v3833_v19 = vsel %vm9968_vm4, %v3601_v61, %v9967_v10  ;;  %v9009_v10 = vrot.slane %v967_v11, %v4843_v38 }
 0x45c   : > { %v3868_v0 = vsel %vm9970_vm0, %v3833_v19, %v9969_v29  ;;  %v968_v29 = vld [vmem:[%s9458_s8] sm:$0x3] }
 0x45d   : > { %v9021_v11 = vrot.slane %v968_v29, %v4839_v59 }
 0x45f   : > { %v8913_v6 = vpop.f32.mrb[48].mxu0 }
 0x460   : > { %v8915_v62 = vpop.f32.mrb[49].mxu0 }
 0x461   : > { %v8917_v41 = vpop.f32.mrb[50].mxu0  ;;  %5899 = vmatmul.mubr.msk.bf16.gmra.mrb[4].mxu1 %vm9963_vm14, %v8626_v17 }
 0x462   : > { %v8921_v42 = vpop.f32.mrb[51].mxu0  ;;  %4751 = vmatprep.mubr.bf16.mxu1 %v9855_v18 }
 0x467   : > { %v8924_v26 = vpop.f32.mrb[52].mxu0 }
 0x468   : > { %v8929_v48 = vpop.f32.mrb[53].mxu0 }
 0x469   : > { %v8931_v57 = vpop.f32.mrb[54].mxu0  ;;  %5900 = vmatmul.mubr.msk.bf16.gmra.mrb[8].mxu1 %vm9965_vm2, %v8657_v37 }
 0x46a   : > { %v8935_v46 = vpop.f32.mrb[55].mxu0  ;;  %4761 = vmatprep.mubr.bf16.mxu1 %v9855_v18 }
 0x46f   : > { %v8942_v56 = vpop.f32.mrb[56].mxu0 }
 0x470   : > { %v8944_v40 = vpop.f32.mrb[57].mxu0 }
 0x471   : > { %v8948_v43 = vpop.f32.mrb[58].mxu0  ;;  %5901 = vmatmul.mubr.msk.bf16.gmra.mrb[12].mxu1 %vm9971_vm13, %v3868_v0 }
 0x472   : > { %v8951_v37 = vpop.f32.mrb[59].mxu0 }
 0x477   : > { %v8953_v18 = vpop.f32.mrb[60].mxu0 }
 0x478   : > { %v8955_v44 = vpop.f32.mrb[61].mxu0 }
 0x479   : > { %v8957_v8 = vpop.f32.mrb[62].mxu0 }
 0x47a   : > { %v8959_v4 = vpop.f32.mrb[63].mxu0 }
 0x47f   : > { %v8961_v31 = vpop.f32.mrb[64].mxu0 }
 0x480   : > { %v8963_v27 = vpop.f32.mrb[65].mxu0 }
 0x481   : > { %v8965_v33 = vpop.f32.mrb[66].mxu0 }
 0x482   : > { %v8967_v25 = vpop.f32.mrb[67].mxu0 }
 0x487   : > { %v8969_v36 = vpop.f32.mrb[68].mxu0 }
 0x488   : > { %v8971_v55 = vpop.f32.mrb[69].mxu0 }
 0x489   : > { %v8973_v58 = vpop.f32.mrb[70].mxu0 }
 0x48a   : > { %v8975_v63 = vpop.f32.mrb[71].mxu0 }
 0x48f   : > { %v8977_v7 = vpop.f32.mrb[72].mxu0 }
 0x490   : > { %v8979_v52 = vpop.f32.mrb[73].mxu0 }
 0x491   : > { %v8981_v47 = vpop.f32.mrb[74].mxu0 }
 0x492   : > { %v8983_v54 = vpop.f32.mrb[75].mxu0 }
 0x493   : > { %9972 = vst [vmem:[#allocation42_spill] sm:$0xff] %v8983_v54 }
 0x497   : > { %v8985_v15 = vpop.f32.mrb[76].mxu0 }
 0x498   : > { %9973 = vst [vmem:[#allocation7_spill] sm:$0xff] %v8985_v15  ;;  %v8987_v3 = vpop.f32.mrb[77].mxu0 }
 0x499   : > { %9974 = vst [vmem:[#allocation38_spill] sm:$0xff] %v8987_v3  ;;  %v8989_v20 = vpop.f32.mrb[78].mxu0 }
 0x49a   : > { %9975 = vst [vmem:[#allocation43_spill] sm:$0xff] %v8989_v20  ;;  %v8991_v39 = vpop.f32.mrb[79].mxu0  ;;  %v9027_v20 = vrot.slane %v968_v29, %v4843_v38 }
 0x49b   : > { %9976 = vst [vmem:[#allocation8_spill] sm:$0xff] %v8991_v39 }
 0x4cc   : > { %v4613_v14 = vpop.f32.mrb[16].mxu1 }
 0x4cd   : > { %v6208_v28 = vadd.f32 %v4613_v14, %v8871_v30  ;;  %v4615_v17 = vpop.f32.mrb[17].mxu1 }
 0x4ce   : > { %v6209_v61 = vadd.f32 %v4615_v17, %v8873_v5  ;;  %v4617_v19 = vpop.f32.mrb[18].mxu1 }
 0x4cf   : > { %v4847_v0 = vmul.f32 %v6208_v28, %v9001_v49  ;;  %v6210_v1 = vadd.f32 %v4617_v19, %v8875_v12  ;;  %v4619_v32 = vpop.f32.mrb[19].mxu1 }
 0x4d0   : > { %v4848_v30 = vmul.f32 %v6209_v61, %v9003_v23  ;;  %v6211_v14 = vadd.f32 %v4619_v32, %v8878_v45 }
 0x4d1   : > { %v4922_v39 = vadd.f32 %v9006_v2, %v4847_v0  ;;  %v4849_v5 = vmul.f32 %v6210_v1, %v9001_v49 }
 0x4d2   : > { %v4923_v17 = vadd.f32 %v9009_v10, %v4848_v30  ;;  %v4850_v28 = vmul.f32 %v6211_v14, %v9003_v23 }
 0x4d3   : > { %v4986_v12 = vmax.f32 %v4922_v39, 0.0  ;;  %v4924_v19 = vadd.f32 %v9006_v2, %v4849_v5 }
 0x4d4   : > { %v4987_v61 = vmax.f32 %v4923_v17, 0.0  ;;  %v4925_v45 = vadd.f32 %v9009_v10, %v4850_v28  ;;  %v4623_v32 = vpop.f32.mrb[20].mxu1 }
 0x4d5   : > { %v4988_v0 = vmax.f32 %v4924_v19, 0.0  ;;  %v6212_v1 = vadd.f32 %v4623_v32, %v8881_v22  ;;  %v4625_v59 = vpop.f32.mrb[21].mxu1  ;;  %v5061_v3 = vmul.f32 %v9021_v11, %v4986_v12 }
 0x4d6   : > { %v5943_v15 = vpack.c.bf16 %v4987_v61, %v4986_v12  ;;  %v4989_v54 = vmax.f32 %v4925_v45, 0.0  ;;  %v6213_v30 = vadd.f32 %v4625_v59, %v8883_v16  ;;  %v4627_v14 = vpop.f32.mrb[22].mxu1  ;;  %v5062_v38 = vmul.f32 %v9027_v20, %v4987_v61 }
 0x4d7   : > { %v4851_v39 = vmul.f32 %v6212_v1, %v9001_v49  ;;  %v6214_v29 = vadd.f32 %v4627_v14, %v8885_v21  ;;  %v4629_v5 = vpop.f32.mrb[23].mxu1  ;;  %v5063_v17 = vmul.f32 %v9021_v11, %v4988_v0 }
 0x4d8   : > { %5484 = vst [vmem:[%s9038_s16] sm:$0xff] %v5943_v15  ;;  %v5944_v22 = vpack.c.bf16 %v4989_v54, %v4988_v0  ;;  %v4852_v28 = vmul.f32 %v6213_v30, %v9003_v23  ;;  %v6215_v16 = vadd.f32 %v4629_v5, %v8888_v34  ;;  %v5125_v12 = vadd.f32 %v5062_v38, %v5061_v3 }
 0x4d9   : > { %v4926_v19 = vadd.f32 %v9006_v2, %v4851_v39  ;;  %v4853_v61 = vmul.f32 %v6214_v29, %v9001_v49  ;;  %v5064_v21 = vmul.f32 %v9027_v20, %v4989_v54 }
 0x4da   : > { %5485 = vst [vmem:[%s9038_s16 + $0x8] sm:$0xff] %v5944_v22  ;;  %v4927_v45 = vadd.f32 %v9009_v10, %v4852_v28  ;;  %v4854_v32 = vmul.f32 %v6215_v16, %v9003_v23  ;;  %5126 = vadd.xlane.f32.xlu0 %v5125_v12 }
 0x4db   : > { %v4990_v1 = vmax.f32 %v4926_v19, 0.0  ;;  %v4928_v15 = vadd.f32 %v9006_v2, %v4853_v61  ;;  %v5128_v0 = vadd.f32 %v5064_v21, %v5063_v17 }
 0x4dc   : > { %v4991_v59 = vmax.f32 %v4927_v45, 0.0  ;;  %v4929_v34 = vadd.f32 %v9009_v10, %v4854_v32  ;;  %v4633_v3 = vpop.f32.mrb[24].mxu1 }
 0x4dd   : > { %v4992_v30 = vmax.f32 %v4928_v15, 0.0  ;;  %5129 = vadd.xlane.f32.xlu1 %v5128_v0  ;;  %v6216_v14 = vadd.f32 %v4633_v3, %v8891_v13  ;;  %v4635_v54 = vpop.f32.mrb[25].mxu1  ;;  %v5065_v38 = vmul.f32 %v9021_v11, %v4990_v1 }
 0x4de   : > { %v5945_v39 = vpack.c.bf16 %v4991_v59, %v4990_v1  ;;  %v4993_v29 = vmax.f32 %v4929_v34, 0.0  ;;  %v6217_v5 = vadd.f32 %v4635_v54, %v8893_v51  ;;  %v4637_v22 = vpop.f32.mrb[26].mxu1  ;;  %v5066_v17 = vmul.f32 %v9027_v20, %v4991_v59 }
 0x4df   : > { %v4855_v28 = vmul.f32 %v6216_v14, %v9001_v49  ;;  %v6218_v16 = vadd.f32 %v4637_v22, %v8895_v53  ;;  %v4639_v12 = vpop.f32.mrb[27].mxu1  ;;  %v5067_v19 = vmul.f32 %v9021_v11, %v4992_v30 }
 0x4e0   : > { %5486 = vst [vmem:[%s9038_s16 + $0x10] sm:$0xff] %v5945_v39  ;;  %v5946_v13 = vpack.c.bf16 %v4993_v29, %v4992_v30  ;;  %v4856_v61 = vmul.f32 %v6217_v5, %v9003_v23  ;;  %v6219_v21 = vadd.f32 %v4639_v12, %v8899_v9  ;;  %v5131_v45 = vadd.f32 %v5066_v17, %v5065_v38 }
 0x4e1   : > { %v4930_v32 = vadd.f32 %v9006_v2, %v4855_v28  ;;  %v4857_v51 = vmul.f32 %v6218_v16, %v9001_v49  ;;  %v5068_v1 = vmul.f32 %v9027_v20, %v4993_v29 }
 0x4e2   : > { %5487 = vst [vmem:[%s9038_s16 + $0x18] sm:$0xff] %v5946_v13  ;;  %v4931_v15 = vadd.f32 %v9009_v10, %v4856_v61  ;;  %v4858_v53 = vmul.f32 %v6219_v21, %v9003_v23  ;;  %5132 = vadd.xlane.f32.xlu0 %v5131_v45 }
 0x4e3   : > { %v4994_v0 = vmax.f32 %v4930_v32, 0.0  ;;  %v4932_v59 = vadd.f32 %v9006_v2, %v4857_v51  ;;  %v5134_v34 = vadd.f32 %v5068_v1, %v5067_v19 }
 0x4e4   : > { %v4995_v3 = vmax.f32 %v4931_v15, 0.0  ;;  %v4933_v9 = vadd.f32 %v9009_v10, %v4858_v53  ;;  %v4643_v30 = vpop.f32.mrb[28].mxu1 }
 0x4e5   : > { %v4996_v14 = vmax.f32 %v4932_v59, 0.0  ;;  %v6220_v54 = vadd.f32 %v4643_v30, %v8902_v50  ;;  %v4645_v38 = vpop.f32.mrb[29].mxu1  ;;  %v5069_v39 = vmul.f32 %v9021_v11, %v4994_v0 }
 0x4e6   : > { %v5947_v29 = vpack.c.bf16 %v4995_v3, %v4994_v0  ;;  %v4997_v5 = vmax.f32 %v4933_v9, 0.0  ;;  %v6221_v22 = vadd.f32 %v4645_v38, %v8904_v60  ;;  %5135 = vadd.xlane.f32.xlu0 %v5134_v34  ;;  %v4647_v17 = vpop.f32.mrb[30].mxu1  ;;  %v5070_v28 = vmul.f32 %v9027_v20, %v4995_v3 }
 0x4e7   : > { %v4859_v16 = vmul.f32 %v6220_v54, %v9001_v49  ;;  %v6222_v12 = vadd.f32 %v4647_v17, %v8906_v24  ;;  %v4649_v19 = vpop.f32.mrb[31].mxu1  ;;  %v5071_v13 = vmul.f32 %v9021_v11, %v4996_v14 }
 0x4e8   : > { %5488 = vst [vmem:[%s9038_s16 + $0x20] sm:$0xff] %v5947_v29  ;;  %v5948_v50 = vpack.c.bf16 %v4997_v5, %v4996_v14  ;;  %v4860_v61 = vmul.f32 %v6221_v22, %v9003_v23  ;;  %v6223_v21 = vadd.f32 %v4649_v19, %v8910_v35  ;;  %v5137_v45 = vadd.f32 %v5070_v28, %v5069_v39 }
 0x4e9   : > { %v4934_v60 = vadd.f32 %v9006_v2, %v4859_v16  ;;  %v4861_v32 = vmul.f32 %v6222_v12, %v9001_v49  ;;  %v5072_v51 = vmul.f32 %v9027_v20, %v4997_v5 }
 0x4ea   : > { %5489 = vst [vmem:[%s9038_s16 + $0x28] sm:$0xff] %v5948_v50  ;;  %v4935_v1 = vadd.f32 %v9009_v10, %v4860_v61  ;;  %v4862_v24 = vmul.f32 %v6223_v21, %v9003_v23  ;;  %5138 = vadd.xlane.f32.xlu1 %v5137_v45 }
 0x4eb   : > { %v4998_v15 = vmax.f32 %v4934_v60, 0.0  ;;  %v4936_v53 = vadd.f32 %v9006_v2, %v4861_v32  ;;  %v5140_v0 = vadd.f32 %v5072_v51, %v5071_v13 }
 0x4ec   : > { %v4999_v59 = vmax.f32 %v4935_v1, 0.0  ;;  %v4937_v35 = vadd.f32 %v9009_v10, %v4862_v24  ;;  %v4653_v34 = vpop.f32.mrb[32].mxu1 }
 0x4ed   : > { %v5000_v3 = vmax.f32 %v4936_v53, 0.0  ;;  %5141 = vadd.xlane.f32.xlu0 %v5140_v0  ;;  %v6224_v9 = vadd.f32 %v4653_v34, %v8913_v6  ;;  %v4655_v30 = vpop.f32.mrb[33].mxu1  ;;  %v5073_v14 = vmul.f32 %v9021_v11, %v4998_v15 }
 0x4ee   : > { %v5949_v54 = vpack.c.bf16 %v4999_v59, %v4998_v15  ;;  %v5001_v38 = vmax.f32 %v4937_v35, 0.0  ;;  %v6225_v39 = vadd.f32 %v4655_v30, %v8915_v62  ;;  %v4657_v29 = vpop.f32.mrb[34].mxu1  ;;  %v5074_v5 = vmul.f32 %v9027_v20, %v4999_v59 }
 0x4ef   : > { %v4863_v22 = vmul.f32 %v6224_v9, %v9001_v49  ;;  %v6226_v17 = vadd.f32 %v4657_v29, %v8917_v41  ;;  %v4659_v28 = vpop.f32.mrb[35].mxu1  ;;  %v5075_v16 = vmul.f32 %v9021_v11, %v5000_v3 }
 0x4f0   : > { %5490 = vst [vmem:[%s9038_s16 + $0x30] sm:$0xff] %v5949_v54  ;;  %v5950_v6 = vpack.c.bf16 %v5001_v38, %v5000_v3  ;;  %v4864_v12 = vmul.f32 %v6225_v39, %v9003_v23  ;;  %v6227_v19 = vadd.f32 %v4659_v28, %v8921_v42  ;;  %v5143_v13 = vadd.f32 %v5074_v5, %v5073_v14 }
 0x4f1   : > { %v4938_v50 = vadd.f32 %v9006_v2, %v4863_v22  ;;  %v4865_v62 = vmul.f32 %v6226_v17, %v9001_v49  ;;  %v5076_v61 = vmul.f32 %v9027_v20, %v5001_v38 }
 0x4f2   : > { %5491 = vst [vmem:[%s9038_s16 + $0x38] sm:$0xff] %v5950_v6  ;;  %v4939_v21 = vadd.f32 %v9009_v10, %v4864_v12  ;;  %v4866_v41 = vmul.f32 %v6227_v19, %v9003_v23  ;;  %5144 = vadd.xlane.f32.xlu1 %v5143_v13 }
 0x4f3   : > { %v5002_v45 = vmax.f32 %v4938_v50, 0.0  ;;  %v4940_v60 = vadd.f32 %v9006_v2, %v4865_v62  ;;  %v5146_v32 = vadd.f32 %v5076_v61, %v5075_v16 }
 0x4f4   : > { %v5003_v51 = vmax.f32 %v4939_v21, 0.0  ;;  %v4941_v42 = vadd.f32 %v9009_v10, %v4866_v41  ;;  %v4663_v1 = vpop.f32.mrb[36].mxu1 }
 0x4f5   : > { %v5004_v24 = vmax.f32 %v4940_v60, 0.0  ;;  %5147 = vadd.xlane.f32.xlu0 %v5146_v32  ;;  %v6228_v15 = vadd.f32 %v4663_v1, %v8924_v26  ;;  %v4665_v53 = vpop.f32.mrb[37].mxu1  ;;  %v5077_v0 = vmul.f32 %v9021_v11, %v5002_v45 }
 0x4f6   : > { %v5951_v59 = vpack.c.bf16 %v5003_v51, %v5002_v45  ;;  %v5005_v35 = vmax.f32 %v4941_v42, 0.0  ;;  %v6229_v34 = vadd.f32 %v4665_v53, %v8929_v48  ;;  %v4667_v3 = vpop.f32.mrb[38].mxu1  ;;  %v5078_v9 = vmul.f32 %v9027_v20, %v5003_v51 }
 0x4f7   : > { %v4867_v30 = vmul.f32 %v6228_v15, %v9001_v49  ;;  %v6230_v14 = vadd.f32 %v4667_v3, %v8931_v57  ;;  %v4669_v54 = vpop.f32.mrb[39].mxu1  ;;  %v5079_v38 = vmul.f32 %v9021_v11, %v5004_v24 }
 0x4f8   : > { %5492 = vst [vmem:[%s9038_s16 + $0x40] sm:$0xff] %v5951_v59  ;;  %v5952_v26 = vpack.c.bf16 %v5005_v35, %v5004_v24  ;;  %v4868_v39 = vmul.f32 %v6229_v34, %v9003_v23  ;;  %v6231_v29 = vadd.f32 %v4669_v54, %v8935_v46  ;;  %v5149_v5 = vadd.f32 %v5078_v9, %v5077_v0 }
 0x4f9   : > { %v4942_v22 = vadd.f32 %v9006_v2, %v4867_v30  ;;  %v4869_v48 = vmul.f32 %v6230_v14, %v9001_v49  ;;  %v5080_v17 = vmul.f32 %v9027_v20, %v5005_v35 }
 0x4fa   : > { %5493 = vst [vmem:[%s9038_s16 + $0x48] sm:$0xff] %v5952_v26  ;;  %v4943_v28 = vadd.f32 %v9009_v10, %v4868_v39  ;;  %v4870_v57 = vmul.f32 %v6231_v29, %v9003_v23  ;;  %5150 = vadd.xlane.f32.xlu1 %v5149_v5 }
 0x4fb   : > { %v5006_v16 = vmax.f32 %v4942_v22, 0.0  ;;  %v4944_v6 = vadd.f32 %v9006_v2, %v4869_v48  ;;  %v5152_v12 = vadd.f32 %v5080_v17, %v5079_v38 }
 0x4fc   : > { %v5007_v19 = vmax.f32 %v4943_v28, 0.0  ;;  %v4945_v46 = vadd.f32 %v9009_v10, %v4870_v57  ;;  %v4673_v13 = vpop.f32.mrb[40].mxu1 }
 0x4fd   : > { %v5008_v50 = vmax.f32 %v4944_v6, 0.0  ;;  %5153 = vadd.xlane.f32.xlu0 %v5152_v12  ;;  %v6232_v62 = vadd.f32 %v4673_v13, %v8942_v56  ;;  %v4675_v61 = vpop.f32.mrb[41].mxu1  ;;  %v5081_v21 = vmul.f32 %v9021_v11, %v5006_v16 }
 0x4fe   : > { %v5953_v41 = vpack.c.bf16 %v5007_v19, %v5006_v16  ;;  %v5009_v45 = vmax.f32 %v4945_v46, 0.0  ;;  %v6233_v60 = vadd.f32 %v4675_v61, %v8944_v40  ;;  %v4677_v32 = vpop.f32.mrb[42].mxu1  ;;  %v5082_v51 = vmul.f32 %v9027_v20, %v5007_v19 }
 0x4ff   : > { %v4871_v42 = vmul.f32 %v6232_v62, %v9001_v49  ;;  %v6234_v1 = vadd.f32 %v4677_v32, %v8948_v43  ;;  %v4679_v24 = vpop.f32.mrb[43].mxu1  ;;  %v5083_v15 = vmul.f32 %v9021_v11, %v5008_v50 }
 0x500   : > { %5494 = vst [vmem:[%s9038_s16 + $0x50] sm:$0xff] %v5953_v41  ;;  %v5954_v56 = vpack.c.bf16 %v5009_v45, %v5008_v50  ;;  %v4872_v53 = vmul.f32 %v6233_v60, %v9003_v23  ;;  %v6235_v0 = vadd.f32 %v4679_v24, %v8951_v37  ;;  %v5155_v59 = vadd.f32 %v5082_v51, %v5081_v21 }
 0x501   : > { %v4946_v35 = vadd.f32 %v9006_v2, %v4871_v42  ;;  %v4873_v40 = vmul.f32 %v6234_v1, %v9001_v49  ;;  %v5084_v34 = vmul.f32 %v9027_v20, %v5009_v45 }
 0x502   : > { %5495 = vst [vmem:[%s9038_s16 + $0x58] sm:$0xff] %v5954_v56  ;;  %v4947_v3 = vadd.f32 %v9009_v10, %v4872_v53  ;;  %v4874_v43 = vmul.f32 %v6235_v0, %v9003_v23  ;;  %5156 = vadd.xlane.f32.xlu1 %v5155_v59 }
 0x503   : > { %v5010_v9 = vmax.f32 %v4946_v35, 0.0  ;;  %v4948_v30 = vadd.f32 %v9006_v2, %v4873_v40  ;;  %v5158_v14 = vadd.f32 %v5084_v34, %v5083_v15 }
 0x504   : > { %v5011_v54 = vmax.f32 %v4947_v3, 0.0  ;;  %v4949_v37 = vadd.f32 %v9009_v10, %v4874_v43  ;;  %v4683_v38 = vpop.f32.mrb[44].mxu1 }
 0x505   : > { %v5012_v26 = vmax.f32 %v4948_v30, 0.0  ;;  %5159 = vadd.xlane.f32.xlu0 %v5158_v14  ;;  %v6236_v39 = vadd.f32 %v4683_v38, %v8953_v18  ;;  %v4685_v29 = vpop.f32.mrb[45].mxu1  ;;  %v5085_v5 = vmul.f32 %v9021_v11, %v5010_v9 }
 0x506   : > { %v5955_v22 = vpack.c.bf16 %v5011_v54, %v5010_v9  ;;  %v5013_v48 = vmax.f32 %v4949_v37, 0.0  ;;  %v6237_v17 = vadd.f32 %v4685_v29, %v8955_v44  ;;  %v4687_v28 = vpop.f32.mrb[46].mxu1  ;;  %v5086_v57 = vmul.f32 %v9027_v20, %v5011_v54 }
 0x507   : > { %v4875_v16 = vmul.f32 %v6236_v39, %v9001_v49  ;;  %v6238_v6 = vadd.f32 %v4687_v28, %v8957_v8  ;;  %v4689_v12 = vpop.f32.mrb[47].mxu1  ;;  %v5087_v19 = vmul.f32 %v9021_v11, %v5012_v26 }
 0x508   : > { %5496 = vst [vmem:[%s9038_s16 + $0x60] sm:$0xff] %v5955_v22  ;;  %v5956_v18 = vpack.c.bf16 %v5013_v48, %v5012_v26  ;;  %v4876_v46 = vmul.f32 %v6237_v17, %v9003_v23  ;;  %v6239_v13 = vadd.f32 %v4689_v12, %v8959_v4  ;;  %v5161_v50 = vadd.f32 %v5086_v57, %v5085_v5 }
 0x509   : > { %v4950_v62 = vadd.f32 %v9006_v2, %v4875_v16  ;;  %v4877_v44 = vmul.f32 %v6238_v6, %v9001_v49  ;;  %v5088_v61 = vmul.f32 %v9027_v20, %v5013_v48 }
 0x50a   : > { %5497 = vst [vmem:[%s9038_s16 + $0x68] sm:$0xff] %v5956_v18  ;;  %v4951_v21 = vadd.f32 %v9009_v10, %v4876_v46  ;;  %v4878_v8 = vmul.f32 %v6239_v13, %v9003_v23  ;;  %5162 = vadd.xlane.f32.xlu1 %v5161_v50 }
 0x50b   : > { %v5014_v41 = vmax.f32 %v4950_v62, 0.0  ;;  %v4952_v45 = vadd.f32 %v9006_v2, %v4877_v44  ;;  %v5164_v60 = vadd.f32 %v5088_v61, %v5087_v19 }
 0x50c   : > { %v5015_v32 = vmax.f32 %v4951_v21, 0.0  ;;  %v4953_v4 = vadd.f32 %v9009_v10, %v4878_v8  ;;  %v4693_v51 = vpop.f32.mrb[48].mxu1 }
 0x50d   : > { %v5016_v42 = vmax.f32 %v4952_v45, 0.0  ;;  %5165 = vadd.xlane.f32.xlu0 %v5164_v60  ;;  %v6240_v1 = vadd.f32 %v4693_v51, %v8961_v31  ;;  %v4695_v24 = vpop.f32.mrb[49].mxu1  ;;  %v5089_v15 = vmul.f32 %v9021_v11, %v5014_v41 }
 0x50e   : > { %v5957_v56 = vpack.c.bf16 %v5015_v32, %v5014_v41  ;;  %v5017_v53 = vmax.f32 %v4953_v4, 0.0  ;;  %v6241_v0 = vadd.f32 %v4695_v24, %v8963_v27  ;;  %v4697_v59 = vpop.f32.mrb[50].mxu1  ;;  %v5090_v35 = vmul.f32 %v9027_v20, %v5015_v32 }
 0x50f   : > { %v4879_v40 = vmul.f32 %v6240_v1, %v9001_v49  ;;  %v6242_v34 = vadd.f32 %v4697_v59, %v8965_v33  ;;  %v4699_v3 = vpop.f32.mrb[51].mxu1  ;;  %v5091_v43 = vmul.f32 %v9021_v11, %v5016_v42 }
 0x510   : > { %5498 = vst [vmem:[%s9038_s16 + $0x70] sm:$0xff] %v5957_v56  ;;  %v5958_v31 = vpack.c.bf16 %v5017_v53, %v5016_v42  ;;  %v4880_v9 = vmul.f32 %v6241_v0, %v9003_v23  ;;  %v6243_v30 = vadd.f32 %v4699_v3, %v8967_v25  ;;  %v5167_v14 = vadd.f32 %v5090_v35, %v5089_v15 }
 0x511   : > { %v4954_v54 = vadd.f32 %v9006_v2, %v4879_v40  ;;  %v4881_v27 = vmul.f32 %v6242_v34, %v9001_v49  ;;  %v5092_v37 = vmul.f32 %v9027_v20, %v5017_v53 }
 0x512   : > { %5499 = vst [vmem:[%s9038_s16 + $0x78] sm:$0xff] %v5958_v31  ;;  %v4955_v38 = vadd.f32 %v9009_v10, %v4880_v9  ;;  %v4882_v33 = vmul.f32 %v6243_v30, %v9003_v23  ;;  %5168 = vadd.xlane.f32.xlu1 %v5167_v14  ;;  %v9978_v30 = vld [vmem:[#allocation42_spill] sm:$0xff] }
 0x513   : > { %v5018_v26 = vmax.f32 %v4954_v54, 0.0  ;;  %v4956_v39 = vadd.f32 %v9006_v2, %v4881_v27  ;;  %v5170_v29 = vadd.f32 %v5092_v37, %v5091_v43 }
 0x514   : > { %v5019_v5 = vmax.f32 %v4955_v38, 0.0  ;;  %v4957_v25 = vadd.f32 %v9009_v10, %v4882_v33  ;;  %v4703_v22 = vpop.f32.mrb[52].mxu1 }
 0x515   : > { %v5020_v48 = vmax.f32 %v4956_v39, 0.0  ;;  %5171 = vadd.xlane.f32.xlu0 %v5170_v29  ;;  %v6244_v17 = vadd.f32 %v4703_v22, %v8969_v36  ;;  %v4705_v28 = vpop.f32.mrb[53].mxu1  ;;  %v5093_v57 = vmul.f32 %v9021_v11, %v5018_v26 }
 0x516   : > { %v5959_v16 = vpack.c.bf16 %v5019_v5, %v5018_v26  ;;  %v5021_v6 = vmax.f32 %v4957_v25, 0.0  ;;  %v6245_v12 = vadd.f32 %v4705_v28, %v8971_v55  ;;  %v4707_v19 = vpop.f32.mrb[54].mxu1  ;;  %v5094_v18 = vmul.f32 %v9027_v20, %v5019_v5 }
 0x517   : > { %v4883_v46 = vmul.f32 %v6244_v17, %v9001_v49  ;;  %v6246_v13 = vadd.f32 %v4707_v19, %v8973_v58  ;;  %v4709_v50 = vpop.f32.mrb[55].mxu1  ;;  %v5095_v62 = vmul.f32 %v9021_v11, %v5020_v48 }
 0x518   : > { %5500 = vst [vmem:[%s9038_s16 + $0x80] sm:$0xff] %v5959_v16  ;;  %v5960_v36 = vpack.c.bf16 %v5021_v6, %v5020_v48  ;;  %v4884_v44 = vmul.f32 %v6245_v12, %v9003_v23  ;;  %v6247_v61 = vadd.f32 %v4709_v50, %v8975_v63  ;;  %v5173_v21 = vadd.f32 %v5094_v18, %v5093_v57  ;;  %v9979_v48 = vld [vmem:[#allocation7_spill] sm:$0xff]  ;;  %v9980_v12 = vld [vmem:[#allocation38_spill] sm:$0xff] }
 0x519   : > { %v4958_v8 = vadd.f32 %v9006_v2, %v4883_v46  ;;  %v4885_v55 = vmul.f32 %v6246_v13, %v9001_v49  ;;  %v5096_v41 = vmul.f32 %v9027_v20, %v5021_v6  ;;  %v9981_v50 = vld [vmem:[#allocation43_spill] sm:$0xff] }
 0x51a   : > { %5501 = vst [vmem:[%s9038_s16 + $0x88] sm:$0xff] %v5960_v36  ;;  %v4959_v45 = vadd.f32 %v9009_v10, %v4884_v44  ;;  %v4886_v58 = vmul.f32 %v6247_v61, %v9003_v23  ;;  %5174 = vadd.xlane.f32.xlu1 %v5173_v21 }
 0x51b   : > { %v5022_v60 = vmax.f32 %v4958_v8, 0.0  ;;  %v4960_v32 = vadd.f32 %v9006_v2, %v4885_v55  ;;  %v5176_v4 = vadd.f32 %v5096_v41, %v5095_v62  ;;  %v9982_v8 = vld [vmem:[#allocation8_spill] sm:$0xff] }
 0x51c   : > { %v5023_v51 = vmax.f32 %v4959_v45, 0.0  ;;  %v4961_v63 = vadd.f32 %v9009_v10, %v4886_v58  ;;  %v4713_v42 = vpop.f32.mrb[56].mxu1 }
 0x51d   : > { %v5024_v1 = vmax.f32 %v4960_v32, 0.0  ;;  %5177 = vadd.xlane.f32.xlu0 %v5176_v4  ;;  %v6248_v24 = vadd.f32 %v4713_v42, %v8977_v7  ;;  %v4715_v15 = vpop.f32.mrb[57].mxu1  ;;  %v5097_v56 = vmul.f32 %v9021_v11, %v5022_v60 }
 0x51e   : > { %v5961_v53 = vpack.c.bf16 %v5023_v51, %v5022_v60  ;;  %v5025_v0 = vmax.f32 %v4961_v63, 0.0  ;;  %v6249_v59 = vadd.f32 %v4715_v15, %v8979_v52  ;;  %v4717_v35 = vpop.f32.mrb[58].mxu1  ;;  %v5098_v40 = vmul.f32 %v9027_v20, %v5023_v51 }
 0x51f   : > { %v4887_v34 = vmul.f32 %v6248_v24, %v9001_v49  ;;  %v6250_v3 = vadd.f32 %v4717_v35, %v8981_v47  ;;  %v4719_v43 = vpop.f32.mrb[59].mxu1  ;;  %v5099_v31 = vmul.f32 %v9021_v11, %v5024_v1 }
 0x520   : > { %5502 = vst [vmem:[%s9038_s16 + $0x90] sm:$0xff] %v5961_v53  ;;  %v5962_v7 = vpack.c.bf16 %v5025_v0, %v5024_v1  ;;  %v4888_v9 = vmul.f32 %v6249_v59, %v9003_v23  ;;  %v6251_v14 = vadd.f32 %v4719_v43, %v9978_v30  ;;  %v5179_v54 = vadd.f32 %v5098_v40, %v5097_v56 }
 0x521   : > { %v4962_v27 = vadd.f32 %v9006_v2, %v4887_v34  ;;  %v4889_v52 = vmul.f32 %v6250_v3, %v9001_v49  ;;  %v5100_v37 = vmul.f32 %v9027_v20, %v5025_v0 }
 0x522   : > { %5503 = vst [vmem:[%s9038_s16 + $0x98] sm:$0xff] %v5962_v7  ;;  %v4963_v38 = vadd.f32 %v9009_v10, %v4888_v9  ;;  %v4890_v47 = vmul.f32 %v6251_v14, %v9003_v23  ;;  %5180 = vadd.xlane.f32.xlu1 %v5179_v54 }
 0x523   : > { %v5026_v33 = vmax.f32 %v4962_v27, 0.0  ;;  %v4964_v26 = vadd.f32 %v9006_v2, %v4889_v52  ;;  %v5182_v39 = vadd.f32 %v5100_v37, %v5099_v31 }
 0x524   : > { %v5027_v29 = vmax.f32 %v4963_v38, 0.0  ;;  %v4965_v5 = vadd.f32 %v9009_v10, %v4890_v47  ;;  %v4723_v25 = vpop.f32.mrb[60].mxu1 }
 0x525   : > { %v5028_v22 = vmax.f32 %v4964_v26, 0.0  ;;  %5183 = vadd.xlane.f32.xlu0 %v5182_v39  ;;  %v6252_v17 = vadd.f32 %v4723_v25, %v9979_v48  ;;  %v4725_v28 = vpop.f32.mrb[61].mxu1  ;;  %v5101_v57 = vmul.f32 %v9021_v11, %v5026_v33 }
 0x526   : > { %v5963_v16 = vpack.c.bf16 %v5027_v29, %v5026_v33  ;;  %v5029_v6 = vmax.f32 %v4965_v5, 0.0  ;;  %v6253_v19 = vadd.f32 %v4725_v28, %v9980_v12  ;;  %v4727_v18 = vpop.f32.mrb[62].mxu1  ;;  %v5102_v46 = vmul.f32 %v9027_v20, %v5027_v29 }
 0x527   : > { %v4891_v13 = vmul.f32 %v6252_v17, %v9001_v49  ;;  %v6254_v62 = vadd.f32 %v4727_v18, %v9981_v50  ;;  %v4729_v36 = vpop.f32.mrb[63].mxu1  ;;  %v5103_v44 = vmul.f32 %v9021_v11, %v5028_v22 }
 0x528   : > { %5504 = vst [vmem:[%s9038_s16 + $0xa0] sm:$0xff] %v5963_v16  ;;  %v5964_v61 = vpack.c.bf16 %v5029_v6, %v5028_v22  ;;  %v4892_v21 = vmul.f32 %v6253_v19, %v9003_v23  ;;  %v6255_v55 = vadd.f32 %v4729_v36, %v9982_v8  ;;  %v5185_v41 = vadd.f32 %v5102_v46, %v5101_v57 }
 0x529   : > { %v4966_v45 = vadd.f32 %v9006_v2, %v4891_v13  ;;  %v4893_v58 = vmul.f32 %v6254_v62, %v9001_v49  ;;  %v5104_v60 = vmul.f32 %v9027_v20, %v5029_v6 }
 0x52a   : > { %5505 = vst [vmem:[%s9038_s16 + $0xa8] sm:$0xff] %v5964_v61  ;;  %v4967_v32 = vadd.f32 %v9009_v10, %v4892_v21  ;;  %v4894_v4 = vmul.f32 %v6255_v55, %v9003_v23  ;;  %5186 = vadd.xlane.f32.xlu1 %v5185_v41 }
 0x52b   : > { %v5030_v51 = vmax.f32 %v4966_v45, 0.0  ;;  %v4968_v63 = vadd.f32 %v9006_v2, %v4893_v58  ;;  %v5188_v42 = vadd.f32 %v5104_v60, %v5103_v44 }
 0x52c   : > { %v5031_v1 = vmax.f32 %v4967_v32, 0.0  ;;  %v4969_v24 = vadd.f32 %v9009_v10, %v4894_v4  ;;  %v4733_v15 = vpop.f32.mrb[0].mxu1 }
 0x52d   : > { %v5032_v56 = vmax.f32 %v4968_v63, 0.0  ;;  %5189 = vadd.xlane.f32.xlu0 %v5188_v42  ;;  %v4895_v53 = vmul.f32 %v9001_v49, %v4733_v15  ;;  %v4735_v0 = vpop.f32.mrb[1].mxu1  ;;  %v5105_v59 = vmul.f32 %v9021_v11, %v5030_v51 }
 0x52e   : > { %v5965_v35 = vpack.c.bf16 %v5031_v1, %v5030_v51  ;;  %v5033_v40 = vmax.f32 %v4969_v24, 0.0  ;;  %v4896_v34 = vmul.f32 %v9003_v23, %v4735_v0  ;;  %v4737_v3 = vpop.f32.mrb[2].mxu1  ;;  %v5106_v43 = vmul.f32 %v9027_v20, %v5031_v1 }
 0x52f   : > { %v4970_v31 = vadd.f32 %v9006_v2, %v4895_v53  ;;  %v4897_v7 = vmul.f32 %v9001_v49, %v4737_v3  ;;  %v4739_v9 = vpop.f32.mrb[3].mxu1  ;;  %v5107_v30 = vmul.f32 %v9021_v11, %v5032_v56 }
 0x530   : > { %5506 = vst [vmem:[%s9038_s16 + $0xb0] sm:$0xff] %v5965_v35  ;;  %v5966_v14 = vpack.c.bf16 %v5033_v40, %v5032_v56  ;;  %v4971_v54 = vadd.f32 %v9009_v10, %v4896_v34  ;;  %v4898_v27 = vmul.f32 %v9003_v23, %v4739_v9  ;;  %v5191_v52 = vadd.f32 %v5106_v43, %v5105_v59 }
 0x531   : > { %v5034_v37 = vmax.f32 %v4970_v31, 0.0  ;;  %v4972_v38 = vadd.f32 %v9006_v2, %v4897_v7  ;;  %v5108_v47 = vmul.f32 %v9027_v20, %v5033_v40 }
 0x532   : > { %5507 = vst [vmem:[%s9038_s16 + $0xb8] sm:$0xff] %v5966_v14  ;;  %v5035_v33 = vmax.f32 %v4971_v54, 0.0  ;;  %v4973_v26 = vadd.f32 %v9009_v10, %v4898_v27  ;;  %5192 = vadd.xlane.f32.xlu1 %v5191_v52 }
 0x533   : > { %v5109_v39 = vmul.f32 %v9021_v11, %v5034_v37  ;;  %v5036_v29 = vmax.f32 %v4972_v38, 0.0  ;;  %v5194_v5 = vadd.f32 %v5108_v47, %v5107_v30 }
 0x534   : > { %v5110_v25 = vmul.f32 %v9027_v20, %v5035_v33  ;;  %v5967_v22 = vpack.c.bf16 %v5035_v33, %v5034_v37  ;;  %v5037_v48 = vmax.f32 %v4973_v26, 0.0  ;;  %v4743_v17 = vpop.f32.mrb[4].mxu1 }
 0x535   : > { %v5111_v28 = vmul.f32 %v9021_v11, %v5036_v29  ;;  %5195 = vadd.xlane.f32.xlu0 %v5194_v5  ;;  %v4899_v57 = vmul.f32 %v9001_v49, %v4743_v17  ;;  %v4745_v16 = vpop.f32.mrb[5].mxu1 }
 0x536   : > { %5508 = vst [vmem:[%s9038_s16 + $0xc0] sm:$0xff] %v5967_v22  ;;  %v5112_v6 = vmul.f32 %v9027_v20, %v5037_v48  ;;  %v5968_v12 = vpack.c.bf16 %v5037_v48, %v5036_v29  ;;  %v4900_v19 = vmul.f32 %v9003_v23, %v4745_v16  ;;  %v4747_v18 = vpop.f32.mrb[6].mxu1  ;;  %v5197_v46 = vadd.f32 %v5110_v25, %v5109_v39 }
 0x537   : > { %v4974_v13 = vadd.f32 %v9006_v2, %v4899_v57  ;;  %v4901_v50 = vmul.f32 %v9001_v49, %v4747_v18  ;;  %v4749_v62 = vpop.f32.mrb[7].mxu1 }
 0x538   : > { %5509 = vst [vmem:[%s9038_s16 + $0xc8] sm:$0xff] %v5968_v12  ;;  %v4975_v36 = vadd.f32 %v9009_v10, %v4900_v19  ;;  %v4902_v44 = vmul.f32 %v9003_v23, %v4749_v62  ;;  %5198 = vadd.xlane.f32.xlu1 %v5197_v46  ;;  %v5200_v61 = vadd.f32 %v5112_v6, %v5111_v28 }
 0x539   : > { %v5038_v21 = vmax.f32 %v4974_v13, 0.0  ;;  %v4976_v8 = vadd.f32 %v9006_v2, %v4901_v50 }
 0x53a   : > { %v5039_v55 = vmax.f32 %v4975_v36, 0.0  ;;  %v4977_v41 = vadd.f32 %v9009_v10, %v4902_v44  ;;  %5201 = vadd.xlane.f32.xlu0 %v5200_v61 }
 0x53b   : > { %v5113_v45 = vmul.f32 %v9021_v11, %v5038_v21  ;;  %v5040_v58 = vmax.f32 %v4976_v8, 0.0 }
 0x53c   : > { %v5114_v60 = vmul.f32 %v9027_v20, %v5039_v55  ;;  %v5969_v32 = vpack.c.bf16 %v5039_v55, %v5038_v21  ;;  %v5041_v4 = vmax.f32 %v4977_v41, 0.0  ;;  %v4753_v51 = vpop.f32.mrb[8].mxu1 }
 0x53d   : > { %v5115_v63 = vmul.f32 %v9021_v11, %v5040_v58  ;;  %v4903_v42 = vmul.f32 %v9001_v49, %v4753_v51  ;;  %v4755_v1 = vpop.f32.mrb[9].mxu1 }
 0x53e   : > { %5510 = vst [vmem:[%s9038_s16 + $0xd0] sm:$0xff] %v5969_v32  ;;  %v5116_v24 = vmul.f32 %v9027_v20, %v5041_v4  ;;  %v5970_v15 = vpack.c.bf16 %v5041_v4, %v5040_v58  ;;  %v4904_v56 = vmul.f32 %v9003_v23, %v4755_v1  ;;  %v4757_v53 = vpop.f32.mrb[10].mxu1  ;;  %v5203_v0 = vadd.f32 %v5114_v60, %v5113_v45 }
 0x53f   : > { %v4978_v59 = vadd.f32 %v9006_v2, %v4903_v42  ;;  %v4905_v35 = vmul.f32 %v9001_v49, %v4757_v53  ;;  %v4759_v40 = vpop.f32.mrb[11].mxu1 }
 0x540   : > { %5511 = vst [vmem:[%s9038_s16 + $0xd8] sm:$0xff] %v5970_v15  ;;  %v4979_v34 = vadd.f32 %v9009_v10, %v4904_v56  ;;  %v4906_v3 = vmul.f32 %v9003_v23, %v4759_v40  ;;  %5204 = vadd.xlane.f32.xlu1 %v5203_v0  ;;  %v5206_v43 = vadd.f32 %v5116_v24, %v5115_v63 }
 0x541   : > { %v5042_v31 = vmax.f32 %v4978_v59, 0.0  ;;  %v4980_v7 = vadd.f32 %v9006_v2, %v4905_v35 }
 0x542   : > { %v5043_v9 = vmax.f32 %v4979_v34, 0.0  ;;  %v4981_v30 = vadd.f32 %v9009_v10, %v4906_v3  ;;  %5207 = vadd.xlane.f32.xlu0 %v5206_v43 }
 0x543   : > { %v5117_v14 = vmul.f32 %v9021_v11, %v5042_v31  ;;  %v5044_v54 = vmax.f32 %v4980_v7, 0.0 }
 0x544   : > { %v5118_v27 = vmul.f32 %v9027_v20, %v5043_v9  ;;  %v5971_v52 = vpack.c.bf16 %v5043_v9, %v5042_v31  ;;  %v5045_v37 = vmax.f32 %v4981_v30, 0.0  ;;  %v4763_v38 = vpop.f32.mrb[12].mxu1 }
 0x545   : > { %v5119_v47 = vmul.f32 %v9021_v11, %v5044_v54  ;;  %v4907_v33 = vmul.f32 %v9001_v49, %v4763_v38  ;;  %v4765_v26 = vpop.f32.mrb[13].mxu1 }
 0x546   : > { %5512 = vst [vmem:[%s9038_s16 + $0xe0] sm:$0xff] %v5971_v52  ;;  %v5120_v39 = vmul.f32 %v9027_v20, %v5045_v37  ;;  %v5972_v29 = vpack.c.bf16 %v5045_v37, %v5044_v54  ;;  %v4908_v5 = vmul.f32 %v9003_v23, %v4765_v26  ;;  %v4767_v25 = vpop.f32.mrb[14].mxu1  ;;  %v5209_v22 = vadd.f32 %v5118_v27, %v5117_v14 }
 0x547   : > { %v4982_v48 = vadd.f32 %v9006_v2, %v4907_v33  ;;  %v4909_v17 = vmul.f32 %v9001_v49, %v4767_v25  ;;  %v4769_v28 = vpop.f32.mrb[15].mxu1 }
 0x548   : > { %5513 = vst [vmem:[%s9038_s16 + $0xe8] sm:$0xff] %v5972_v29  ;;  %v4983_v57 = vadd.f32 %v9009_v10, %v4908_v5  ;;  %v4910_v16 = vmul.f32 %v9003_v23, %v4769_v28  ;;  %5210 = vadd.xlane.f32.xlu1 %v5209_v22  ;;  %v5212_v6 = vadd.f32 %v5120_v39, %v5119_v47 }
 0x549   : > { %v5046_v12 = vmax.f32 %v4982_v48, 0.0  ;;  %v4984_v19 = vadd.f32 %v9006_v2, %v4909_v17 }
 0x54a   : > { %v5047_v18 = vmax.f32 %v4983_v57, 0.0  ;;  %v4985_v46 = vadd.f32 %v9009_v10, %v4910_v16  ;;  %5213 = vadd.xlane.f32.xlu0 %v5212_v6 }
 0x54b   : > { %v5121_v49 = vmul.f32 %v9021_v11, %v5046_v12  ;;  %v5048_v13 = vmax.f32 %v4984_v19, 0.0 }
 0x54c   : > { %v5122_v50 = vmul.f32 %v9027_v20, %v5047_v18  ;;  %v5973_v62 = vpack.c.bf16 %v5047_v18, %v5046_v12  ;;  %v5049_v23 = vmax.f32 %v4985_v46, 0.0 }
 0x54d   : > { %v5123_v36 = vmul.f32 %v9021_v11, %v5048_v13  ;;  %v9302_v11 = vld [vmem:[#allocation2] ss:$0 sm:$0xff] }
 0x54e   : > { %5514 = vst [vmem:[%s9038_s16 + $0xf0] sm:$0xff] %v5973_v62  ;;  %v5124_v2 = vmul.f32 %v9027_v20, %v5049_v23  ;;  %v5974_v44 = vpack.c.bf16 %v5049_v23, %v5048_v13  ;;  %v5215_v61 = vadd.f32 %v5122_v50, %v5121_v49 }
 0x550   : > { %5515 = vst [vmem:[%s9038_s16 + $0xf8] sm:$0xff] %v5974_v44  ;;  %5216 = vadd.xlane.f32.xlu1 %v5215_v61  ;;  %v5218_v10 = vadd.f32 %v5124_v2, %v5123_v36 }
 0x552   : > { %5219 = vadd.xlane.f32.xlu0 %v5218_v10 }
 0x553   : > { %6686 = shalt.err (!%p6683_p3)
}
 0x554   : > { %s6687_s14 = scalar_lea.hbm %s9297_s26, 4096  ;;  %s6691_s9 = scalar_lea.hbm %s9460_s10, 8192 }
 0x555   : > { %p6688_p4 = scmp.ne.s32.totalorder %s9297_s26, %s6687_s14  ;;  %p6692_p9 = scmp.lt.u32.totalorder %s9297_s26, %s9460_s10 }
 0x556   : > { %p6693_p10 = scmp.lt.u32.totalorder %s6691_s9, %s6687_s14  ;;  %p6695_p12 = scmp.lt.u32.totalorder %s6687_s14, %s9297_s26 }
 0x557   : > { %p6689_p7 = pnand %p6688_p4, %p6847_p5 }
 0x558   : > { %p6694_p11 = por %p6693_p10, %p6692_p9 }
 0x559   : > { %p6690_p8 = pneg %p6689_p7 }
 0x55a   : > { %p6696_p13 = por %p6695_p12, %p6694_p11 }
 0x55c   : > { %p6697_p0 = pnand %p6696_p13, %p6690_p8 }
 0x55e   : > { %6700 = shalt.err (!%p6697_p0)
}
 0x55f   : > { %s6744_s15 = smov 128   ;;  %s6745_s17 = smov 8   ;;  %vm5259_vm12 = vcmask 7168  }
 0x560   : > { %6400 = dma.vmem_to_hbm [thread:$0]  (%p6847_p5), %s9300_s13, 4096, %s9297_s26, %s9306_s25, %s6744_s15, %s6744_s15, %s6745_s17  }
 0x561   : > { %s9983_s16 = sshll.u32 %s6861_s30, 8 }
 0x562   : > { %s9335_s12 = scalar_lea.vmem %s9461_s11, %s9983_s16 }
 0x567   : > { %v5127_v20 = vpop.xlane.xlu0 %5126 }
 0x568   : > { %v5227_v21 = vadd.f32 %v9302_v11, %v5127_v20 }
 0x56a   : > { %5260 = vst.msk [vmem:[%s9335_s12] sm:$0xff] %vm5259_vm12, %v5227_v21  ;;  %v5130_v8 = vpop.xlane.xlu1 %5129 }
 0x56b   : > { %v5228_v55 = vadd.f32 %v9302_v11, %v5130_v8 }
 0x56d   : > { %5261 = vst.msk [vmem:[%s9335_s12 + $0x8] sm:$0xff] %vm5259_vm12, %v5228_v55 }
 0x56f   : > { %v5133_v41 = vpop.xlane.xlu0 %5132 }
 0x570   : > { %v5229_v45 = vadd.f32 %v9302_v11, %v5133_v41 }
 0x572   : > { %5262 = vst.msk [vmem:[%s9335_s12 + $0x10] sm:$0xff] %vm5259_vm12, %v5229_v45 }
 0x573   : > { %v5136_v58 = vpop.xlane.xlu0 %5135 }
 0x574   : > { %v5230_v60 = vadd.f32 %v9302_v11, %v5136_v58 }
 0x576   : > { %5263 = vst.msk [vmem:[%s9335_s12 + $0x18] sm:$0xff] %vm5259_vm12, %v5230_v60 }
 0x577   : > { %v5139_v32 = vpop.xlane.xlu1 %5138 }
 0x578   : > { %v5231_v4 = vadd.f32 %v9302_v11, %v5139_v32 }
 0x57a   : > { %5264 = vst.msk [vmem:[%s9335_s12 + $0x20] sm:$0xff] %vm5259_vm12, %v5231_v4  ;;  %v5142_v51 = vpop.xlane.xlu0 %5141 }
 0x57b   : > { %v5232_v63 = vadd.f32 %v9302_v11, %v5142_v51 }
 0x57d   : > { %5265 = vst.msk [vmem:[%s9335_s12 + $0x28] sm:$0xff] %vm5259_vm12, %v5232_v63 }
 0x57f   : > { %v5145_v42 = vpop.xlane.xlu1 %5144 }
 0x580   : > { %v5233_v1 = vadd.f32 %v9302_v11, %v5145_v42 }
 0x582   : > { %5266 = vst.msk [vmem:[%s9335_s12 + $0x30] sm:$0xff] %vm5259_vm12, %v5233_v1  ;;  %v5148_v24 = vpop.xlane.xlu0 %5147 }
 0x583   : > { %v5234_v15 = vadd.f32 %v9302_v11, %v5148_v24 }
 0x585   : > { %5267 = vst.msk [vmem:[%s9335_s12 + $0x38] sm:$0xff] %vm5259_vm12, %v5234_v15 }
 0x587   : > { %v5151_v56 = vpop.xlane.xlu1 %5150 }
 0x588   : > { %v5235_v53 = vadd.f32 %v9302_v11, %v5151_v56 }
 0x58a   : > { %5268 = vst.msk [vmem:[%s9335_s12 + $0x40] sm:$0xff] %vm5259_vm12, %v5235_v53  ;;  %v5154_v0 = vpop.xlane.xlu0 %5153 }
 0x58b   : > { %v5236_v59 = vadd.f32 %v9302_v11, %v5154_v0 }
 0x58d   : > { %5269 = vst.msk [vmem:[%s9335_s12 + $0x48] sm:$0xff] %vm5259_vm12, %v5236_v59 }
 0x58f   : > { %v5157_v35 = vpop.xlane.xlu1 %5156 }
 0x590   : > { %v5237_v40 = vadd.f32 %v9302_v11, %v5157_v35 }
 0x592   : > { %5270 = vst.msk [vmem:[%s9335_s12 + $0x50] sm:$0xff] %vm5259_vm12, %v5237_v40  ;;  %v5160_v34 = vpop.xlane.xlu0 %5159 }
 0x593   : > { %v5238_v3 = vadd.f32 %v9302_v11, %v5160_v34 }
 0x595   : > { %5271 = vst.msk [vmem:[%s9335_s12 + $0x58] sm:$0xff] %vm5259_vm12, %v5238_v3 }
 0x597   : > { %v5163_v43 = vpop.xlane.xlu1 %5162 }
 0x598   : > { %v5239_v31 = vadd.f32 %v9302_v11, %v5163_v43 }
 0x59a   : > { %5272 = vst.msk [vmem:[%s9335_s12 + $0x60] sm:$0xff] %vm5259_vm12, %v5239_v31  ;;  %v5166_v7 = vpop.xlane.xlu0 %5165 }
 0x59b   : > { %v5240_v9 = vadd.f32 %v9302_v11, %v5166_v7 }
 0x59d   : > { %5273 = vst.msk [vmem:[%s9335_s12 + $0x68] sm:$0xff] %vm5259_vm12, %v5240_v9 }
 0x59f   : > { %v5169_v30 = vpop.xlane.xlu1 %5168 }
 0x5a0   : > { %v5241_v14 = vadd.f32 %v9302_v11, %v5169_v30 }
 0x5a2   : > { %5274 = vst.msk [vmem:[%s9335_s12 + $0x70] sm:$0xff] %vm5259_vm12, %v5241_v14  ;;  %v5172_v54 = vpop.xlane.xlu0 %5171 }
 0x5a3   : > { %v5242_v27 = vadd.f32 %v9302_v11, %v5172_v54 }
 0x5a5   : > { %5275 = vst.msk [vmem:[%s9335_s12 + $0x78] sm:$0xff] %vm5259_vm12, %v5242_v27 }
 0x5a7   : > { %v5175_v52 = vpop.xlane.xlu1 %5174 }
 0x5a8   : > { %v5243_v37 = vadd.f32 %v9302_v11, %v5175_v52 }
 0x5aa   : > { %5276 = vst.msk [vmem:[%s9335_s12 + $0x80] sm:$0xff] %vm5259_vm12, %v5243_v37  ;;  %v5178_v38 = vpop.xlane.xlu0 %5177 }
 0x5ab   : > { %v5244_v47 = vadd.f32 %v9302_v11, %v5178_v38 }
 0x5ad   : > { %5277 = vst.msk [vmem:[%s9335_s12 + $0x88] sm:$0xff] %vm5259_vm12, %v5244_v47 }
 0x5af   : > { %v5181_v33 = vpop.xlane.xlu1 %5180 }
 0x5b0   : > { %v5245_v26 = vadd.f32 %v9302_v11, %v5181_v33 }
 0x5b2   : > { %5278 = vst.msk [vmem:[%s9335_s12 + $0x90] sm:$0xff] %vm5259_vm12, %v5245_v26  ;;  %v5184_v39 = vpop.xlane.xlu0 %5183 }
 0x5b3   : > { %v5246_v29 = vadd.f32 %v9302_v11, %v5184_v39 }
 0x5b5   : > { %5279 = vst.msk [vmem:[%s9335_s12 + $0x98] sm:$0xff] %vm5259_vm12, %v5246_v29 }
 0x5b7   : > { %v5187_v5 = vpop.xlane.xlu1 %5186 }
 0x5b8   : > { %v5247_v25 = vadd.f32 %v9302_v11, %v5187_v5 }
 0x5ba   : > { %5280 = vst.msk [vmem:[%s9335_s12 + $0xa0] sm:$0xff] %vm5259_vm12, %v5247_v25  ;;  %v5190_v22 = vpop.xlane.xlu0 %5189 }
 0x5bb   : > { %v5248_v48 = vadd.f32 %v9302_v11, %v5190_v22 }
 0x5bd   : > { %5281 = vst.msk [vmem:[%s9335_s12 + $0xa8] sm:$0xff] %vm5259_vm12, %v5248_v48 }
 0x5bf   : > { %v5193_v17 = vpop.xlane.xlu1 %5192 }
 0x5c0   : > { %v5249_v28 = vadd.f32 %v9302_v11, %v5193_v17 }
 0x5c2   : > { %5282 = vst.msk [vmem:[%s9335_s12 + $0xb0] sm:$0xff] %vm5259_vm12, %v5249_v28  ;;  %v5196_v57 = vpop.xlane.xlu0 %5195 }
 0x5c3   : > { %v5250_v16 = vadd.f32 %v9302_v11, %v5196_v57 }
 0x5c5   : > { %5283 = vst.msk [vmem:[%s9335_s12 + $0xb8] sm:$0xff] %vm5259_vm12, %v5250_v16  ;;  %v5199_v6 = vpop.xlane.xlu1 %5198 }
 0x5c6   : > { %v5251_v12 = vadd.f32 %v9302_v11, %v5199_v6 }
 0x5c7   : > { %v5202_v19 = vpop.xlane.xlu0 %5201 }
 0x5c8   : > { %5284 = vst.msk [vmem:[%s9335_s12 + $0xc0] sm:$0xff] %vm5259_vm12, %v5251_v12  ;;  %v5252_v18 = vadd.f32 %v9302_v11, %v5202_v19 }
 0x5ca   : > { %5285 = vst.msk [vmem:[%s9335_s12 + $0xc8] sm:$0xff] %vm5259_vm12, %v5252_v18 }
 0x5cd   : > { %v5205_v46 = vpop.xlane.xlu1 %5204 }
 0x5ce   : > { %v5253_v49 = vadd.f32 %v9302_v11, %v5205_v46 }
 0x5cf   : > { %v5208_v13 = vpop.xlane.xlu0 %5207 }
 0x5d0   : > { %5286 = vst.msk [vmem:[%s9335_s12 + $0xd0] sm:$0xff] %vm5259_vm12, %v5253_v49  ;;  %v5254_v50 = vadd.f32 %v9302_v11, %v5208_v13 }
 0x5d2   : > { %5287 = vst.msk [vmem:[%s9335_s12 + $0xd8] sm:$0xff] %vm5259_vm12, %v5254_v50 }
 0x5d5   : > { %v5211_v62 = vpop.xlane.xlu1 %5210 }
 0x5d6   : > { %v5255_v23 = vadd.f32 %v9302_v11, %v5211_v62 }
 0x5d7   : > { %v5214_v36 = vpop.xlane.xlu0 %5213 }
 0x5d8   : > { %5288 = vst.msk [vmem:[%s9335_s12 + $0xe0] sm:$0xff] %vm5259_vm12, %v5255_v23  ;;  %v5256_v2 = vadd.f32 %v9302_v11, %v5214_v36 }
 0x5da   : > { %5289 = vst.msk [vmem:[%s9335_s12 + $0xe8] sm:$0xff] %vm5259_vm12, %v5256_v2 }
 0x5dd   : > { %v5217_v44 = vpop.xlane.xlu1 %5216 }
 0x5de   : > { %v5257_v61 = vadd.f32 %v9302_v11, %v5217_v44 }
 0x5df   : > { %v5220_v10 = vpop.xlane.xlu0 %5219 }
 0x5e0   : > { %5290 = vst.msk [vmem:[%s9335_s12 + $0xf0] sm:$0xff] %vm5259_vm12, %v5257_v61  ;;  %v5258_v20 = vadd.f32 %v9302_v11, %v5220_v10 }
 0x5e2   : > { %5291 = vst.msk [vmem:[%s9335_s12 + $0xf8] sm:$0xff] %vm5259_vm12, %v5258_v20 }
 0x5e3 PF: > { %p6406_p5 = scmp.ge.s32.totalorder %s6735_s22, 2  ;;  %s5553_s0 = sand.u32 1, %s6723_s19  }
 0x5e4   : > { %s5554_s28 = scalar_lea.sflag [#allocation4], %s5553_s0 }
 0x5e5   : > { %p6403_p1 = pnand %p6406_p5, %p6851_p6 }
 0x5e7   : > { %6718 = dma.done.wait (!%p6403_p1), %s5554_s28, 4096  }
 0x5e8   : > { %6720 = vsyncadd (!%p6403_p1), %s5554_s28, 4294963200  ;;  %p24_p2 = scmp.ge.s32.totalorder %s6834_s24, 4   ;;  %s9984_s19 = smov %s6727_s20 }
 0x5e9   : > { %s9985_s20 = smov %s6731_s21  ;;  %s9986_s21 = smov %s6845_s27 }
 0x5ea   : > { %s9987_s22 = smov %s6834_s24  ;;  %26 = sbr.rel (!%p24_p2) target bundleno = 6 (0x6), region = 110 }
 0x5f1   :  { %5567 = vsyncpa [#allocation4], 1 }
 0x5f2   :  { %5569 = vsyncpa [#allocation4 + $0x1], 1 }

</bundles_post_ra>
